<compile_context>
chip_gen: v7x
topology: tpu7x:2x2x1
jax: 0.10.0
libtpu: 0.0.40
codegen_flags: <defaults>
</compile_context>

<pallas_src>
from functools import partial

import jax
import jax.numpy as jnp
from jax.experimental import pallas as pl
from jax.experimental.pallas import tpu as pltpu


def _vmem_limit_bytes():
    # v5e/v6e have 128 MiB physical VMEM; v7x only 64 MiB per TensorCore.
    try:
        kind = jax.devices()[0].device_kind.lower()
    except Exception:  # pragma: no cover - defensive, default below is safe
        kind = ""
    if "v5" in kind or "v6" in kind:
        return 100 * 1024 * 1024
    return 48 * 1024 * 1024


def _cparams():
    return pltpu.CompilerParams(
        dimension_semantics=("parallel",),
        vmem_limit_bytes=_vmem_limit_bytes(),
    )


def _tanh_gelu(x):
    # TODO(synk): PyTorch nn.GELU() defaults to exact erf; the tanh form keeps
    # the transcendental on the EUP slot at ~1e-3 max abs deviation.
    c = 0.7978845608028654  # sqrt(2/pi)
    return 0.5 * x * (1.0 + jnp.tanh(c * (x + 0.044715 * x * x * x)))


def _tap_mask(ri, ci, oy, ox, H, W):
    """(S,1) f32 mask for tap offset (oy, ox): 1 where (h+oy, w+ox) is inside
    the image, 0 where the tap would read the implicit zero padding."""
    ok = None

    def _and(a, b):
        return b if a is None else a & b

    if oy > 0:
        ok = _and(ok, ri < (H - oy))
    elif oy < 0:
        ok = _and(ok, ri >= (-oy))
    if ox > 0:
        ok = _and(ok, ci < (W - ox))
    elif ox < 0:
        ok = _and(ok, ci >= (-ox))
    return ok.astype(jnp.float32)


def _dwconv3x3_flat(xs, w9, b, ri, ci, H, W):
    """Depthwise 3x3 conv (stride 1, pad 1) on a row-major flattened image.
    xs: (H*W, C) f32, w9: (9, C), b: (1, C).  Each spatial tap is a single
    sublane rotation (pltpu.roll -> XLU slot) of the flat array plus a (S,1)
    boundary mask -- no padded VMEM scratch, no interior copy, no misaligned
    sublane slices."""
    S = H * W
    acc = xs * w9[4:5, :] + b                      # center tap (identity folded) + bias
    for k in range(9):
        oy, ox = k // 3 - 1, k % 3 - 1
        if oy == 0 and ox == 0:
            continue
        off = oy * W + ox                          # flat offset of this tap
        v = pltpu.roll(xs, shift=(-off) % S, axis=0)
        v = v * _tap_mask(ri, ci, oy, ox, H, W)
        acc = acc + v * w9[k:k + 1, :]
    return acc


# ----------------------------------------------------------------------------
# Kernels
# ----------------------------------------------------------------------------
_DS_TAPS = ((-1, -1), (-1, 0), (0, -1), (0, 0))


def _downsample_kernel(sd_ref, ri_ref, ci_ref, w_ref, b_ref, o_ref, *, Ho, Wo):
    """3x3 stride-2 conv + folded eval-mode BN over the space-to-depth input:
    4 rolled quadrant taps feeding bf16 MXU dots with f32 accumulation."""
    S = Ho * Wo
    sd = sd_ref[0]                                 # (S, 4*Cin) f32
    ri = ri_ref[...]
    ci = ci_ref[...]
    w = w_ref[...]                                 # (4, 4*Cin, Cout) bf16, resident
    Cout = w.shape[-1]
    acc = jnp.zeros((S, Cout), jnp.float32)
    # TODO(synk): the 4 dots could be merged into one K=16*Cin matmul via a
    # lane-axis concat; the stem runs once per stage so this is a minor win.
    for qi, (qy, qx) in enumerate(_DS_TAPS):
        if qy == 0 and qx == 0:
            v = sd
        else:
            off = qy * Wo + qx
            v = pltpu.roll(sd, shift=(-off) % S, axis=0)
            v = v * _tap_mask(ri, ci, qy, qx, Ho, Wo)
        acc = acc + jnp.dot(v.astype(jnp.bfloat16), w[qi],
                            preferred_element_type=jnp.float32)
    o_ref[0] = acc + b_ref[...]


def _block_kernel(x_ref, ri_ref, ci_ref, pew_ref, peb_ref, lng_ref, lnb_ref,
                  w1_ref, b1_ref, dww_ref, dwb_ref, w2_ref, b2_ref, o_ref,
                  *, H, W, eps):
    """One fused DAMamba Block (eval, token_mixer=Identity, layerscale=False):
         x  = ResDWC_3x3(x)                         (pos_embed)
         xf = x + LayerNorm_C(x)
         h  = ResDWC_3x3(GELU(fc1(BN(xf))))         (BN folded into fc1)
         o  = xf + fc2(h)
    The (S, hidden) tensor h and the xf residual never leave VMEM/vregs."""
    ri = ri_ref[...]
    ci = ci_ref[...]
    x = x_ref[0]                                   # (S, C) f32

    # pos_embed: depthwise 3x3 with the ResDWC identity tap folded into weights
    x = _dwconv3x3_flat(x, pew_ref[...], peb_ref[...], ri, ci, H, W)

    # xf = x + LayerNorm over channels (token_mixer == Identity)
    mu = jnp.mean(x, axis=-1, keepdims=True)
    d = x - mu
    var = jnp.mean(d * d, axis=-1, keepdims=True)
    ln = d * jax.lax.rsqrt(var + eps) * lng_ref[...] + lnb_ref[...]
    xf = x + ln

    # fc1 (eval BN folded in) -> GELU        (bf16 MXU, f32 accumulate)
    h = jnp.dot(xf.astype(jnp.bfloat16), w1_ref[...],
                preferred_element_type=jnp.float32) + b1_ref[...]
    h = _tanh_gelu(h)

    # MLP depthwise ResDWC on the hidden channels (stays in VMEM)
    h = _dwconv3x3_flat(h, dww_ref[...], dwb_ref[...], ri, ci, H, W)

    # fc2 fused with the final residual add
    y = jnp.dot(h.astype(jnp.bfloat16), w2_ref[...],
                preferred_element_type=jnp.float32) + b2_ref[...]
    o_ref[0] = xf + y


# ----------------------------------------------------------------------------
# pallas_call wrappers
# ----------------------------------------------------------------------------
def downsample_conv(sd, ri, ci, w4, b, Ho, Wo):
    N, S, C4 = sd.shape
    Cout = w4.shape[-1]
    return pl.pallas_call(
        partial(_downsample_kernel, Ho=Ho, Wo=Wo),
        out_shape=jax.ShapeDtypeStruct((N, S, Cout), jnp.float32),
        grid=(N,),
        in_specs=[
            pl.BlockSpec((1, S, C4), lambda n: (n, 0, 0)),
            pl.BlockSpec((S, 1), lambda n: (0, 0)),
            pl.BlockSpec((S, 1), lambda n: (0, 0)),
            pl.BlockSpec((4, C4, Cout), lambda n: (0, 0, 0)),     # resident
            pl.BlockSpec((1, Cout), lambda n: (0, 0)),
        ],
        out_specs=pl.BlockSpec((1, S, Cout), lambda n: (n, 0, 0)),
        compiler_params=_cparams(),
    )(sd, ri, ci, w4, b.reshape(1, Cout))


def block_forward(x, ri, ci, bp, H, W):
    N, S, C = x.shape
    Hd = bp["fc1_w"].shape[1]
    return pl.pallas_call(
        partial(_block_kernel, H=H, W=W, eps=1e-6),
        out_shape=jax.ShapeDtypeStruct((N, S, C), jnp.float32),
        grid=(N,),
        in_specs=[
            pl.BlockSpec((1, S, C), lambda n: (n, 0, 0)),
            pl.BlockSpec((S, 1), lambda n: (0, 0)),
            pl.BlockSpec((S, 1), lambda n: (0, 0)),
            pl.BlockSpec((9, C), lambda n: (0, 0)),               # pos_embed taps
            pl.BlockSpec((1, C), lambda n: (0, 0)),
            pl.BlockSpec((1, C), lambda n: (0, 0)),               # LN gamma
            pl.BlockSpec((1, C), lambda n: (0, 0)),               # LN beta
            pl.BlockSpec((C, Hd), lambda n: (0, 0)),              # fc1 (resident bf16)
            pl.BlockSpec((1, Hd), lambda n: (0, 0)),
            pl.BlockSpec((9, Hd), lambda n: (0, 0)),              # hidden dw taps
            pl.BlockSpec((1, Hd), lambda n: (0, 0)),
            pl.BlockSpec((Hd, C), lambda n: (0, 0)),              # fc2 (resident bf16)
            pl.BlockSpec((1, C), lambda n: (0, 0)),
        ],
        out_specs=pl.BlockSpec((1, S, C), lambda n: (n, 0, 0)),
        compiler_params=_cparams(),
    )(x, ri, ci, bp["pe_w"], bp["pe_b"].reshape(1, C),
      bp["ln_g"].reshape(1, C), bp["ln_b"].reshape(1, C),
      bp["fc1_w"], bp["fc1_b"].reshape(1, Hd),
      bp["dw_w"], bp["dw_b"].reshape(1, Hd),
      bp["fc2_w"], bp["fc2_b"].reshape(1, C))


# ----------------------------------------------------------------------------
# Parameter prep (deterministic init, eval-mode BN folded at prep time)
# ----------------------------------------------------------------------------
def _fold_downsample(w_t, bias, s, t, Cin, Cout):
    """(Cout,Cin,3,3) conv + folded BN -> 4-tap space-to-depth weights
    W4: (4, 4*Cin, Cout) bf16, bias': (Cout,) f32."""
    w = w_t * s[:, None, None, None]
    b = bias * s + t
    W4 = jnp.zeros((4, 4 * Cin, Cout), jnp.float32)
    for qi, (qy, qx) in enumerate(_DS_TAPS):
        ylist = [(1, 0)] if qy == -1 else [(0, 1), (1, 2)]   # (row parity, dy)
        xlist = [(1, 0)] if qx == -1 else [(0, 1), (1, 2)]   # (col parity, dx)
        for ay, dy in ylist:
            for ax, dx in xlist:
                blk = jnp.transpose(w[:, :, dy, dx], (1, 0))  # (Cin, Cout)
                r0 = (ay * 2 + ax) * Cin
                W4 = W4.at[qi, r0:r0 + Cin, :].set(blk)
    return W4.astype(jnp.bfloat16), b.astype(jnp.float32)


def init_params(key, in_chs, out_chs, depth, mlp_ratio):
    hidden = int(mlp_ratio * out_chs)
    keys = iter(jax.random.split(key, 256))
    bn_eps = 1e-5

    def nrm(shape, std=0.1):
        return std * jax.random.normal(next(keys), shape, jnp.float32)

    def bn_affine(c):
        g = 1.0 + nrm((c,))
        b = nrm((c,))
        mean = nrm((c,))
        var = 1.0 + 0.1 * jnp.abs(jax.random.normal(next(keys), (c,), jnp.float32))
        s = g / jnp.sqrt(var + bn_eps)
        t = b - mean * s
        return s, t

    def dw_taps(c):
        # torch depthwise weight (C,1,3,3) -> (9, C) taps; add ResDWC identity tap
        w = nrm((c, 1, 3, 3))
        w9 = jnp.transpose(w.reshape(c, 9), (1, 0))
        return w9.at[4].add(1.0)

    # downsample conv + folded eval-mode BN
    wds = nrm((out_chs, in_chs, 3, 3))
    bds = nrm((out_chs,))
    s, t = bn_affine(out_chs)
    ds_w4, ds_b = _fold_downsample(wds, bds, s, t, in_chs, out_chs)

    C = out_chs
    blocks = []
    for _ in range(depth):
        pe_w = dw_taps(C)
        pe_b = nrm((C,))
        ln_g = 1.0 + nrm((C,))
        ln_b = nrm((C,))
        bn_s, bn_t = bn_affine(C)                                   # norm2 (BN) folded into fc1
        w1 = jnp.transpose(nrm((hidden, C, 1, 1))[:, :, 0, 0], (1, 0))   # (C, hidden)
        b1 = nrm((hidden,))
        fc1_w = (bn_s[:, None] * w1).astype(jnp.bfloat16)
        fc1_b = (bn_t @ w1 + b1).astype(jnp.float32)
        dw_w = dw_taps(hidden)
        dw_b = nrm((hidden,))
        w2 = jnp.transpose(nrm((C, hidden, 1, 1))[:, :, 0, 0], (1, 0))   # (hidden, C)
        fc2_w = w2.astype(jnp.bfloat16)
        fc2_b = nrm((C,))
        blocks.append(dict(pe_w=pe_w, pe_b=pe_b, ln_g=ln_g, ln_b=ln_b,
                           fc1_w=fc1_w, fc1_b=fc1_b, dw_w=dw_w, dw_b=dw_b,
                           fc2_w=fc2_w, fc2_b=fc2_b))
    return dict(ds_w4=ds_w4, ds_b=ds_b, blocks=blocks)


# ----------------------------------------------------------------------------
# DAMambaStage forward
# ----------------------------------------------------------------------------
def damamba_stage(x_nchw, params):
    x = jnp.transpose(x_nchw, (0, 2, 3, 1)).astype(jnp.float32)     # NCHW -> NHWC
    N, H, W, Cin = x.shape
    assert H % 2 == 0 and W % 2 == 0  # TODO(synk): odd spatial sizes need one extra pad row/col
    Ho, Wo = H // 2, W // 2
    S = Ho * Wo

    # Single space-to-depth copy (instead of a 9x im2col HBM expansion),
    # flattened row-major so every kernel works on lane-dense (S, C) slabs.
    sd = (x.reshape(N, Ho, 2, Wo, 2, Cin)
           .transpose(0, 1, 3, 2, 4, 5)
           .reshape(N, S, 4 * Cin))

    # Flat-index -> (row, col) lookups shared by all roll-based 3x3 taps.
    fi = jnp.arange(S, dtype=jnp.int32)
    ri = (fi // Wo).reshape(S, 1)
    ci = (fi % Wo).reshape(S, 1)

    C = params["ds_w4"].shape[-1]
    x = downsample_conv(sd, ri, ci, params["ds_w4"], params["ds_b"], Ho, Wo)

    for bp in params["blocks"]:
        x = block_forward(x, ri, ci, bp, Ho, Wo)                    # one fused call / block

    x = x.reshape(N, Ho, Wo, C)
    return jnp.transpose(x, (0, 3, 1, 2))                           # NHWC -> NCHW


if __name__ == "__main__":
    in_chs, out_chs, depth, mlp_ratio = 4, 8, 2, 4
    N, H, W = 2, 16, 16

    key = jax.random.PRNGKey(0)
    kp, kx = jax.random.split(key)
    params = init_params(kp, in_chs, out_chs, depth, mlp_ratio)
    x = jax.random.normal(kx, (N, in_chs, H, W), jnp.float32)

    out = jax.jit(damamba_stage)(x, params)
    out = jax.block_until_ready(out)
    assert out.shape == (N, out_chs, H // 2, W // 2), out.shape
    assert bool(jnp.all(jnp.isfinite(out)))
    print("KERNEL_OK")
</pallas_src>

<mosaic_0001>
module attributes {stable_mosaic.version = 11 : i64} {
  func.func @_block_kernel(%arg0: i32, %arg1: memref<1x64x8xf32, #tpu.memory_space<vmem>>, %arg2: memref<64x1xi32, #tpu.memory_space<vmem>>, %arg3: memref<64x1xi32, #tpu.memory_space<vmem>>, %arg4: memref<9x8xf32, #tpu.memory_space<vmem>>, %arg5: memref<1x8xf32, #tpu.memory_space<vmem>>, %arg6: memref<1x8xf32, #tpu.memory_space<vmem>>, %arg7: memref<1x8xf32, #tpu.memory_space<vmem>>, %arg8: memref<8x32xbf16, #tpu.memory_space<vmem>>, %arg9: memref<1x32xf32, #tpu.memory_space<vmem>>, %arg10: memref<9x32xf32, #tpu.memory_space<vmem>>, %arg11: memref<1x32xf32, #tpu.memory_space<vmem>>, %arg12: memref<32x8xbf16, #tpu.memory_space<vmem>>, %arg13: memref<1x8xf32, #tpu.memory_space<vmem>>, %arg14: memref<1x64x8xf32, #tpu.memory_space<vmem>>) attributes {dimension_semantics = [#tpu.dimension_semantics<parallel>], iteration_bounds = array<i64: 2>, scalar_prefetch = 0 : i64, scratch_operands = 0 : i64, tpu.core_type = #tpu.core_type<tc>, window_params = [{transform_indices = @transform_0, window_bounds = array<i64: 1, 64, 8>}, {pipeline_mode = #tpu.pipeline_mode<synchronous>, transform_indices = @transform_1, window_bounds = array<i64: 64, 1>}, {pipeline_mode = #tpu.pipeline_mode<synchronous>, transform_indices = @transform_2, window_bounds = array<i64: 64, 1>}, {pipeline_mode = #tpu.pipeline_mode<synchronous>, transform_indices = @transform_3, window_bounds = array<i64: 9, 8>}, {pipeline_mode = #tpu.pipeline_mode<synchronous>, transform_indices = @transform_4, window_bounds = array<i64: 1, 8>}, {pipeline_mode = #tpu.pipeline_mode<synchronous>, transform_indices = @transform_5, window_bounds = array<i64: 1, 8>}, {pipeline_mode = #tpu.pipeline_mode<synchronous>, transform_indices = @transform_6, window_bounds = array<i64: 1, 8>}, {pipeline_mode = #tpu.pipeline_mode<synchronous>, transform_indices = @transform_7, window_bounds = array<i64: 8, 32>}, {pipeline_mode = #tpu.pipeline_mode<synchronous>, transform_indices = @transform_8, window_bounds = array<i64: 1, 32>}, {pipeline_mode = #tpu.pipeline_mode<synchronous>, transform_indices = @transform_9, window_bounds = array<i64: 9, 32>}, {pipeline_mode = #tpu.pipeline_mode<synchronous>, transform_indices = @transform_10, window_bounds = array<i64: 1, 32>}, {pipeline_mode = #tpu.pipeline_mode<synchronous>, transform_indices = @transform_11, window_bounds = array<i64: 32, 8>}, {pipeline_mode = #tpu.pipeline_mode<synchronous>, transform_indices = @transform_12, window_bounds = array<i64: 1, 8>}, {transform_indices = @transform_13, window_bounds = array<i64: 1, 64, 8>}]} {
    %c0 = arith.constant 0 : index
    %c0_0 = arith.constant 0 : index
    %0 = vector.load %arg2[%c0, %c0_0] : memref<64x1xi32, #tpu.memory_space<vmem>>, vector<64x1xi32>
    %c0_1 = arith.constant 0 : index
    %c0_2 = arith.constant 0 : index
    %1 = vector.load %arg3[%c0_1, %c0_2] : memref<64x1xi32, #tpu.memory_space<vmem>>, vector<64x1xi32>
    %c0_3 = arith.constant 0 : index
    %c0_4 = arith.constant 0 : index
    %c0_5 = arith.constant 0 : index
    %2 = vector.load %arg1[%c0_3, %c0_4, %c0_5] : memref<1x64x8xf32, #tpu.memory_space<vmem>>, vector<1x64x8xf32>
    %3 = vector.shape_cast %2 : vector<1x64x8xf32> to vector<64x8xf32>
    %c0_6 = arith.constant 0 : index
    %c0_7 = arith.constant 0 : index
    %4 = vector.load %arg4[%c0_6, %c0_7] : memref<9x8xf32, #tpu.memory_space<vmem>>, vector<9x8xf32>
    %c0_8 = arith.constant 0 : index
    %c0_9 = arith.constant 0 : index
    %5 = vector.load %arg5[%c0_8, %c0_9] : memref<1x8xf32, #tpu.memory_space<vmem>>, vector<1x8xf32>
    %6 = vector.extract_strided_slice %4 {offsets = [4, 0], sizes = [1, 8], strides = [1, 1]} : vector<9x8xf32> to vector<1x8xf32>
    %7 = vector.broadcast %6 : vector<1x8xf32> to vector<64x8xf32>
    %8 = arith.mulf %3, %7 : vector<64x8xf32>
    %9 = vector.broadcast %5 : vector<1x8xf32> to vector<64x8xf32>
    %10 = arith.addf %8, %9 : vector<64x8xf32>
    %c9_i32 = arith.constant 9 : i32
    %11 = tpu.dynamic_rotate %3 by %c9_i32 dim 0 : vector<64x8xf32>, i32 -> vector<64x8xf32>
    %c1_i32 = arith.constant 1 : i32
    %12 = vector.broadcast %c1_i32 : i32 to vector<64x1xi32>
    %13 = arith.cmpi sge, %0, %12 : vector<64x1xi32>
    %c1_i32_10 = arith.constant 1 : i32
    %14 = vector.broadcast %c1_i32_10 : i32 to vector<64x1xi32>
    %15 = arith.cmpi sge, %1, %14 : vector<64x1xi32>
    %16 = arith.andi %13, %15 : vector<64x1xi1>
    %17 = arith.extui %16 : vector<64x1xi1> to vector<64x1xi32>
    %18 = arith.sitofp %17 : vector<64x1xi32> to vector<64x1xf32>
    %19 = vector.broadcast %18 : vector<64x1xf32> to vector<64x8xf32>
    %20 = arith.mulf %11, %19 : vector<64x8xf32>
    %21 = vector.extract_strided_slice %4 {offsets = [0, 0], sizes = [1, 8], strides = [1, 1]} : vector<9x8xf32> to vector<1x8xf32>
    %22 = vector.broadcast %21 : vector<1x8xf32> to vector<64x8xf32>
    %23 = arith.mulf %20, %22 : vector<64x8xf32>
    %24 = arith.addf %10, %23 : vector<64x8xf32>
    %c8_i32 = arith.constant 8 : i32
    %25 = tpu.dynamic_rotate %3 by %c8_i32 dim 0 : vector<64x8xf32>, i32 -> vector<64x8xf32>
    %c1_i32_11 = arith.constant 1 : i32
    %26 = vector.broadcast %c1_i32_11 : i32 to vector<64x1xi32>
    %27 = arith.cmpi sge, %0, %26 : vector<64x1xi32>
    %28 = arith.extui %27 : vector<64x1xi1> to vector<64x1xi32>
    %29 = arith.sitofp %28 : vector<64x1xi32> to vector<64x1xf32>
    %30 = vector.broadcast %29 : vector<64x1xf32> to vector<64x8xf32>
    %31 = arith.mulf %25, %30 : vector<64x8xf32>
    %32 = vector.extract_strided_slice %4 {offsets = [1, 0], sizes = [1, 8], strides = [1, 1]} : vector<9x8xf32> to vector<1x8xf32>
    %33 = vector.broadcast %32 : vector<1x8xf32> to vector<64x8xf32>
    %34 = arith.mulf %31, %33 : vector<64x8xf32>
    %35 = arith.addf %24, %34 : vector<64x8xf32>
    %c7_i32 = arith.constant 7 : i32
    %36 = tpu.dynamic_rotate %3 by %c7_i32 dim 0 : vector<64x8xf32>, i32 -> vector<64x8xf32>
    %c1_i32_12 = arith.constant 1 : i32
    %37 = vector.broadcast %c1_i32_12 : i32 to vector<64x1xi32>
    %38 = arith.cmpi sge, %0, %37 : vector<64x1xi32>
    %c7_i32_13 = arith.constant 7 : i32
    %39 = vector.broadcast %c7_i32_13 : i32 to vector<64x1xi32>
    %40 = arith.cmpi slt, %1, %39 : vector<64x1xi32>
    %41 = arith.andi %38, %40 : vector<64x1xi1>
    %42 = arith.extui %41 : vector<64x1xi1> to vector<64x1xi32>
    %43 = arith.sitofp %42 : vector<64x1xi32> to vector<64x1xf32>
    %44 = vector.broadcast %43 : vector<64x1xf32> to vector<64x8xf32>
    %45 = arith.mulf %36, %44 : vector<64x8xf32>
    %46 = vector.extract_strided_slice %4 {offsets = [2, 0], sizes = [1, 8], strides = [1, 1]} : vector<9x8xf32> to vector<1x8xf32>
    %47 = vector.broadcast %46 : vector<1x8xf32> to vector<64x8xf32>
    %48 = arith.mulf %45, %47 : vector<64x8xf32>
    %49 = arith.addf %35, %48 : vector<64x8xf32>
    %c1_i32_14 = arith.constant 1 : i32
    %50 = tpu.dynamic_rotate %3 by %c1_i32_14 dim 0 : vector<64x8xf32>, i32 -> vector<64x8xf32>
    %c1_i32_15 = arith.constant 1 : i32
    %51 = vector.broadcast %c1_i32_15 : i32 to vector<64x1xi32>
    %52 = arith.cmpi sge, %1, %51 : vector<64x1xi32>
    %53 = arith.extui %52 : vector<64x1xi1> to vector<64x1xi32>
    %54 = arith.sitofp %53 : vector<64x1xi32> to vector<64x1xf32>
    %55 = vector.broadcast %54 : vector<64x1xf32> to vector<64x8xf32>
    %56 = arith.mulf %50, %55 : vector<64x8xf32>
    %57 = vector.extract_strided_slice %4 {offsets = [3, 0], sizes = [1, 8], strides = [1, 1]} : vector<9x8xf32> to vector<1x8xf32>
    %58 = vector.broadcast %57 : vector<1x8xf32> to vector<64x8xf32>
    %59 = arith.mulf %56, %58 : vector<64x8xf32>
    %60 = arith.addf %49, %59 : vector<64x8xf32>
    %c63_i32 = arith.constant 63 : i32
    %61 = tpu.dynamic_rotate %3 by %c63_i32 dim 0 : vector<64x8xf32>, i32 -> vector<64x8xf32>
    %c7_i32_16 = arith.constant 7 : i32
    %62 = vector.broadcast %c7_i32_16 : i32 to vector<64x1xi32>
    %63 = arith.cmpi slt, %1, %62 : vector<64x1xi32>
    %64 = arith.extui %63 : vector<64x1xi1> to vector<64x1xi32>
    %65 = arith.sitofp %64 : vector<64x1xi32> to vector<64x1xf32>
    %66 = vector.broadcast %65 : vector<64x1xf32> to vector<64x8xf32>
    %67 = arith.mulf %61, %66 : vector<64x8xf32>
    %68 = vector.extract_strided_slice %4 {offsets = [5, 0], sizes = [1, 8], strides = [1, 1]} : vector<9x8xf32> to vector<1x8xf32>
    %69 = vector.broadcast %68 : vector<1x8xf32> to vector<64x8xf32>
    %70 = arith.mulf %67, %69 : vector<64x8xf32>
    %71 = arith.addf %60, %70 : vector<64x8xf32>
    %c57_i32 = arith.constant 57 : i32
    %72 = tpu.dynamic_rotate %3 by %c57_i32 dim 0 : vector<64x8xf32>, i32 -> vector<64x8xf32>
    %c7_i32_17 = arith.constant 7 : i32
    %73 = vector.broadcast %c7_i32_17 : i32 to vector<64x1xi32>
    %74 = arith.cmpi slt, %0, %73 : vector<64x1xi32>
    %c1_i32_18 = arith.constant 1 : i32
    %75 = vector.broadcast %c1_i32_18 : i32 to vector<64x1xi32>
    %76 = arith.cmpi sge, %1, %75 : vector<64x1xi32>
    %77 = arith.andi %74, %76 : vector<64x1xi1>
    %78 = arith.extui %77 : vector<64x1xi1> to vector<64x1xi32>
    %79 = arith.sitofp %78 : vector<64x1xi32> to vector<64x1xf32>
    %80 = vector.broadcast %79 : vector<64x1xf32> to vector<64x8xf32>
    %81 = arith.mulf %72, %80 : vector<64x8xf32>
    %82 = vector.extract_strided_slice %4 {offsets = [6, 0], sizes = [1, 8], strides = [1, 1]} : vector<9x8xf32> to vector<1x8xf32>
    %83 = vector.broadcast %82 : vector<1x8xf32> to vector<64x8xf32>
    %84 = arith.mulf %81, %83 : vector<64x8xf32>
    %85 = arith.addf %71, %84 : vector<64x8xf32>
    %c56_i32 = arith.constant 56 : i32
    %86 = tpu.dynamic_rotate %3 by %c56_i32 dim 0 : vector<64x8xf32>, i32 -> vector<64x8xf32>
    %c7_i32_19 = arith.constant 7 : i32
    %87 = vector.broadcast %c7_i32_19 : i32 to vector<64x1xi32>
    %88 = arith.cmpi slt, %0, %87 : vector<64x1xi32>
    %89 = arith.extui %88 : vector<64x1xi1> to vector<64x1xi32>
    %90 = arith.sitofp %89 : vector<64x1xi32> to vector<64x1xf32>
    %91 = vector.broadcast %90 : vector<64x1xf32> to vector<64x8xf32>
    %92 = arith.mulf %86, %91 : vector<64x8xf32>
    %93 = vector.extract_strided_slice %4 {offsets = [7, 0], sizes = [1, 8], strides = [1, 1]} : vector<9x8xf32> to vector<1x8xf32>
    %94 = vector.broadcast %93 : vector<1x8xf32> to vector<64x8xf32>
    %95 = arith.mulf %92, %94 : vector<64x8xf32>
    %96 = arith.addf %85, %95 : vector<64x8xf32>
    %c55_i32 = arith.constant 55 : i32
    %97 = tpu.dynamic_rotate %3 by %c55_i32 dim 0 : vector<64x8xf32>, i32 -> vector<64x8xf32>
    %c7_i32_20 = arith.constant 7 : i32
    %98 = vector.broadcast %c7_i32_20 : i32 to vector<64x1xi32>
    %99 = arith.cmpi slt, %0, %98 : vector<64x1xi32>
    %c7_i32_21 = arith.constant 7 : i32
    %100 = vector.broadcast %c7_i32_21 : i32 to vector<64x1xi32>
    %101 = arith.cmpi slt, %1, %100 : vector<64x1xi32>
    %102 = arith.andi %99, %101 : vector<64x1xi1>
    %103 = arith.extui %102 : vector<64x1xi1> to vector<64x1xi32>
    %104 = arith.sitofp %103 : vector<64x1xi32> to vector<64x1xf32>
    %105 = vector.broadcast %104 : vector<64x1xf32> to vector<64x8xf32>
    %106 = arith.mulf %97, %105 : vector<64x8xf32>
    %107 = vector.extract_strided_slice %4 {offsets = [8, 0], sizes = [1, 8], strides = [1, 1]} : vector<9x8xf32> to vector<1x8xf32>
    %108 = vector.broadcast %107 : vector<1x8xf32> to vector<64x8xf32>
    %109 = arith.mulf %106, %108 : vector<64x8xf32>
    %110 = arith.addf %96, %109 : vector<64x8xf32>
    %cst = arith.constant dense<0.000000e+00> : vector<64xf32>
    %111 = vector.multi_reduction <add>, %110, %cst [1] : vector<64x8xf32> to vector<64xf32>
    %112 = vector.shape_cast %111 : vector<64xf32> to vector<64x1xf32>
    %cst_22 = arith.constant 8.000000e+00 : f32
    %113 = vector.broadcast %cst_22 : f32 to vector<64x1xf32>
    %114 = arith.divf %112, %113 : vector<64x1xf32>
    %115 = vector.broadcast %114 : vector<64x1xf32> to vector<64x8xf32>
    %116 = arith.subf %110, %115 : vector<64x8xf32>
    %117 = arith.mulf %116, %116 : vector<64x8xf32>
    %cst_23 = arith.constant dense<0.000000e+00> : vector<64xf32>
    %118 = vector.multi_reduction <add>, %117, %cst_23 [1] : vector<64x8xf32> to vector<64xf32>
    %119 = vector.shape_cast %118 : vector<64xf32> to vector<64x1xf32>
    %cst_24 = arith.constant 8.000000e+00 : f32
    %120 = vector.broadcast %cst_24 : f32 to vector<64x1xf32>
    %121 = arith.divf %119, %120 : vector<64x1xf32>
    %cst_25 = arith.constant 9.99999997E-7 : f32
    %122 = vector.broadcast %cst_25 : f32 to vector<64x1xf32>
    %123 = arith.addf %121, %122 : vector<64x1xf32>
    %124 = math.rsqrt %123 : vector<64x1xf32>
    %125 = vector.broadcast %124 : vector<64x1xf32> to vector<64x8xf32>
    %126 = arith.mulf %116, %125 : vector<64x8xf32>
    %c0_26 = arith.constant 0 : index
    %c0_27 = arith.constant 0 : index
    %127 = vector.load %arg6[%c0_26, %c0_27] : memref<1x8xf32, #tpu.memory_space<vmem>>, vector<1x8xf32>
    %128 = vector.broadcast %127 : vector<1x8xf32> to vector<64x8xf32>
    %129 = arith.mulf %126, %128 : vector<64x8xf32>
    %c0_28 = arith.constant 0 : index
    %c0_29 = arith.constant 0 : index
    %130 = vector.load %arg7[%c0_28, %c0_29] : memref<1x8xf32, #tpu.memory_space<vmem>>, vector<1x8xf32>
    %131 = vector.broadcast %130 : vector<1x8xf32> to vector<64x8xf32>
    %132 = arith.addf %129, %131 : vector<64x8xf32>
    %133 = arith.addf %110, %132 : vector<64x8xf32>
    %134 = arith.truncf %133 : vector<64x8xf32> to vector<64x8xbf16>
    %c0_30 = arith.constant 0 : index
    %c0_31 = arith.constant 0 : index
    %135 = vector.load %arg8[%c0_30, %c0_31] : memref<8x32xbf16, #tpu.memory_space<vmem>>, vector<8x32xbf16>
    %cst_32 = arith.constant dense<0.000000e+00> : vector<64x32xf32>
    %136 = tpu.matmul %134, %135, %cst_32 {dimension_numbers = #tpu.dot_dimension_numbers<[1], [0], [0], [1], [0, 0, 1, 1], [], []>} : vector<64x8xbf16>, vector<8x32xbf16>, vector<64x32xf32> -> vector<64x32xf32>
    %c0_33 = arith.constant 0 : index
    %c0_34 = arith.constant 0 : index
    %137 = vector.load %arg9[%c0_33, %c0_34] : memref<1x32xf32, #tpu.memory_space<vmem>>, vector<1x32xf32>
    %138 = vector.broadcast %137 : vector<1x32xf32> to vector<64x32xf32>
    %139 = arith.addf %136, %138 : vector<64x32xf32>
    %cst_35 = arith.constant 5.000000e-01 : f32
    %140 = vector.broadcast %cst_35 : f32 to vector<64x32xf32>
    %141 = arith.mulf %140, %139 : vector<64x32xf32>
    %cst_36 = arith.constant 4.471500e-02 : f32
    %142 = vector.broadcast %cst_36 : f32 to vector<64x32xf32>
    %143 = arith.mulf %142, %139 : vector<64x32xf32>
    %144 = arith.mulf %143, %139 : vector<64x32xf32>
    %145 = arith.mulf %144, %139 : vector<64x32xf32>
    %146 = arith.addf %139, %145 : vector<64x32xf32>
    %cst_37 = arith.constant 0.797884583 : f32
    %147 = vector.broadcast %cst_37 : f32 to vector<64x32xf32>
    %148 = arith.mulf %147, %146 : vector<64x32xf32>
    %149 = math.tanh %148 : vector<64x32xf32>
    %cst_38 = arith.constant 1.000000e+00 : f32
    %150 = vector.broadcast %cst_38 : f32 to vector<64x32xf32>
    %151 = arith.addf %150, %149 : vector<64x32xf32>
    %152 = arith.mulf %141, %151 : vector<64x32xf32>
    %c0_39 = arith.constant 0 : index
    %c0_40 = arith.constant 0 : index
    %153 = vector.load %arg10[%c0_39, %c0_40] : memref<9x32xf32, #tpu.memory_space<vmem>>, vector<9x32xf32>
    %c0_41 = arith.constant 0 : index
    %c0_42 = arith.constant 0 : index
    %154 = vector.load %arg11[%c0_41, %c0_42] : memref<1x32xf32, #tpu.memory_space<vmem>>, vector<1x32xf32>
    %155 = vector.extract_strided_slice %153 {offsets = [4, 0], sizes = [1, 32], strides = [1, 1]} : vector<9x32xf32> to vector<1x32xf32>
    %156 = vector.broadcast %155 : vector<1x32xf32> to vector<64x32xf32>
    %157 = arith.mulf %152, %156 : vector<64x32xf32>
    %158 = vector.broadcast %154 : vector<1x32xf32> to vector<64x32xf32>
    %159 = arith.addf %157, %158 : vector<64x32xf32>
    %c9_i32_43 = arith.constant 9 : i32
    %160 = tpu.dynamic_rotate %152 by %c9_i32_43 dim 0 : vector<64x32xf32>, i32 -> vector<64x32xf32>
    %c1_i32_44 = arith.constant 1 : i32
    %161 = vector.broadcast %c1_i32_44 : i32 to vector<64x1xi32>
    %162 = arith.cmpi sge, %0, %161 : vector<64x1xi32>
    %c1_i32_45 = arith.constant 1 : i32
    %163 = vector.broadcast %c1_i32_45 : i32 to vector<64x1xi32>
    %164 = arith.cmpi sge, %1, %163 : vector<64x1xi32>
    %165 = arith.andi %162, %164 : vector<64x1xi1>
    %166 = arith.extui %165 : vector<64x1xi1> to vector<64x1xi32>
    %167 = arith.sitofp %166 : vector<64x1xi32> to vector<64x1xf32>
    %168 = vector.broadcast %167 : vector<64x1xf32> to vector<64x32xf32>
    %169 = arith.mulf %160, %168 : vector<64x32xf32>
    %170 = vector.extract_strided_slice %153 {offsets = [0, 0], sizes = [1, 32], strides = [1, 1]} : vector<9x32xf32> to vector<1x32xf32>
    %171 = vector.broadcast %170 : vector<1x32xf32> to vector<64x32xf32>
    %172 = arith.mulf %169, %171 : vector<64x32xf32>
    %173 = arith.addf %159, %172 : vector<64x32xf32>
    %c8_i32_46 = arith.constant 8 : i32
    %174 = tpu.dynamic_rotate %152 by %c8_i32_46 dim 0 : vector<64x32xf32>, i32 -> vector<64x32xf32>
    %c1_i32_47 = arith.constant 1 : i32
    %175 = vector.broadcast %c1_i32_47 : i32 to vector<64x1xi32>
    %176 = arith.cmpi sge, %0, %175 : vector<64x1xi32>
    %177 = arith.extui %176 : vector<64x1xi1> to vector<64x1xi32>
    %178 = arith.sitofp %177 : vector<64x1xi32> to vector<64x1xf32>
    %179 = vector.broadcast %178 : vector<64x1xf32> to vector<64x32xf32>
    %180 = arith.mulf %174, %179 : vector<64x32xf32>
    %181 = vector.extract_strided_slice %153 {offsets = [1, 0], sizes = [1, 32], strides = [1, 1]} : vector<9x32xf32> to vector<1x32xf32>
    %182 = vector.broadcast %181 : vector<1x32xf32> to vector<64x32xf32>
    %183 = arith.mulf %180, %182 : vector<64x32xf32>
    %184 = arith.addf %173, %183 : vector<64x32xf32>
    %c7_i32_48 = arith.constant 7 : i32
    %185 = tpu.dynamic_rotate %152 by %c7_i32_48 dim 0 : vector<64x32xf32>, i32 -> vector<64x32xf32>
    %c1_i32_49 = arith.constant 1 : i32
    %186 = vector.broadcast %c1_i32_49 : i32 to vector<64x1xi32>
    %187 = arith.cmpi sge, %0, %186 : vector<64x1xi32>
    %c7_i32_50 = arith.constant 7 : i32
    %188 = vector.broadcast %c7_i32_50 : i32 to vector<64x1xi32>
    %189 = arith.cmpi slt, %1, %188 : vector<64x1xi32>
    %190 = arith.andi %187, %189 : vector<64x1xi1>
    %191 = arith.extui %190 : vector<64x1xi1> to vector<64x1xi32>
    %192 = arith.sitofp %191 : vector<64x1xi32> to vector<64x1xf32>
    %193 = vector.broadcast %192 : vector<64x1xf32> to vector<64x32xf32>
    %194 = arith.mulf %185, %193 : vector<64x32xf32>
    %195 = vector.extract_strided_slice %153 {offsets = [2, 0], sizes = [1, 32], strides = [1, 1]} : vector<9x32xf32> to vector<1x32xf32>
    %196 = vector.broadcast %195 : vector<1x32xf32> to vector<64x32xf32>
    %197 = arith.mulf %194, %196 : vector<64x32xf32>
    %198 = arith.addf %184, %197 : vector<64x32xf32>
    %c1_i32_51 = arith.constant 1 : i32
    %199 = tpu.dynamic_rotate %152 by %c1_i32_51 dim 0 : vector<64x32xf32>, i32 -> vector<64x32xf32>
    %c1_i32_52 = arith.constant 1 : i32
    %200 = vector.broadcast %c1_i32_52 : i32 to vector<64x1xi32>
    %201 = arith.cmpi sge, %1, %200 : vector<64x1xi32>
    %202 = arith.extui %201 : vector<64x1xi1> to vector<64x1xi32>
    %203 = arith.sitofp %202 : vector<64x1xi32> to vector<64x1xf32>
    %204 = vector.broadcast %203 : vector<64x1xf32> to vector<64x32xf32>
    %205 = arith.mulf %199, %204 : vector<64x32xf32>
    %206 = vector.extract_strided_slice %153 {offsets = [3, 0], sizes = [1, 32], strides = [1, 1]} : vector<9x32xf32> to vector<1x32xf32>
    %207 = vector.broadcast %206 : vector<1x32xf32> to vector<64x32xf32>
    %208 = arith.mulf %205, %207 : vector<64x32xf32>
    %209 = arith.addf %198, %208 : vector<64x32xf32>
    %c63_i32_53 = arith.constant 63 : i32
    %210 = tpu.dynamic_rotate %152 by %c63_i32_53 dim 0 : vector<64x32xf32>, i32 -> vector<64x32xf32>
    %c7_i32_54 = arith.constant 7 : i32
    %211 = vector.broadcast %c7_i32_54 : i32 to vector<64x1xi32>
    %212 = arith.cmpi slt, %1, %211 : vector<64x1xi32>
    %213 = arith.extui %212 : vector<64x1xi1> to vector<64x1xi32>
    %214 = arith.sitofp %213 : vector<64x1xi32> to vector<64x1xf32>
    %215 = vector.broadcast %214 : vector<64x1xf32> to vector<64x32xf32>
    %216 = arith.mulf %210, %215 : vector<64x32xf32>
    %217 = vector.extract_strided_slice %153 {offsets = [5, 0], sizes = [1, 32], strides = [1, 1]} : vector<9x32xf32> to vector<1x32xf32>
    %218 = vector.broadcast %217 : vector<1x32xf32> to vector<64x32xf32>
    %219 = arith.mulf %216, %218 : vector<64x32xf32>
    %220 = arith.addf %209, %219 : vector<64x32xf32>
    %c57_i32_55 = arith.constant 57 : i32
    %221 = tpu.dynamic_rotate %152 by %c57_i32_55 dim 0 : vector<64x32xf32>, i32 -> vector<64x32xf32>
    %c7_i32_56 = arith.constant 7 : i32
    %222 = vector.broadcast %c7_i32_56 : i32 to vector<64x1xi32>
    %223 = arith.cmpi slt, %0, %222 : vector<64x1xi32>
    %c1_i32_57 = arith.constant 1 : i32
    %224 = vector.broadcast %c1_i32_57 : i32 to vector<64x1xi32>
    %225 = arith.cmpi sge, %1, %224 : vector<64x1xi32>
    %226 = arith.andi %223, %225 : vector<64x1xi1>
    %227 = arith.extui %226 : vector<64x1xi1> to vector<64x1xi32>
    %228 = arith.sitofp %227 : vector<64x1xi32> to vector<64x1xf32>
    %229 = vector.broadcast %228 : vector<64x1xf32> to vector<64x32xf32>
    %230 = arith.mulf %221, %229 : vector<64x32xf32>
    %231 = vector.extract_strided_slice %153 {offsets = [6, 0], sizes = [1, 32], strides = [1, 1]} : vector<9x32xf32> to vector<1x32xf32>
    %232 = vector.broadcast %231 : vector<1x32xf32> to vector<64x32xf32>
    %233 = arith.mulf %230, %232 : vector<64x32xf32>
    %234 = arith.addf %220, %233 : vector<64x32xf32>
    %c56_i32_58 = arith.constant 56 : i32
    %235 = tpu.dynamic_rotate %152 by %c56_i32_58 dim 0 : vector<64x32xf32>, i32 -> vector<64x32xf32>
    %c7_i32_59 = arith.constant 7 : i32
    %236 = vector.broadcast %c7_i32_59 : i32 to vector<64x1xi32>
    %237 = arith.cmpi slt, %0, %236 : vector<64x1xi32>
    %238 = arith.extui %237 : vector<64x1xi1> to vector<64x1xi32>
    %239 = arith.sitofp %238 : vector<64x1xi32> to vector<64x1xf32>
    %240 = vector.broadcast %239 : vector<64x1xf32> to vector<64x32xf32>
    %241 = arith.mulf %235, %240 : vector<64x32xf32>
    %242 = vector.extract_strided_slice %153 {offsets = [7, 0], sizes = [1, 32], strides = [1, 1]} : vector<9x32xf32> to vector<1x32xf32>
    %243 = vector.broadcast %242 : vector<1x32xf32> to vector<64x32xf32>
    %244 = arith.mulf %241, %243 : vector<64x32xf32>
    %245 = arith.addf %234, %244 : vector<64x32xf32>
    %c55_i32_60 = arith.constant 55 : i32
    %246 = tpu.dynamic_rotate %152 by %c55_i32_60 dim 0 : vector<64x32xf32>, i32 -> vector<64x32xf32>
    %c7_i32_61 = arith.constant 7 : i32
    %247 = vector.broadcast %c7_i32_61 : i32 to vector<64x1xi32>
    %248 = arith.cmpi slt, %0, %247 : vector<64x1xi32>
    %c7_i32_62 = arith.constant 7 : i32
    %249 = vector.broadcast %c7_i32_62 : i32 to vector<64x1xi32>
    %250 = arith.cmpi slt, %1, %249 : vector<64x1xi32>
    %251 = arith.andi %248, %250 : vector<64x1xi1>
    %252 = arith.extui %251 : vector<64x1xi1> to vector<64x1xi32>
    %253 = arith.sitofp %252 : vector<64x1xi32> to vector<64x1xf32>
    %254 = vector.broadcast %253 : vector<64x1xf32> to vector<64x32xf32>
    %255 = arith.mulf %246, %254 : vector<64x32xf32>
    %256 = vector.extract_strided_slice %153 {offsets = [8, 0], sizes = [1, 32], strides = [1, 1]} : vector<9x32xf32> to vector<1x32xf32>
    %257 = vector.broadcast %256 : vector<1x32xf32> to vector<64x32xf32>
    %258 = arith.mulf %255, %257 : vector<64x32xf32>
    %259 = arith.addf %245, %258 : vector<64x32xf32>
    %260 = arith.truncf %259 : vector<64x32xf32> to vector<64x32xbf16>
    %c0_63 = arith.constant 0 : index
    %c0_64 = arith.constant 0 : index
    %261 = vector.load %arg12[%c0_63, %c0_64] : memref<32x8xbf16, #tpu.memory_space<vmem>>, vector<32x8xbf16>
    %cst_65 = arith.constant dense<0.000000e+00> : vector<64x8xf32>
    %262 = tpu.matmul %260, %261, %cst_65 {dimension_numbers = #tpu.dot_dimension_numbers<[1], [0], [0], [1], [0, 0, 1, 1], [], []>} : vector<64x32xbf16>, vector<32x8xbf16>, vector<64x8xf32> -> vector<64x8xf32>
    %c0_66 = arith.constant 0 : index
    %c0_67 = arith.constant 0 : index
    %263 = vector.load %arg13[%c0_66, %c0_67] : memref<1x8xf32, #tpu.memory_space<vmem>>, vector<1x8xf32>
    %264 = vector.broadcast %263 : vector<1x8xf32> to vector<64x8xf32>
    %265 = arith.addf %262, %264 : vector<64x8xf32>
    %266 = arith.addf %133, %265 : vector<64x8xf32>
    %c0_68 = arith.constant 0 : index
    %c0_69 = arith.constant 0 : index
    %c0_70 = arith.constant 0 : index
    %267 = vector.load %arg14[%c0_68, %c0_69, %c0_70] : memref<1x64x8xf32, #tpu.memory_space<vmem>>, vector<1x64x8xf32>
    %268 = vector.shape_cast %267 : vector<1x64x8xf32> to vector<64x8xf32>
    %269 = vector.shape_cast %266 : vector<64x8xf32> to vector<1x64x8xf32>
    tpu.vector_store %arg14[%c0_68, %c0_69, %c0_70], %269 {strides = array<i32>} : memref<1x64x8xf32, #tpu.memory_space<vmem>>, vector<1x64x8xf32>,
    return
  }
  func.func @transform_0(%arg0: i32) -> (i32, i32, i32) {
    %c0_i32 = arith.constant 0 : i32
    %c0_i32_0 = arith.constant 0 : i32
    %c0_i32_1 = arith.constant 0 : i32
    return %arg0, %c0_i32, %c0_i32_0 : i32, i32, i32
  }
  func.func @transform_1(%arg0: i32) -> (i32, i32) {
    %c0_i32 = arith.constant 0 : i32
    %c0_i32_0 = arith.constant 0 : i32
    %c0_i32_1 = arith.constant 0 : i32
    return %c0_i32, %c0_i32_0 : i32, i32
  }
  func.func @transform_2(%arg0: i32) -> (i32, i32) {
    %c0_i32 = arith.constant 0 : i32
    %c0_i32_0 = arith.constant 0 : i32
    %c0_i32_1 = arith.constant 0 : i32
    return %c0_i32, %c0_i32_0 : i32, i32
  }
  func.func @transform_3(%arg0: i32) -> (i32, i32) {
    %c0_i32 = arith.constant 0 : i32
    %c0_i32_0 = arith.constant 0 : i32
    %c0_i32_1 = arith.constant 0 : i32
    return %c0_i32, %c0_i32_0 : i32, i32
  }
  func.func @transform_4(%arg0: i32) -> (i32, i32) {
    %c0_i32 = arith.constant 0 : i32
    %c0_i32_0 = arith.constant 0 : i32
    %c0_i32_1 = arith.constant 0 : i32
    return %c0_i32, %c0_i32_0 : i32, i32
  }
  func.func @transform_5(%arg0: i32) -> (i32, i32) {
    %c0_i32 = arith.constant 0 : i32
    %c0_i32_0 = arith.constant 0 : i32
    %c0_i32_1 = arith.constant 0 : i32
    return %c0_i32, %c0_i32_0 : i32, i32
  }
  func.func @transform_6(%arg0: i32) -> (i32, i32) {
    %c0_i32 = arith.constant 0 : i32
    %c0_i32_0 = arith.constant 0 : i32
    %c0_i32_1 = arith.constant 0 : i32
    return %c0_i32, %c0_i32_0 : i32, i32
  }
  func.func @transform_7(%arg0: i32) -> (i32, i32) {
    %c0_i32 = arith.constant 0 : i32
    %c0_i32_0 = arith.constant 0 : i32
    %c0_i32_1 = arith.constant 0 : i32
    return %c0_i32, %c0_i32_0 : i32, i32
  }
  func.func @transform_8(%arg0: i32) -> (i32, i32) {
    %c0_i32 = arith.constant 0 : i32
    %c0_i32_0 = arith.constant 0 : i32
    %c0_i32_1 = arith.constant 0 : i32
    return %c0_i32, %c0_i32_0 : i32, i32
  }
  func.func @transform_9(%arg0: i32) -> (i32, i32) {
    %c0_i32 = arith.constant 0 : i32
    %c0_i32_0 = arith.constant 0 : i32
    %c0_i32_1 = arith.constant 0 : i32
    return %c0_i32, %c0_i32_0 : i32, i32
  }
  func.func @transform_10(%arg0: i32) -> (i32, i32) {
    %c0_i32 = arith.constant 0 : i32
    %c0_i32_0 = arith.constant 0 : i32
    %c0_i32_1 = arith.constant 0 : i32
    return %c0_i32, %c0_i32_0 : i32, i32
  }
  func.func @transform_11(%arg0: i32) -> (i32, i32) {
    %c0_i32 = arith.constant 0 : i32
    %c0_i32_0 = arith.constant 0 : i32
    %c0_i32_1 = arith.constant 0 : i32
    return %c0_i32, %c0_i32_0 : i32, i32
  }
  func.func @transform_12(%arg0: i32) -> (i32, i32) {
    %c0_i32 = arith.constant 0 : i32
    %c0_i32_0 = arith.constant 0 : i32
    %c0_i32_1 = arith.constant 0 : i32
    return %c0_i32, %c0_i32_0 : i32, i32
  }
  func.func @transform_13(%arg0: i32) -> (i32, i32, i32) {
    %c0_i32 = arith.constant 0 : i32
    %c0_i32_0 = arith.constant 0 : i32
    %c0_i32_1 = arith.constant 0 : i32
    return %arg0, %c0_i32, %c0_i32_0 : i32, i32, i32
  }
}

module attributes {stable_mosaic.version = 11 : i64} {
  func.func @_downsample_kernel(%arg0: i32, %arg1: memref<1x64x16xf32, #tpu.memory_space<vmem>>, %arg2: memref<64x1xi32, #tpu.memory_space<vmem>>, %arg3: memref<64x1xi32, #tpu.memory_space<vmem>>, %arg4: memref<4x16x8xbf16, #tpu.memory_space<vmem>>, %arg5: memref<1x8xf32, #tpu.memory_space<vmem>>, %arg6: memref<1x64x8xf32, #tpu.memory_space<vmem>>) attributes {dimension_semantics = [#tpu.dimension_semantics<parallel>], iteration_bounds = array<i64: 2>, scalar_prefetch = 0 : i64, scratch_operands = 0 : i64, tpu.core_type = #tpu.core_type<tc>, window_params = [{transform_indices = @transform_0, window_bounds = array<i64: 1, 64, 16>}, {pipeline_mode = #tpu.pipeline_mode<synchronous>, transform_indices = @transform_1, window_bounds = array<i64: 64, 1>}, {pipeline_mode = #tpu.pipeline_mode<synchronous>, transform_indices = @transform_2, window_bounds = array<i64: 64, 1>}, {pipeline_mode = #tpu.pipeline_mode<synchronous>, transform_indices = @transform_3, window_bounds = array<i64: 4, 16, 8>}, {pipeline_mode = #tpu.pipeline_mode<synchronous>, transform_indices = @transform_4, window_bounds = array<i64: 1, 8>}, {transform_indices = @transform_5, window_bounds = array<i64: 1, 64, 8>}]} {
    %c0 = arith.constant 0 : index
    %c0_0 = arith.constant 0 : index
    %c0_1 = arith.constant 0 : index
    %0 = vector.load %arg1[%c0, %c0_0, %c0_1] : memref<1x64x16xf32, #tpu.memory_space<vmem>>, vector<1x64x16xf32>
    %1 = vector.shape_cast %0 : vector<1x64x16xf32> to vector<64x16xf32>
    %c0_2 = arith.constant 0 : index
    %c0_3 = arith.constant 0 : index
    %2 = vector.load %arg2[%c0_2, %c0_3] : memref<64x1xi32, #tpu.memory_space<vmem>>, vector<64x1xi32>
    %c0_4 = arith.constant 0 : index
    %c0_5 = arith.constant 0 : index
    %3 = vector.load %arg3[%c0_4, %c0_5] : memref<64x1xi32, #tpu.memory_space<vmem>>, vector<64x1xi32>
    %c0_6 = arith.constant 0 : index
    %c0_7 = arith.constant 0 : index
    %c0_8 = arith.constant 0 : index
    %4 = vector.load %arg4[%c0_6, %c0_7, %c0_8] : memref<4x16x8xbf16, #tpu.memory_space<vmem>>, vector<4x16x8xbf16>
    %cst = arith.constant 0.000000e+00 : f32
    %5 = vector.broadcast %cst : f32 to vector<64x8xf32>
    %c9_i32 = arith.constant 9 : i32
    %6 = tpu.dynamic_rotate %1 by %c9_i32 dim 0 : vector<64x16xf32>, i32 -> vector<64x16xf32>
    %c1_i32 = arith.constant 1 : i32
    %7 = vector.broadcast %c1_i32 : i32 to vector<64x1xi32>
    %8 = arith.cmpi sge, %2, %7 : vector<64x1xi32>
    %c1_i32_9 = arith.constant 1 : i32
    %9 = vector.broadcast %c1_i32_9 : i32 to vector<64x1xi32>
    %10 = arith.cmpi sge, %3, %9 : vector<64x1xi32>
    %11 = arith.andi %8, %10 : vector<64x1xi1>
    %12 = arith.extui %11 : vector<64x1xi1> to vector<64x1xi32>
    %13 = arith.sitofp %12 : vector<64x1xi32> to vector<64x1xf32>
    %14 = vector.broadcast %13 : vector<64x1xf32> to vector<64x16xf32>
    %15 = arith.mulf %6, %14 : vector<64x16xf32>
    %16 = arith.truncf %15 : vector<64x16xf32> to vector<64x16xbf16>
    %17 = vector.extract_strided_slice %4 {offsets = [0, 0, 0], sizes = [1, 16, 8], strides = [1, 1, 1]} : vector<4x16x8xbf16> to vector<1x16x8xbf16>
    %18 = vector.shape_cast %17 : vector<1x16x8xbf16> to vector<16x8xbf16>
    %cst_10 = arith.constant dense<0.000000e+00> : vector<64x8xf32>
    %19 = tpu.matmul %16, %18, %cst_10 {dimension_numbers = #tpu.dot_dimension_numbers<[1], [0], [0], [1], [0, 0, 1, 1], [], []>} : vector<64x16xbf16>, vector<16x8xbf16>, vector<64x8xf32> -> vector<64x8xf32>
    %20 = arith.addf %5, %19 : vector<64x8xf32>
    %c8_i32 = arith.constant 8 : i32
    %21 = tpu.dynamic_rotate %1 by %c8_i32 dim 0 : vector<64x16xf32>, i32 -> vector<64x16xf32>
    %c1_i32_11 = arith.constant 1 : i32
    %22 = vector.broadcast %c1_i32_11 : i32 to vector<64x1xi32>
    %23 = arith.cmpi sge, %2, %22 : vector<64x1xi32>
    %24 = arith.extui %23 : vector<64x1xi1> to vector<64x1xi32>
    %25 = arith.sitofp %24 : vector<64x1xi32> to vector<64x1xf32>
    %26 = vector.broadcast %25 : vector<64x1xf32> to vector<64x16xf32>
    %27 = arith.mulf %21, %26 : vector<64x16xf32>
    %28 = arith.truncf %27 : vector<64x16xf32> to vector<64x16xbf16>
    %29 = vector.extract_strided_slice %4 {offsets = [1, 0, 0], sizes = [1, 16, 8], strides = [1, 1, 1]} : vector<4x16x8xbf16> to vector<1x16x8xbf16>
    %30 = vector.shape_cast %29 : vector<1x16x8xbf16> to vector<16x8xbf16>
    %cst_12 = arith.constant dense<0.000000e+00> : vector<64x8xf32>
    %31 = tpu.matmul %28, %30, %cst_12 {dimension_numbers = #tpu.dot_dimension_numbers<[1], [0], [0], [1], [0, 0, 1, 1], [], []>} : vector<64x16xbf16>, vector<16x8xbf16>, vector<64x8xf32> -> vector<64x8xf32>
    %32 = arith.addf %20, %31 : vector<64x8xf32>
    %c1_i32_13 = arith.constant 1 : i32
    %33 = tpu.dynamic_rotate %1 by %c1_i32_13 dim 0 : vector<64x16xf32>, i32 -> vector<64x16xf32>
    %c1_i32_14 = arith.constant 1 : i32
    %34 = vector.broadcast %c1_i32_14 : i32 to vector<64x1xi32>
    %35 = arith.cmpi sge, %3, %34 : vector<64x1xi32>
    %36 = arith.extui %35 : vector<64x1xi1> to vector<64x1xi32>
    %37 = arith.sitofp %36 : vector<64x1xi32> to vector<64x1xf32>
    %38 = vector.broadcast %37 : vector<64x1xf32> to vector<64x16xf32>
    %39 = arith.mulf %33, %38 : vector<64x16xf32>
    %40 = arith.truncf %39 : vector<64x16xf32> to vector<64x16xbf16>
    %41 = vector.extract_strided_slice %4 {offsets = [2, 0, 0], sizes = [1, 16, 8], strides = [1, 1, 1]} : vector<4x16x8xbf16> to vector<1x16x8xbf16>
    %42 = vector.shape_cast %41 : vector<1x16x8xbf16> to vector<16x8xbf16>
    %cst_15 = arith.constant dense<0.000000e+00> : vector<64x8xf32>
    %43 = tpu.matmul %40, %42, %cst_15 {dimension_numbers = #tpu.dot_dimension_numbers<[1], [0], [0], [1], [0, 0, 1, 1], [], []>} : vector<64x16xbf16>, vector<16x8xbf16>, vector<64x8xf32> -> vector<64x8xf32>
    %44 = arith.addf %32, %43 : vector<64x8xf32>
    %45 = arith.truncf %1 : vector<64x16xf32> to vector<64x16xbf16>
    %46 = vector.extract_strided_slice %4 {offsets = [3, 0, 0], sizes = [1, 16, 8], strides = [1, 1, 1]} : vector<4x16x8xbf16> to vector<1x16x8xbf16>
    %47 = vector.shape_cast %46 : vector<1x16x8xbf16> to vector<16x8xbf16>
    %cst_16 = arith.constant dense<0.000000e+00> : vector<64x8xf32>
    %48 = tpu.matmul %45, %47, %cst_16 {dimension_numbers = #tpu.dot_dimension_numbers<[1], [0], [0], [1], [0, 0, 1, 1], [], []>} : vector<64x16xbf16>, vector<16x8xbf16>, vector<64x8xf32> -> vector<64x8xf32>
    %49 = arith.addf %44, %48 : vector<64x8xf32>
    %c0_17 = arith.constant 0 : index
    %c0_18 = arith.constant 0 : index
    %50 = vector.load %arg5[%c0_17, %c0_18] : memref<1x8xf32, #tpu.memory_space<vmem>>, vector<1x8xf32>
    %51 = vector.broadcast %50 : vector<1x8xf32> to vector<64x8xf32>
    %52 = arith.addf %49, %51 : vector<64x8xf32>
    %c0_19 = arith.constant 0 : index
    %c0_20 = arith.constant 0 : index
    %c0_21 = arith.constant 0 : index
    %53 = vector.load %arg6[%c0_19, %c0_20, %c0_21] : memref<1x64x8xf32, #tpu.memory_space<vmem>>, vector<1x64x8xf32>
    %54 = vector.shape_cast %53 : vector<1x64x8xf32> to vector<64x8xf32>
    %55 = vector.shape_cast %52 : vector<64x8xf32> to vector<1x64x8xf32>
    tpu.vector_store %arg6[%c0_19, %c0_20, %c0_21], %55 {strides = array<i32>} : memref<1x64x8xf32, #tpu.memory_space<vmem>>, vector<1x64x8xf32>,
    return
  }
  func.func @transform_0(%arg0: i32) -> (i32, i32, i32) {
    %c0_i32 = arith.constant 0 : i32
    %c0_i32_0 = arith.constant 0 : i32
    %c0_i32_1 = arith.constant 0 : i32
    return %arg0, %c0_i32, %c0_i32_0 : i32, i32, i32
  }
  func.func @transform_1(%arg0: i32) -> (i32, i32) {
    %c0_i32 = arith.constant 0 : i32
    %c0_i32_0 = arith.constant 0 : i32
    %c0_i32_1 = arith.constant 0 : i32
    return %c0_i32, %c0_i32_0 : i32, i32
  }
  func.func @transform_2(%arg0: i32) -> (i32, i32) {
    %c0_i32 = arith.constant 0 : i32
    %c0_i32_0 = arith.constant 0 : i32
    %c0_i32_1 = arith.constant 0 : i32
    return %c0_i32, %c0_i32_0 : i32, i32
  }
  func.func @transform_3(%arg0: i32) -> (i32, i32, i32) {
    %c0_i32 = arith.constant 0 : i32
    %c0_i32_0 = arith.constant 0 : i32
    %c0_i32_1 = arith.constant 0 : i32
    %c0_i32_2 = arith.constant 0 : i32
    return %c0_i32, %c0_i32_0, %c0_i32_1 : i32, i32, i32
  }
  func.func @transform_4(%arg0: i32) -> (i32, i32) {
    %c0_i32 = arith.constant 0 : i32
    %c0_i32_0 = arith.constant 0 : i32
    %c0_i32_1 = arith.constant 0 : i32
    return %c0_i32, %c0_i32_0 : i32, i32
  }
  func.func @transform_5(%arg0: i32) -> (i32, i32, i32) {
    %c0_i32 = arith.constant 0 : i32
    %c0_i32_0 = arith.constant 0 : i32
    %c0_i32_1 = arith.constant 0 : i32
    return %arg0, %c0_i32, %c0_i32_0 : i32, i32, i32
  }
}

</mosaic_0001>

<bundles_post_ra>
// kernel: damamba_stage.3
= control target key start
LH: loop header
LB: loop body
LE: loop exit
PB: predicated region body
PF: predicated region fallthrough
CT: control target
= control target key end

     0   :  { %s1195_s18 = smov 0   ;;  %s1460_s0 = inlined_call_operand.vmem [shape: f32[2,64,16], index: 0, kind: input, shape index: {}]   ;;  %s1461_s1 = inlined_call_operand.vmem [shape: s32[64,1], index: 1, kind: input, shape index: {}]   ;;  %s1462_s2 = inlined_call_operand.vmem [shape: s32[64,1], index: 2, kind: input, shape index: {}]   ;;  %s1463_s3 = inlined_call_operand.vmem [shape: bf16[4,16,8], index: 3, kind: input, shape index: {}]   ;;  %s1464_s4 = inlined_call_operand.vmem [shape: f32[1,8], index: 4, kind: input, shape index: {}]   ;;  %s1465_s5 = inlined_call_operand.vmem [shape: f32[2,64,8], index: 5, kind: output, shape index: {}]  }
   0x1 LB: > { %s937_s19 = sadd.s32 4294967295, %s1161_s18   ;;  %p941_p0 = scmp.ge.s32.totalorder %s1161_s18, 1  ;;  %s1161_s18 = sphi %s1195_s18, %s15_s18  }
   0x2   : > { %p187_p1 = scmp.lt.s32.totalorder %s1161_s18, 3 }
   0x4   : > { %p188_p2 = pnand %p941_p0, %p187_p1 }
   0x5   : > { %v236_v0 = vld [vmem:[%s1461_s1 + $0x10] sm:$0xff] (!%p188_p2)  ;;  %v237_v1 = vld [vmem:[%s1461_s1 + $0x18] sm:$0xff] (!%p188_p2)  ;;  %v1163_v3 = vmov (!%p188_p2), 0   ;;  %v234_v5 = vld [vmem:[%s1461_s1] sm:$0xff] (!%p188_p2)  ;;  %v1164_v7 = vmov (!%p188_p2), 0.0   ;;  %p215_p3 = scmp.lt.s32.totalorder (!%p188_p2), %s937_s19, 1  ;;  %v266_v59 = vlaneseq (!%p188_p2) }
   0x6   : > { %191 = sbr.rel (%p188_p2) target bundleno = 396 (0x18c), region = 40  ;;  %v244_v2 = vld [vmem:[%s1462_s2 + $0x10] sm:$0xff] (!%p188_p2)  ;;  %1100 = vset.pattern.permute.xlu1 (!%p188_p2), %v1163_v3  ;;  %1089 = vset.pattern.permute.xlu0 (!%p188_p2), %v1163_v3  ;;  %v245_v4 = vld [vmem:[%s1462_s2 + $0x18] sm:$0xff] (!%p188_p2)  ;;  %vm279_vm0 = vcmp.ge.s32.totalorder (!%p188_p2), %v236_v0, 1  ;;  %vm280_vm1 = vcmp.ge.s32.totalorder (!%p188_p2), %v237_v1, 1  ;;  %v235_v6 = vld [vmem:[%s1461_s1 + $0x8] sm:$0xff] (!%p188_p2) }
   0x7   : > { %vm287_vm2 = vcmp.ge.s32.totalorder (!%p188_p2), %v244_v2, 1  ;;  %vm288_vm3 = vcmp.ge.s32.totalorder (!%p188_p2), %v245_v4, 1  ;;  %v956_v8 = vsel (!%p188_p2), %vm279_vm0, 1.0, %v1164_v7  ;;  %v957_v9 = vsel (!%p188_p2), %vm280_vm1, 1.0, %v1164_v7  ;;  %v242_v10 = vld [vmem:[%s1462_s2] sm:$0xff] (!%p188_p2)  ;;  %v243_v11 = vld [vmem:[%s1462_s2 + $0x8] sm:$0xff] (!%p188_p2) }
   0x8   : > { %vm277_vm4 = vcmp.ge.s32.totalorder (!%p188_p2), %v234_v5, 1  ;;  %v1101_v12 = vpack.i.bf16 (!%p188_p2), %v957_v9, %v956_v8  ;;  %vm278_vm5 = vcmp.ge.s32.totalorder (!%p188_p2), %v235_v6, 1  ;;  %vm285_vm6 = vcmp.ge.s32.totalorder (!%p188_p2), %v242_v10, 1  ;;  %v246_v13 = vld [vmem:[%s1462_s2 + $0x20] sm:$0xff] (!%p188_p2)  ;;  %v247_v14 = vld [vmem:[%s1462_s2 + $0x28] sm:$0xff] (!%p188_p2)  ;;  %v248_v25 = vld [vmem:[%s1462_s2 + $0x30] sm:$0xff] (!%p188_p2) }
   0x9   : > { %vm286_vm7 = vcmp.ge.s32.totalorder (!%p188_p2), %v243_v11, 1  ;;  %v954_v15 = vsel (!%p188_p2), %vm277_vm4, 1.0, %v1164_v7  ;;  %v955_v16 = vsel (!%p188_p2), %vm278_vm5, 1.0, %v1164_v7  ;;  %v974_v17 = vsel (!%p188_p2), %vm287_vm2, 1.0, %v1164_v7  ;;  %v238_v19 = vld [vmem:[%s1461_s1 + $0x20] sm:$0xff] (!%p188_p2)  ;;  %v239_v20 = vld [vmem:[%s1461_s1 + $0x28] sm:$0xff] (!%p188_p2)  ;;  %vm1280_vm15 = vmand (!%p188_p2), %vm279_vm0, %vm287_vm2 }
   0xa   : > { %v975_v18 = vsel (!%p188_p2), %vm288_vm3, 1.0, %v1164_v7  ;;  %1102 = vperm.xlu1 (!%p188_p2), %1100, %v1101_v12   ;;  %v1090_v21 = vpack.i.bf16 (!%p188_p2), %v955_v16, %v954_v15  ;;  %v972_v23 = vsel (!%p188_p2), %vm285_vm6, 1.0, %v1164_v7  ;;  %v973_v24 = vsel (!%p188_p2), %vm286_vm7, 1.0, %v1164_v7  ;;  %v249_v26 = vld [vmem:[%s1462_s2 + $0x38] sm:$0xff] (!%p188_p2)  ;;  %v240_v28 = vld [vmem:[%s1461_s1 + $0x30] sm:$0xff] (!%p188_p2)  ;;  %v1151_v34 = vld [vmem:[%s1463_s3 + $0x8] sm:$0xff] (!%p188_p2)  }
   0xb   : > { %v1106_v22 = vpack.i.bf16 (!%p188_p2), %v975_v18, %v974_v17  ;;  %v1095_v27 = vpack.i.bf16 (!%p188_p2), %v973_v24, %v972_v23  ;;  %vm289_vm8 = vcmp.ge.s32.totalorder (!%p188_p2), %v246_v13, 1  ;;  %vm1467_vm9 = vcmp.ge.s32.totalorder (!%p188_p2), %v247_v14, 1  ;;  %v241_v32 = vld [vmem:[%s1461_s1 + $0x38] sm:$0xff] (!%p188_p2)  ;;  %1015 = vmatprep.subr.bf16.mxu1 (!%p188_p2), %v1151_v34  ;;  %vm294_vm0 = vmand (!%p188_p2), %vm278_vm5, %vm286_vm7  ;;  %v1152_v43 = vld [vmem:[%s1463_s3 + $0x10] sm:$0xff] (!%p188_p2)  }
   0xc   : > { %vm281_vm10 = vcmp.ge.s32.totalorder (!%p188_p2), %v238_v19, 1  ;;  %1091 = vperm.xlu0 (!%p188_p2), %1089, %v1090_v21   ;;  %v976_v29 = vsel (!%p188_p2), %vm289_vm8, 1.0, %v1164_v7  ;;  %v977_v30 = vsel (!%p188_p2), %vm1467_vm9, 1.0, %v1164_v7  ;;  %vm1466_vm11 = vcmp.ge.s32.totalorder (!%p188_p2), %v239_v20, 1  ;;  %vm296_vm9 = vmand (!%p188_p2), %vm280_vm1, %vm288_vm3  ;;  %1016 = vmatpush3.bf16.msra.mxu1 (!%p188_p2), %v1151_v34  ;;  %v1320_v53 = vld [vmem:[%s1463_s3] sm:$0xff] (!%p188_p2)   ;;  %v1325_v54 = vld [vmem:[%s1463_s3 + $0x18] sm:$0xff] (!%p188_p2)  }
   0xd   : > { %v958_v31 = vsel %vm281_vm10, 1.0, %v1164_v7  ;;  %v959_v33 = vsel %vm1466_vm11, 1.0, %v1164_v7  ;;  %vm291_vm12 = vcmp.ge.s32.totalorder %v248_v25, 1  ;;  %vm292_vm13 = vcmp.ge.s32.totalorder %v249_v26, 1  ;;  %vm293_vm2 = vmand %vm277_vm4, %vm285_vm6  ;;  %1035 = vmatprep.subr.bf16.mxu0 %v1152_v43  ;;  %1025 = vmatprep.subr.bf16.mxu1 %v1320_v53  ;;  %s1473_s19 = smov (!%p215_p3, %s937_s19), 1 }
   0xe   : > { %1107 = vperm.xlu1 %1100, %v1106_v22   ;;  %v1116_v35 = vpack.i.bf16 %v977_v30, %v976_v29  ;;  %vm283_vm14 = vcmp.ge.s32.totalorder %v240_v28, 1  ;;  %v978_v37 = vsel %vm291_vm12, 1.0, %v1164_v7  ;;  %v979_v38 = vsel %vm292_vm13, 1.0, %v1164_v7  ;;  %vm297_vm4 = vmand %vm281_vm10, %vm289_vm8  ;;  %1036 = vmatpush3.bf16.msra.mxu0 %v1152_v43  ;;  %s993_s12 = sshll.u32 %s1473_s19, 6 }
   0xf   : > { %vm284_vm11 = vcmp.ge.s32.totalorder %v241_v32, 1  ;;  %v1111_v39 = vpack.i.bf16 %v959_v33, %v958_v31  ;;  %v960_v40 = vsel %vm283_vm14, 1.0, %v1164_v7  ;;  %v1126_v42 = vpack.i.bf16 %v979_v38, %v978_v37  ;;  %vm299_vm1 = vmand %vm283_vm14, %vm291_vm12  ;;  %1045 = vmatprep.subr.bf16.mxu0 %v1325_v54  ;;  %s1343_s15 = scalar_lea.vmem %s1460_s0, %s993_s12  ;;  %s1439_s22 = scalar_lea.vmem %s1465_s5, %s993_s12 }
  0x10   : > { %1096 = vperm.xlu0 %1089, %v1095_v27   ;;  %v961_v41 = vsel %vm284_vm11, 1.0, %v1164_v7  ;;  %v948_v44 = vsel %vm1280_vm15, 1.0, %v1164_v7  ;;  %v949_v45 = vsel %vm296_vm9, 1.0, %v1164_v7  ;;  %vm300_vm3 = vmand %vm284_vm11, %vm292_vm13  ;;  %v946_v47 = vsel %vm293_vm2, 1.0, %v1164_v7  ;;  %v1346_v60 = vld [vmem:[%s1343_s15 + $0x8] sm:$0xff]  ;;  %v1349_v61 = vld [vmem:[%s1343_s15 + $0x10] sm:$0xff] }
  0x11   : > { %v1121_v46 = vpack.i.bf16 %v961_v41, %v960_v40  ;;  %v947_v48 = vsel %vm294_vm0, 1.0, %v1164_v7  ;;  %v1136_v49 = vpack.i.bf16 %v949_v45, %v948_v44  ;;  %vm1470_vm5 = vcmp.ge.s32.totalorder %v247_v14, 1  ;;  %v1352_v62 = vld [vmem:[%s1343_s15 + $0x18] sm:$0xff]  ;;  %v1355_v0 = vld [vmem:[%s1343_s15] sm:$0xff]  ;;  %v1367_v9 = vld [vmem:[%s1343_s15 + $0x28] sm:$0xff] }
  0x12   : > { %1117 = vperm.xlu1 %1100, %v1116_v35   ;;  %vm1471_vm6 = vcmp.ge.s32.totalorder %v239_v20, 1  ;;  %v952_v50 = vsel %vm299_vm1, 1.0, %v1164_v7  ;;  %v953_v51 = vsel %vm300_vm3, 1.0, %v1164_v7  ;;  %v1131_v52 = vpack.i.bf16 %v947_v48, %v946_v47  ;;  %v1358_v1 = vld [vmem:[%s1343_s15 + $0x38] sm:$0xff]  ;;  %v1364_v8 = vld [vmem:[%s1343_s15 + $0x20] sm:$0xff]  ;;  %v1383_v25 = vld [vmem:[%s1343_s15 + $0x30] sm:$0xff] }
  0x13   : > { %vm298_vm7 = vmand %vm1471_vm6, %vm1470_vm5  ;;  %v950_v55 = vsel %vm297_vm4, 1.0, %v1164_v7  ;;  %v1146_v57 = vpack.i.bf16 %v953_v51, %v952_v50  ;;  %v267_v63 = vshrl.u32 %v266_v59, 7  ;;  %v259_v3 = vrot.slane %v1346_v60, 7 }
  0x14   : > { %1112 = vperm.xlu0 %1089, %v1111_v39   ;;  %v951_v56 = vsel %vm298_vm7, 1.0, %v1164_v7  ;;  %v260_v4 = vrot.slane %v1349_v61, 7  ;;  %v261_v5 = vrot.slane %v1352_v62, 7  ;;  %v258_v11 = vrot.slane %v1355_v0, 7 }
  0x15   : > { %v1141_v58 = vpack.i.bf16 %v951_v56, %v950_v55  ;;  %vm268_vm8 = vcmp.lt.s32.totalorder %v267_v63, 1  ;;  %v265_v12 = vrot.slane %v1358_v1, 7  ;;  %v262_v20 = vrot.slane %v1364_v8, 7 }
  0x16   : > { %1127 = vperm.xlu1 %1100, %v1126_v42   ;;  %v1374_v18 = vsel %vm268_vm8, %v260_v4, %v261_v5  ;;  %v1377_v19 = vsel %vm268_vm8, %v259_v3, %v260_v4  ;;  %v263_v21 = vrot.slane %v1367_v9, 7  ;;  %vm443_vm9 = vcmask 130048  }
  0x17   : > { %v275_v29 = vsel %vm268_vm8, %v258_v11, %v259_v3  ;;  %v276_v30 = vsel %vm268_vm8, %v265_v12, %v258_v11  ;;  %v272_v38 = vsel %vm268_vm8, %v261_v5, %v262_v20  ;;  %v264_v39 = vrot.slane %v1383_v25, 7 }
  0x18   : > { %1122 = vperm.xlu0 %1089, %v1121_v46   ;;  %v1391_v37 = vsel %vm268_vm8, %v262_v20, %v263_v21  ;;  %vm873_vm10 = vcmask 64512  }
  0x19   : > { %v270_v55 = vsel %vm268_vm8, %v263_v21, %v264_v39 }
  0x1a   : > { %1137 = vperm.xlu1 %1100, %v1136_v49  }
  0x1c   : > { %1132 = vperm.xlu0 %1089, %v1131_v52   ;;  %v269_v52 = vsel %vm268_vm8, %v264_v39, %v265_v12 }
  0x1e   : > { %1147 = vperm.xlu1 %1100, %v1146_v57  }
  0x20   : > { %1142 = vperm.xlu0 %1089, %v1141_v58  }
  0x89   : > { %v1103_v2 = vpop.permute.xlu1 %1102 }
  0x8a   : > { %v1105_v6 = vunpack.i.h.bf16 %v1103_v2  ;;  %v1104_v7 = vunpack.i.l.bf16 %v1103_v2 }
  0x8b   : > { %v1092_v10 = vpop.permute.xlu0 %1091 }
  0x8c   : > { %v427_v13 = vmul.f32 %v1104_v7, %v1346_v60  ;;  %v428_v14 = vmul.f32 %v1105_v6, %v1349_v61  ;;  %v1094_v15 = vunpack.i.h.bf16 %v1092_v10  ;;  %v1093_v16 = vunpack.i.l.bf16 %v1092_v10 }
  0x8d   : > { %v1108_v17 = vpop.permute.xlu1 %1107 }
  0x8e   : > { %v1110_v22 = vunpack.i.h.bf16 %v1108_v17  ;;  %v1109_v23 = vunpack.i.l.bf16 %v1108_v17  ;;  %v425_v24 = vmul.f32 %v1093_v16, %v1358_v1  ;;  %v434_v26 = vpack.c.bf16 %v428_v14, %v427_v13 }
  0x8f   : > { %v1097_v27 = vpop.permute.xlu0 %1096  ;;  %v426_v28 = vmul.f32 %v1094_v15, %v1355_v0 }
  0x90   : > { %v662_v31 = vmul.f32 %v1109_v23, %v1377_v19  ;;  %v663_v32 = vmul.f32 %v1110_v22, %v1374_v18  ;;  %v1099_v33 = vunpack.i.h.bf16 %v1097_v27  ;;  %v1098_v34 = vunpack.i.l.bf16 %v1097_v27 }
  0x91   : > { %v433_v35 = vpack.c.bf16 %v426_v28, %v425_v24  ;;  %v1118_v36 = vpop.permute.xlu1 %1117 }
  0x92   : > { %v1120_v40 = vunpack.i.h.bf16 %v1118_v36  ;;  %v1119_v41 = vunpack.i.l.bf16 %v1118_v36  ;;  %v660_v42 = vmul.f32 %v1098_v34, %v276_v30  ;;  %v669_v43 = vpack.c.bf16 %v663_v32, %v662_v31 }
  0x93   : > { %1017 = vmatprep.mubr.msk.bf16.mxu1 %vm443_vm9, %v433_v35  ;;  %v1113_v44 = vpop.permute.xlu0 %1112  ;;  %v661_v45 = vmul.f32 %v1099_v33, %v275_v29  ;;  %v765_v35 = vpack.c.bf16 %v1367_v9, %v1364_v8 }
  0x94   : > { %v664_v46 = vmul.f32 %v1119_v41, %v272_v38  ;;  %v665_v47 = vmul.f32 %v1120_v40, %v1391_v37  ;;  %v1115_v48 = vunpack.i.h.bf16 %v1113_v44  ;;  %v1114_v49 = vunpack.i.l.bf16 %v1113_v44  ;;  %1018 = vmatmul.mubr.msk.bf16.vlgmr.msra.gmra.mrb[0].mxu1 %vm443_vm9, %v434_v26 }
  0x95   : > { %v668_v50 = vpack.c.bf16 %v661_v45, %v660_v42  ;;  %v1128_v51 = vpop.permute.xlu1 %1127  ;;  %1026 = vmatpush3.bf16.msra.mxu1 %v1320_v53 }
  0x96   : > { %v670_v56 = vpack.c.bf16 %v665_v47, %v664_v46  ;;  %v429_v57 = vmul.f32 %v1114_v49, %v1352_v62  ;;  %v430_v58 = vmul.f32 %v1115_v48, %v1364_v8  ;;  %v1130_v59 = vunpack.i.h.bf16 %v1128_v51 }
  0x97   : > { %1037 = vmatprep.mubr.msk.bf16.mxu0 %vm443_vm9, %v668_v50  ;;  %v1129_v2 = vunpack.i.l.bf16 %v1128_v51  ;;  %v1123_v3 = vpop.permute.xlu0 %1122 }
  0x98   : > { %v435_v4 = vpack.c.bf16 %v430_v58, %v429_v57  ;;  %v667_v5 = vmul.f32 %v1130_v59, %v269_v52  ;;  %v1125_v6 = vunpack.i.h.bf16 %v1123_v3  ;;  %v1124_v7 = vunpack.i.l.bf16 %v1123_v3  ;;  %1038 = vmatmul.mubr.msk.bf16.vlgmr.msra.gmra.mrb[0].mxu0 %vm443_vm9, %v669_v43 }
  0x99   : > { %1046 = vmatpush3.bf16.msra.mxu0 %v1325_v54  ;;  %1041 = vmatprep.mubr.msk.bf16.mxu0 %vm443_vm9, %v670_v56  ;;  %v1138_v53 = vpop.permute.xlu1 %1137  ;;  %v666_v63 = vmul.f32 %v1129_v2, %v270_v55  ;;  %v763_v54 = vpack.c.bf16 %v1346_v60, %v1355_v0  ;;  %v764_v60 = vpack.c.bf16 %v1352_v62, %v1349_v61 }
  0x9a   : > { %v431_v10 = vmul.f32 %v1124_v7, %v1367_v9  ;;  %v432_v11 = vmul.f32 %v1125_v6, %v1383_v25  ;;  %1021 = vmatprep.mubr.msk.bf16.mxu1 %vm443_vm9, %v435_v4  ;;  %v1140_v12 = vunpack.i.h.bf16 %v1138_v53  ;;  %v1139_v15 = vunpack.i.l.bf16 %v1138_v53 }
  0x9b   : > { %v1133_v13 = vpop.permute.xlu0 %1132  ;;  %v671_v17 = vpack.c.bf16 %v667_v5, %v666_v63  ;;  %v766_v62 = vpack.c.bf16 %v1358_v1, %v1383_v25 }
  0x9c   : > { %v436_v14 = vpack.c.bf16 %v432_v11, %v431_v10  ;;  %v1135_v16 = vunpack.i.h.bf16 %v1133_v13  ;;  %v1134_v20 = vunpack.i.l.bf16 %v1133_v13  ;;  %v359_v24 = vmul.f32 %v1139_v15, %v275_v29 }
  0x9d   : > { %v360_v26 = vmul.f32 %v1140_v12, %v1377_v19  ;;  %v1148_v32 = vpop.permute.xlu1 %1147 }
  0x9e   : > { %v358_v21 = vmul.f32 %v1135_v16, %v276_v30  ;;  %1022 = vmatmul.mubr.msk.bf16.gmra.mrb[4].mxu1 %vm443_vm9, %v436_v14  ;;  %v357_v22 = vmul.f32 %v1134_v20, %v269_v52  ;;  %v1150_v29 = vunpack.i.h.bf16 %v1148_v32  ;;  %v1149_v30 = vunpack.i.l.bf16 %v1148_v32 }
  0x9f   : > { %v1143_v23 = vpop.permute.xlu0 %1142  ;;  %v366_v0 = vpack.c.bf16 %v360_v26, %v359_v24 }
  0xa0   : > { %v1145_v27 = vunpack.i.h.bf16 %v1143_v23  ;;  %v1144_v28 = vunpack.i.l.bf16 %v1143_v23  ;;  %1042 = vmatmul.mubr.msk.bf16.gmra.mrb[4].mxu0 %vm443_vm9, %v671_v17  ;;  %v365_v31 = vpack.c.bf16 %v358_v21, %v357_v22  ;;  %v363_v36 = vmul.f32 %v1149_v30, %v1391_v37  ;;  %v990_v37 = vld [vmem:[%s1464_s4] ss:$0 sm:$0xff] }
  0xa1   : > { %1047 = vmatprep.mubr.msk.bf16.mxu0 %vm443_vm9, %v763_v54 }
  0xa2   : > { %v361_v33 = vmul.f32 %v1144_v28, %v1374_v18  ;;  %v362_v34 = vmul.f32 %v1145_v27, %v272_v38  ;;  %1027 = vmatprep.mubr.msk.bf16.mxu1 %vm443_vm9, %v365_v31  ;;  %v364_v18 = vmul.f32 %v1150_v29, %v270_v55 }
  0xa4   : > { %v367_v19 = vpack.c.bf16 %v362_v34, %v361_v33  ;;  %v368_v61 = vpack.c.bf16 %v364_v18, %v363_v36 }
  0xa6   : > { %1028 = vmatmul.mubr.msk.bf16.vlgmr.msra.gmra.mrb[0].mxu1 %vm443_vm9, %v366_v0 }
  0xa7   : > { %1031 = vmatprep.mubr.msk.bf16.mxu1 %vm443_vm9, %v367_v19 }
  0xa8   : > { %1048 = vmatmul.mubr.msk.bf16.vlgmr.msra.gmra.mrb[0].mxu0 %vm443_vm9, %v764_v60 }
  0xa9   : > { %1051 = vmatprep.mubr.msk.bf16.mxu0 %vm443_vm9, %v765_v35 }
  0xae   : > { %1032 = vmatmul.mubr.msk.bf16.gmra.mrb[4].mxu1 %vm443_vm9, %v368_v61 }
  0xb0   : > { %1052 = vmatmul.mubr.msk.bf16.gmra.mrb[4].mxu0 %vm443_vm9, %v766_v62 }
 0x179   : > { %v1029_v8 = vpop.f32.mrb[0].mxu1 }
 0x17a   : > { %v573_v9 = vpop.f32.mrb[1].mxu1 }
 0x17b   : > { %v1049_v38 = vpop.f32.mrb[0].mxu0  ;;  %v1030_v39 = vpop.f32.mrb[2].mxu1 }
 0x17c   : > { %v1055_v40 = vadd.f32 %v1049_v38, %v1029_v8  ;;  %v819_v41 = vpop.f32.mrb[1].mxu0  ;;  %v576_v42 = vpop.f32.mrb[3].mxu1 }
 0x17d   : > { %v1056_v1 = vadd.f32 %v819_v41, %v573_v9  ;;  %v1050_v25 = vpop.f32.mrb[2].mxu0 }
 0x17e   : > { %v867_v43 = vadd.f32 %v1055_v40, %v990_v37  ;;  %v1057_v44 = vadd.f32 %v1050_v25, %v1030_v39  ;;  %v822_v45 = vpop.f32.mrb[3].mxu0 }
 0x17f   : > { %v865_v46 = vadd.f32 %v1056_v1, %v990_v37  ;;  %v1058_v47 = vadd.f32 %v822_v45, %v576_v42 }
 0x180   : > { %876 = vst.msk [vmem:[%s1439_s22 + $0x10] sm:$0xff] %vm873_vm10, %v867_v43  ;;  %v868_v48 = vadd.f32 %v1057_v44, %v990_v37 }
 0x181   : > { %874 = vst.msk [vmem:[%s1439_s22] sm:$0xff] %vm873_vm10, %v865_v46  ;;  %v866_v49 = vadd.f32 %v1058_v47, %v990_v37  ;;  %v1033_v50 = vpop.f32.mrb[4].mxu1 }
 0x182   : > { %877 = vst.msk [vmem:[%s1439_s22 + $0x18] sm:$0xff] %vm873_vm10, %v868_v48  ;;  %v589_v51 = vpop.f32.mrb[5].mxu1 }
 0x183   : > { %875 = vst.msk [vmem:[%s1439_s22 + $0x8] sm:$0xff] %vm873_vm10, %v866_v49  ;;  %v1053_v52 = vpop.f32.mrb[4].mxu0  ;;  %v1034_v55 = vpop.f32.mrb[6].mxu1 }
 0x184   : > { %v1059_v56 = vadd.f32 %v1053_v52, %v1033_v50  ;;  %v835_v57 = vpop.f32.mrb[5].mxu0  ;;  %v592_v58 = vpop.f32.mrb[7].mxu1 }
 0x185   : > { %v1060_v59 = vadd.f32 %v835_v57, %v589_v51  ;;  %v1054_v2 = vpop.f32.mrb[6].mxu0 }
 0x186   : > { %v871_v3 = vadd.f32 %v1059_v56, %v990_v37  ;;  %v1061_v4 = vadd.f32 %v1054_v2, %v1034_v55  ;;  %v838_v5 = vpop.f32.mrb[7].mxu0 }
 0x187   : > { %v869_v6 = vadd.f32 %v1060_v59, %v990_v37  ;;  %v1062_v7 = vadd.f32 %v838_v5, %v592_v58 }
 0x188   : > { %880 = vst.msk [vmem:[%s1439_s22 + $0x30] sm:$0xff] %vm873_vm10, %v871_v3  ;;  %v872_v53 = vadd.f32 %v1061_v4, %v990_v37 }
 0x189   : > { %878 = vst.msk [vmem:[%s1439_s22 + $0x20] sm:$0xff] %vm873_vm10, %v869_v6  ;;  %v870_v63 = vadd.f32 %v1062_v7, %v990_v37 }
 0x18a   : > { %881 = vst.msk [vmem:[%s1439_s22 + $0x38] sm:$0xff] %vm873_vm10, %v872_v53 }
 0x18b   : > { %879 = vst.msk [vmem:[%s1439_s22 + $0x28] sm:$0xff] %vm873_vm10, %v870_v63 }
 0x18c PF: > { %s15_s18 = sadd.s32 1, %s1161_s18  }
 0x18d   : > { %p12_p4 = scmp.ge.s32.totalorder %s15_s18, 4  }
 0x18f   :  { %14 = sbr.rel (!%p12_p4) target bundleno = 1 (0x1), region = 70 }

// kernel: damamba_stage.4
= control target key start
LH: loop header
LB: loop body
LE: loop exit
PB: predicated region body
PF: predicated region fallthrough
CT: control target
= control target key end

     0   :  { %s2452_s25 = smov 0   ;;  %s4055_s0 = inlined_call_operand.vmem [shape: f32[2,64,8], index: 0, kind: input, shape index: {}]   ;;  %s4056_s1 = inlined_call_operand.vmem [shape: s32[64,1], index: 1, kind: input, shape index: {}]   ;;  %s4057_s2 = inlined_call_operand.vmem [shape: s32[64,1], index: 2, kind: input, shape index: {}]   ;;  %s4058_s3 = inlined_call_operand.vmem [shape: f32[9,8], index: 3, kind: input, shape index: {}]   ;;  %s4059_s4 = inlined_call_operand.vmem [shape: f32[1,8], index: 4, kind: input, shape index: {}]   ;;  %s4060_s5 = inlined_call_operand.vmem [shape: f32[1,8], index: 5, kind: input, shape index: {}]   ;;  %s4061_s6 = inlined_call_operand.vmem [shape: f32[1,8], index: 6, kind: input, shape index: {}]   ;;  %s4062_s7 = inlined_call_operand.vmem [shape: bf16[8,32], index: 7, kind: input, shape index: {}]   ;;  %s4063_s8 = inlined_call_operand.vmem [shape: f32[1,32], index: 8, kind: input, shape index: {}]   ;;  %s4064_s9 = inlined_call_operand.vmem [shape: f32[9,32], index: 9, kind: input, shape index: {}]   ;;  %s4065_s10 = inlined_call_operand.vmem [shape: f32[1,32], index: 10, kind: input, shape index: {}]   ;;  %s4066_s11 = inlined_call_operand.vmem [shape: bf16[32,8], index: 11, kind: input, shape index: {}]   ;;  %s4067_s12 = inlined_call_operand.vmem [shape: f32[1,8], index: 12, kind: input, shape index: {}]   ;;  %s4068_s13 = inlined_call_operand.vmem [shape: f32[2,64,8], index: 13, kind: output, shape index: {}]  }
   0x1 LB: > { %s2037_s26 = sadd.s32 4294967295, %s2378_s25   ;;  %p2041_p0 = scmp.ge.s32.totalorder %s2378_s25, 1  ;;  %s2378_s25 = sphi %s2452_s25, %s23_s25  }
   0x2   : > { %p387_p1 = scmp.lt.s32.totalorder %s2378_s25, 3 }
   0x4   : > { %p388_p2 = pnand %p2041_p0, %p387_p1 }
   0x6   : > { %391 = sbr.rel (%p388_p2) target bundleno = 1077 (0x435), region = 72 }
   0xd   : > { %v2463_v0 = vld [vmem:[%s4056_s1] sm:$0xff]  ;;  %v2468_v1 = vld [vmem:[%s4056_s1 + $0x8] sm:$0xff]  ;;  %v2380_v3 = vmov 0   ;;  %v2485_v5 = vld [vmem:[%s4056_s1 + $0x10] sm:$0xff]  ;;  %v2381_v6 = vmov 0.0   ;;  %p431_p3 = scmp.lt.s32.totalorder %s2037_s26, 1 }
   0xe   : > { %v2473_v2 = vld [vmem:[%s4057_s2] sm:$0xff]  ;;  %2176 = vset.pattern.permute.xlu1 %v2380_v3  ;;  %2187 = vset.pattern.permute.xlu0 %v2380_v3  ;;  %vm514_vm0 = vcmp.ge.s32.totalorder %v2463_v0, 1  ;;  %vm515_vm1 = vcmp.ge.s32.totalorder %v2468_v1, 1  ;;  %v2480_v4 = vld [vmem:[%s4057_s2 + $0x8] sm:$0xff]  ;;  %v2498_v9 = vld [vmem:[%s4056_s1 + $0x18] sm:$0xff]  ;;  %vm516_vm6 = vcmp.ge.s32.totalorder %v2485_v5, 1 }
   0xf   : > { %v2055_v7 = vsel %vm514_vm0, 1.0, %v2381_v6  ;;  %v2056_v8 = vsel %vm515_vm1, 1.0, %v2381_v6  ;;  %vm522_vm2 = vcmp.ge.s32.totalorder %v2473_v2, 1  ;;  %vm523_vm3 = vcmp.ge.s32.totalorder %v2480_v4, 1  ;;  %v2503_v10 = vld [vmem:[%s4057_s2 + $0x10] sm:$0xff]  ;;  %v2514_v12 = vld [vmem:[%s4057_s2 + $0x18] sm:$0xff] }
  0x10   : > { %v2177_v11 = vpack.i.bf16 %v2056_v8, %v2055_v7  ;;  %vm530_vm4 = vmand %vm514_vm0, %vm522_vm2  ;;  %vm723_vm5 = vcmp.lt.s32.totalorder %v2473_v2, 7  ;;  %vm517_vm8 = vcmp.ge.s32.totalorder %v2498_v9, 1  ;;  %v2057_v14 = vsel %vm516_vm6, 1.0, %v2381_v6  ;;  %v2551_v21 = vld [vmem:[%s4056_s1 + $0x20] sm:$0xff]  ;;  %v2556_v22 = vld [vmem:[%s4056_s1 + $0x28] sm:$0xff]  ;;  %s4378_s26 = smov (!%p431_p3, %s2037_s26), 1 }
  0x11   : > { %vm531_vm7 = vmand %vm515_vm1, %vm523_vm3  ;;  %v2047_v13 = vsel %vm530_vm4, 1.0, %v2381_v6  ;;  %vm4070_vm9 = vcmp.ge.s32.totalorder %v2503_v10, 1  ;;  %v2058_v16 = vsel %vm517_vm8, 1.0, %v2381_v6  ;;  %vm4069_vm10 = vcmp.ge.s32.totalorder %v2514_v12, 1  ;;  %v2566_v25 = vld [vmem:[%s4057_s2 + $0x20] sm:$0xff]  ;;  %v2571_v26 = vld [vmem:[%s4057_s2 + $0x28] sm:$0xff] }
  0x12   : > { %2178 = vperm.xlu1 %2176, %v2177_v11   ;;  %v2048_v15 = vsel %vm531_vm7, 1.0, %v2381_v6  ;;  %vm532_vm11 = vmand %vm516_vm6, %vm4070_vm9  ;;  %vm4078_vm12 = vcmp.lt.s32.totalorder %v2503_v10, 7  ;;  %v2182_v18 = vpack.i.bf16 %v2058_v16, %v2057_v14  ;;  %vm4077_vm14 = vcmp.lt.s32.totalorder %v2514_v12, 7  ;;  %v2597_v33 = vld [vmem:[%s4056_s1 + $0x30] sm:$0xff]  ;;  %v2607_v36 = vld [vmem:[%s4056_s1 + $0x38] sm:$0xff]  ;;  %s2130_s29 = sshll.u32 %s4378_s26, 6 }
  0x13   : > { %v2188_v17 = vpack.i.bf16 %v2048_v15, %v2047_v13  ;;  %vm533_vm13 = vmand %vm517_vm8, %vm4069_vm10  ;;  %v2049_v19 = vsel %vm532_vm11, 1.0, %v2381_v6  ;;  %vm4073_vm15 = vcmp.lt.s32.totalorder %v2480_v4, 7  ;;  %v2073_v28 = vsel %vm4070_vm9, 1.0, %v2381_v6  ;;  %v2602_v34 = vld [vmem:[%s4057_s2 + $0x30] sm:$0xff]  ;;  %v2612_v37 = vld [vmem:[%s4057_s2 + $0x38] sm:$0xff]  ;;  %s2854_s15 = scalar_lea.vmem %s4055_s0, %s2130_s29  ;;  %s440_s16 = scalar_lea.vmem %s4068_s13, %s2130_s29 }
  0x14   : > { %v2050_v20 = vsel %vm533_vm13, 1.0, %v2381_v6  ;;  %vm733_vm4 = vmand %vm516_vm6, %vm4078_vm12  ;;  %v2074_v31 = vsel %vm4069_vm10, 1.0, %v2381_v6  ;;  %vm4072_vm11 = vcmp.ge.s32.totalorder %v2551_v21, 1  ;;  %vm4071_vm13 = vcmp.ge.s32.totalorder %v2566_v25, 1 }
  0x15   : > { %2189 = vperm.xlu0 %2187, %v2188_v17   ;;  %v2193_v23 = vpack.i.bf16 %v2050_v20, %v2049_v19  ;;  %vm734_vm7 = vmand %vm517_vm8, %vm4077_vm14  ;;  %v2065_v24 = vsel %vm733_vm4, 1.0, %v2381_v6  ;;  %vm4074_vm4 = vcmp.ge.s32.totalorder %v2571_v26, 1  ;;  %v2213_v38 = vpack.i.bf16 %v2074_v31, %v2073_v28 }
  0x16   : > { %2183 = vperm.xlu1 %2176, %v2182_v18   ;;  %v2066_v27 = vsel %vm734_vm7, 1.0, %v2381_v6  ;;  %vm731_vm6 = vmand %vm514_vm0, %vm723_vm5  ;;  %vm519_vm0 = vcmp.ge.s32.totalorder %v2556_v22, 1  ;;  %v2071_v39 = vsel %vm522_vm2, 1.0, %v2381_v6  ;;  %v2072_v40 = vsel %vm523_vm3, 1.0, %v2381_v6 }
  0x17   : > { %v2203_v29 = vpack.i.bf16 %v2066_v27, %v2065_v24  ;;  %vm732_vm8 = vmand %vm515_vm1, %vm4073_vm15  ;;  %v2063_v30 = vsel %vm731_vm6, 1.0, %v2381_v6  ;;  %vm991_vm1 = vcmp.lt.s32.totalorder %v2463_v0, 7  ;;  %v2079_v41 = vsel %vm723_vm5, 1.0, %v2381_v6 }
  0x18   : > { %v2064_v32 = vsel %vm732_vm8, 1.0, %v2381_v6  ;;  %vm534_vm7 = vmand %vm4072_vm11, %vm4071_vm13  ;;  %v2080_v42 = vsel %vm4073_vm15, 1.0, %v2381_v6  ;;  %vm520_vm8 = vcmp.ge.s32.totalorder %v2597_v33, 1  ;;  %vm4075_vm10 = vcmp.ge.s32.totalorder %v2602_v34, 1 }
  0x19   : > { %2194 = vperm.xlu0 %2187, %v2193_v23   ;;  %v2198_v35 = vpack.i.bf16 %v2064_v32, %v2063_v30  ;;  %vm535_vm6 = vmand %vm519_vm0, %vm4074_vm4  ;;  %vm521_vm9 = vcmp.ge.s32.totalorder %v2607_v36, 1  ;;  %vm4076_vm13 = vcmp.ge.s32.totalorder %v2612_v37, 1  ;;  %vm992_vm11 = vcmp.lt.s32.totalorder %v2468_v1, 7 }
  0x1a   : > { %2204 = vperm.xlu1 %2176, %v2203_v29   ;;  %v2208_v43 = vpack.i.bf16 %v2072_v40, %v2071_v39  ;;  %vm2644_vm15 = vmand %vm991_vm1, %vm522_vm2  ;;  %v2223_v45 = vpack.i.bf16 %v2080_v42, %v2079_v41  ;;  %v2051_v46 = vsel %vm534_vm7, 1.0, %v2381_v6  ;;  %v2052_v47 = vsel %vm535_vm6, 1.0, %v2381_v6 }
  0x1b   : > { %vm536_vm4 = vmand %vm520_vm8, %vm4075_vm10  ;;  %v2081_v48 = vsel %vm4078_vm12, 1.0, %v2381_v6  ;;  %v2082_v49 = vsel %vm4077_vm14, 1.0, %v2381_v6  ;;  %vm993_vm6 = vcmp.lt.s32.totalorder %v2485_v5, 7  ;;  %v2218_v50 = vpack.i.bf16 %v2052_v47, %v2051_v46 }
  0x1c   : > { %vm537_vm2 = vmand %vm521_vm9, %vm4076_vm13  ;;  %vm994_vm10 = vcmp.lt.s32.totalorder %v2498_v9, 7  ;;  %v2233_v51 = vpack.i.bf16 %v2082_v49, %v2081_v48  ;;  %v2053_v52 = vsel %vm536_vm4, 1.0, %v2381_v6  ;;  %v2087_v54 = vsel %vm2644_vm15, 1.0, %v2381_v6 }
  0x1d   : > { %2199 = vperm.xlu0 %2187, %v2198_v35   ;;  %vm1000_vm7 = vmand %vm992_vm11, %vm523_vm3  ;;  %v2054_v53 = vsel %vm537_vm2, 1.0, %v2381_v6  ;;  %vm4210_vm3 = vcmp.ge.s32.totalorder %v2503_v10, 1  ;;  %vm4211_vm14 = vcmp.ge.s32.totalorder %v2514_v12, 1  ;;  %vm4212_vm4 = vcmp.ge.s32.totalorder %v2551_v21, 1 }
  0x1e   : > { %2214 = vperm.xlu1 %2176, %v2213_v38   ;;  %v2088_v55 = vsel %vm1000_vm7, 1.0, %v2381_v6  ;;  %vm1001_vm13 = vmand %vm993_vm6, %vm4210_vm3  ;;  %v2228_v56 = vpack.i.bf16 %v2054_v53, %v2053_v52  ;;  %v2059_v58 = vsel %vm4212_vm4, 1.0, %v2381_v6  ;;  %v2060_v59 = vsel %vm519_vm0, 1.0, %v2381_v6 }
  0x1f   : > { %vm1002_vm12 = vmand %vm994_vm10, %vm4211_vm14  ;;  %v2243_v57 = vpack.i.bf16 %v2088_v55, %v2087_v54  ;;  %v2089_v60 = vsel %vm1001_vm13, 1.0, %v2381_v6  ;;  %vm727_vm15 = vcmp.lt.s32.totalorder %v2566_v25, 7  ;;  %vm728_vm14 = vcmp.lt.s32.totalorder %v2571_v26, 7  ;;  %v2860_v55 = vld [vmem:[%s4058_s3] sm:$0xff] }
  0x20   : > { %v2090_v61 = vsel %vm1002_vm12, 1.0, %v2381_v6  ;;  %v2238_v62 = vpack.i.bf16 %v2060_v59, %v2059_v58  ;;  %v2061_v3 = vsel %vm520_vm8, 1.0, %v2381_v6  ;;  %v2062_v7 = vsel %vm521_vm9, 1.0, %v2381_v6  ;;  %vm4213_vm12 = vmmov %vm4212_vm4  ;;  %v2869_v58 = vld [vmem:[%s2854_s15] sm:$0xff]  ;;  %v2872_v59 = vld [vmem:[%s2854_s15 + $0x8] sm:$0xff] }
  0x21   : > { %2209 = vperm.xlu0 %2187, %v2208_v43   ;;  %v2253_v63 = vpack.i.bf16 %v2090_v61, %v2089_v60  ;;  %vm735_vm13 = vmand %vm4213_vm12, %vm727_vm15  ;;  %v2095_v8 = vsel %vm991_vm1, 1.0, %v2381_v6  ;;  %v2096_v11 = vsel %vm992_vm11, 1.0, %v2381_v6  ;;  %vm729_vm7 = vcmp.lt.s32.totalorder %v2602_v34, 7 }
  0x22   : > { %2224 = vperm.xlu1 %2176, %v2223_v45   ;;  %vm736_vm2 = vmand %vm519_vm0, %vm728_vm14  ;;  %vm730_vm3 = vcmp.lt.s32.totalorder %v2612_v37, 7  ;;  %v2248_v13 = vpack.i.bf16 %v2062_v7, %v2061_v3  ;;  %v2263_v15 = vpack.i.bf16 %v2096_v11, %v2095_v8  ;;  %v2067_v16 = vsel %vm735_vm13, 1.0, %v2381_v6  ;;  %v2884_v8 = vld [vmem:[%s2854_s15 + $0x18] sm:$0xff] }
  0x23   : > { %vm2720_vm4 = vmand %vm991_vm1, %vm723_vm5  ;;  %v2068_v17 = vsel %vm736_vm2, 1.0, %v2381_v6  ;;  %v2097_v2 = vsel %vm993_vm6, 1.0, %v2381_v6  ;;  %v2098_v0 = vsel %vm994_vm10, 1.0, %v2381_v6  ;;  %vm4216_vm1 = vcmp.lt.s32.totalorder %v2480_v4, 7 }
  0x24   : > { %vm737_vm0 = vmand %vm520_vm8, %vm729_vm7  ;;  %v2258_v18 = vpack.i.bf16 %v2068_v17, %v2067_v16  ;;  %v2273_v19 = vpack.i.bf16 %v2098_v0, %v2097_v2  ;;  %v2103_v24 = vsel %vm2720_vm4, 1.0, %v2381_v6  ;;  %vm4219_vm2 = vcmp.ge.s32.totalorder %v2566_v25, 1  ;;  %v2046_v2 = vld [vmem:[%s4059_s4] ss:$0 sm:$0xff] }
  0x25   : > { %2219 = vperm.xlu0 %2187, %v2218_v50   ;;  %vm738_vm5 = vmand %vm521_vm9, %vm730_vm3  ;;  %v2069_v20 = vsel %vm737_vm0, 1.0, %v2381_v6  ;;  %vm4217_vm9 = vcmp.lt.s32.totalorder %v2503_v10, 7  ;;  %v2075_v28 = vsel %vm4219_vm2, 1.0, %v2381_v6  ;;  %vm4220_vm4 = vcmp.ge.s32.totalorder %v2571_v26, 1 }
  0x26   : > { %2234 = vperm.xlu1 %2176, %v2233_v51   ;;  %vm1176_vm12 = vmand %vm992_vm11, %vm4216_vm1  ;;  %v2070_v23 = vsel %vm738_vm5, 1.0, %v2381_v6  ;;  %vm4218_vm11 = vcmp.lt.s32.totalorder %v2514_v12, 7  ;;  %v2076_v10 = vsel %vm4220_vm4, 1.0, %v2381_v6  ;;  %vm4221_vm0 = vcmp.ge.s32.totalorder %v2602_v34, 1 }
  0x27   : > { %v2104_v27 = vsel %vm1176_vm12, 1.0, %v2381_v6  ;;  %vm1177_vm8 = vmand %vm993_vm6, %vm4217_vm9  ;;  %v2268_v1 = vpack.i.bf16 %v2070_v23, %v2069_v20  ;;  %vm997_vm6 = vcmp.lt.s32.totalorder %v2597_v33, 7  ;;  %v2278_v9 = vpack.i.bf16 %v2076_v10, %v2075_v28 }
  0x28   : > { %vm1178_vm13 = vmand %vm994_vm10, %vm4218_vm11  ;;  %v2283_v4 = vpack.i.bf16 %v2104_v27, %v2103_v24  ;;  %v2105_v5 = vsel %vm1177_vm8, 1.0, %v2381_v6  ;;  %vm998_vm10 = vcmp.lt.s32.totalorder %v2607_v36, 7  ;;  %v2077_v30 = vsel %vm4221_vm0, 1.0, %v2381_v6 }
  0x29   : > { %2229 = vperm.xlu0 %2187, %v2228_v56   ;;  %v2106_v29 = vsel %vm1178_vm13, 1.0, %v2381_v6  ;;  %vm4222_vm5 = vcmp.ge.s32.totalorder %v2612_v37, 1  ;;  %v2085_v32 = vsel %vm729_vm7, 1.0, %v2381_v6  ;;  %v2086_v35 = vsel %vm730_vm3, 1.0, %v2381_v6  ;;  %vm4223_vm1 = vmmov %vm4221_vm0  ;;  %v2863_v56 = vld [vmem:[%s2854_s15 + $0x38] sm:$0xff] }
  0x2a   : > { %2244 = vperm.xlu1 %2176, %v2243_v57   ;;  %v2293_v12 = vpack.i.bf16 %v2106_v29, %v2105_v5  ;;  %v2078_v31 = vsel %vm4222_vm5, 1.0, %v2381_v6  ;;  %vm1005_vm12 = vmand %vm997_vm6, %vm4223_vm1  ;;  %vm995_vm9 = vcmp.lt.s32.totalorder %v2551_v21, 7  ;;  %vm996_vm13 = vcmp.lt.s32.totalorder %v2556_v22, 7  ;;  %v2866_v57 = vld [vmem:[%s2854_s15 + $0x30] sm:$0xff] }
  0x2b   : > { %vm4224_vm8 = vmmov %vm4222_vm5  ;;  %v2288_v38 = vpack.i.bf16 %v2078_v31, %v2077_v30  ;;  %v2303_v39 = vpack.i.bf16 %v2086_v35, %v2085_v32  ;;  %v2083_v40 = vsel %vm727_vm15, 1.0, %v2381_v6  ;;  %v2084_v41 = vsel %vm728_vm14, 1.0, %v2381_v6  ;;  %v2937_v30 = vld [vmem:[%s2854_s15 + $0x28] sm:$0xff] }
  0x2c   : > { %vm1006_vm11 = vmand %vm998_vm10, %vm4224_vm8  ;;  %v2093_v42 = vsel %vm1005_vm12, 1.0, %v2381_v6  ;;  %vm4225_vm0 = vcmp.ge.s32.totalorder %v2571_v26, 1  ;;  %v2298_v44 = vpack.i.bf16 %v2084_v41, %v2083_v40  ;;  %v2101_v48 = vsel %vm997_vm6, 1.0, %v2381_v6 }
  0x2d   : > { %2239 = vperm.xlu0 %2187, %v2238_v62   ;;  %vm1003_vm4 = vmand %vm995_vm9, %vm4219_vm2  ;;  %v2094_v43 = vsel %vm1006_vm11, 1.0, %v2381_v6  ;;  %v2102_v49 = vsel %vm998_vm10, 1.0, %v2381_v6  ;;  %v2099_v52 = vsel %vm995_vm9, 1.0, %v2381_v6  ;;  %v2100_v34 = vsel %vm996_vm13, 1.0, %v2381_v6 }
  0x2e   : > { %2254 = vperm.xlu1 %2176, %v2253_v63   ;;  %vm1004_vm5 = vmand %vm996_vm13, %vm4225_vm0  ;;  %v2313_v45 = vpack.i.bf16 %v2094_v43, %v2093_v42  ;;  %v2091_v46 = vsel %vm1003_vm4, 1.0, %v2381_v6  ;;  %v2323_v51 = vpack.i.bf16 %v2102_v49, %v2101_v48  ;;  %v2318_v37 = vpack.i.bf16 %v2100_v34, %v2099_v52 }
  0x2f   : > { %v2092_v47 = vsel %vm1004_vm5, 1.0, %v2381_v6  ;;  %vm1181_vm1 = vmand %vm997_vm6, %vm729_vm7  ;;  %v469_v22 = vlaneseq  ;;  %v501_v61 = vrot.slane %v2866_v57, 7  ;;  %v502_v62 = vrot.slane %v2863_v56, 7 }
  0x30   : > { %vm1182_vm12 = vmand %vm998_vm10, %vm730_vm3  ;;  %v2308_v50 = vpack.i.bf16 %v2092_v47, %v2091_v46  ;;  %v2109_v33 = vsel %vm1181_vm1, 1.0, %v2381_v6  ;;  %v495_v7 = vrot.slane %v2869_v58, 7  ;;  %v496_v11 = vrot.slane %v2872_v59, 7 }
  0x31   : > { %2249 = vperm.xlu0 %2187, %v2248_v13   ;;  %vm1179_vm7 = vmand %vm995_vm9, %vm727_vm15  ;;  %v2110_v36 = vsel %vm1182_vm12, 1.0, %v2381_v6  ;;  %v2847_v26 = vshrl.u32 %v469_v22, 7  ;;  %v2888_v13 = vld [vmem:[%s2854_s15 + $0x10] sm:$0xff]  ;;  %v709_v28 = vrot.slane %v2884_v8, 1  ;;  %v706_v29 = vrot.slane %v2869_v58, 1 }
  0x32   : > { %2264 = vperm.xlu1 %2176, %v2263_v15   ;;  %vm1180_vm3 = vmand %vm996_vm13, %vm728_vm14  ;;  %v2333_v53 = vpack.i.bf16 %v2110_v36, %v2109_v33  ;;  %v2107_v54 = vsel %vm1179_vm7, 1.0, %v2381_v6  ;;  %v497_v23 = vrot.slane %v2888_v13, 7  ;;  %v500_v36 = vrot.slane %v2937_v30, 7 }
  0x33   : > { %v2108_v25 = vsel %vm1180_vm3, 1.0, %v2381_v6  ;;  %v4085_v6 = vsub.s32 4, %v2847_v26  ;;  %v4096_v63 = vsub.s32 1, %v2847_v26  ;;  %vm505_vm15 = vcmp.lt.s32.totalorder %v2847_v26, 1 }
  0x34   : > { %v2328_v21 = vpack.i.bf16 %v2108_v25, %v2107_v54  ;;  %v4092_v3 = vsub.s32 0, %v2847_v26  ;;  %v2896_v16 = vsel %vm505_vm15, %v501_v61, %v502_v62  ;;  %v2915_v20 = vsel %vm505_vm15, %v502_v62, %v495_v7 }
  0x35   : > { %2259 = vperm.xlu0 %2187, %v2258_v18   ;;  %v472_v60 = vrot.slane %v2860_v55, %v4085_v6  ;;  %v2901_v17 = vrot.slane %v2860_v55, %v4096_v63  ;;  %v2920_v24 = vsel %vm505_vm15, %v495_v7, %v496_v11  ;;  %v4090_v27 = vsub.s32 2, %v2847_v26 }
  0x36   : > { %2274 = vperm.xlu1 %2176, %v2273_v19   ;;  %v2909_v0 = vrot.slane %v2860_v55, %v4092_v3  ;;  %vm714_vm14 = vcmp.lt.s32.totalorder %v2847_v26, 7  ;;  %v4088_v35 = vsub.s32 3, %v2847_v26  ;;  %v4086_v41 = vsub.s32 5, %v2847_v26 }
  0x37   : > { %v473_v14 = vmul.f32 %v472_v60, %v2869_v58  ;;  %v474_v15 = vmul.f32 %v472_v60, %v2872_v59  ;;  %v475_v18 = vmul.f32 %v472_v60, %v2888_v13  ;;  %v476_v19 = vmul.f32 %v472_v60, %v2884_v8 }
  0x38   : > { %v2952_v40 = vrot.slane %v2860_v55, %v4090_v27  ;;  %v2983_v52 = vrot.slane %v2860_v55, %v4088_v35  ;;  %v480_v33 = vmul.f32 %v472_v60, %v2863_v56  ;;  %v2996_v54 = vrot.slane %v2860_v55, %v4086_v41 }
  0x39   : > { %2269 = vperm.xlu0 %2187, %v2268_v1   ;;  %v707_v1 = vrot.slane %v2872_v59, 1  ;;  %v2927_v10 = vadd.f32 %v2046_v2, %v473_v14  ;;  %v2929_v5 = vadd.f32 %v2046_v2, %v474_v15  ;;  %v2939_v31 = vadd.f32 %v2046_v2, %v475_v18 }
  0x3a   : > { %2284 = vperm.xlu1 %2176, %v2283_v4   ;;  %v708_v4 = vrot.slane %v2888_v13, 1  ;;  %v2941_v32 = vadd.f32 %v2046_v2, %v476_v19  ;;  %v4083_v62 = vsub.s32 6, %v2847_v26  ;;  %v4084_v7 = vsub.s32 7, %v2847_v26 }
  0x3b   : > { %v2970_v48 = vsel %vm714_vm14, %v706_v29, %v707_v1  ;;  %vm1267_vm6 = vcmask 64512   ;;  %vm1435_vm10 = vcmask 1043456   ;;  %vm1888_vm9 = vcmask 261120  }
  0x3c   : > { %v2958_v43 = vsel %vm714_vm14, %v708_v4, %v709_v28 }
  0x3d   : > { %2279 = vperm.xlu0 %2187, %v2278_v9   ;;  %v4097_v9 = vrot.slane %v2863_v56, 1 }
  0x3e   : > { %2294 = vperm.xlu1 %2176, %v2293_v12   ;;  %v2934_v12 = vld [vmem:[%s2854_s15 + $0x20] sm:$0xff] }
  0x3f   : > { %v477_v42 = vmul.f32 %v472_v60, %v2934_v12  ;;  %v499_v46 = vrot.slane %v2934_v12, 7  ;;  %v2976_v49 = vsel %vm714_vm14, %v4097_v9, %v706_v29  ;;  %v3030_v29 = vsel %vm505_vm15, %v500_v36, %v501_v61 }
  0x41   : > { %2289 = vperm.xlu0 %2187, %v2288_v38   ;;  %v498_v38 = vrot.slane %v2884_v8, 7  ;;  %v2998_v25 = vadd.f32 %v2046_v2, %v477_v42  ;;  %v3048_v61 = vsel %vm505_vm15, %v499_v46, %v500_v36 }
  0x42   : > { %2304 = vperm.xlu1 %2176, %v2303_v39   ;;  %v2947_v39 = vsel %vm505_vm15, %v496_v11, %v497_v23 }
  0x43   : > { %v2987_v34 = vsel %vm505_vm15, %v497_v23, %v498_v38 }
  0x45   : > { %2299 = vperm.xlu0 %2187, %v2298_v44   ;;  %v2962_v44 = vsel %vm714_vm14, %v707_v1, %v708_v4  ;;  %v3024_v4 = vadd.f32 %v2046_v2, %v480_v33  ;;  %v3058_v33 = vrot.slane %v2860_v55, %v4084_v7 }
  0x46   : > { %2314 = vperm.xlu1 %2176, %v2313_v45   ;;  %v478_v45 = vmul.f32 %v472_v60, %v2937_v30 }
  0x48   : > { %v3002_v22 = vadd.f32 %v2046_v2, %v478_v45 }
  0x49   : > { %2309 = vperm.xlu0 %2187, %v2308_v50   ;;  %v4098_v50 = vrot.slane %v2934_v12, 1 }
  0x4a   : > { %2324 = vperm.xlu1 %2176, %v2323_v51   ;;  %v479_v51 = vmul.f32 %v472_v60, %v2866_v57  ;;  %v3006_v60 = vsel %vm505_vm15, %v498_v38, %v499_v46 }
  0x4b   : > { %v3018_v18 = vsel %vm714_vm14, %v709_v28, %v4098_v50 }
  0x4c   : > { %v3020_v19 = vadd.f32 %v2046_v2, %v479_v51  ;;  %v3053_v51 = vrot.slane %v2860_v55, %v4083_v62 }
  0x4d   : > { %2319 = vperm.xlu0 %2187, %v2318_v37  }
  0x4e   : > { %2334 = vperm.xlu1 %2176, %v2333_v53  }
  0x51   : > { %2329 = vperm.xlu0 %2187, %v2328_v21  }
  0x91   : > { %v2966_v47 = vpop.permute.xlu1 %2178 }
  0x92   : > { %v4082_v37 = vunpack.i.h.bf16 %v2966_v47  ;;  %v4081_v53 = vunpack.i.l.bf16 %v2966_v47 }
  0x94   : > { %v3000_v21 = vpop.permute.xlu0 %2189  ;;  %v678_v38 = vmul.f32 %v4081_v53, %v2863_v56  ;;  %v679_v28 = vmul.f32 %v4082_v37, %v2869_v58 }
  0x95   : > { %4226 = vst [vmem:[#allocation2_spill] sm:$0xff] %v3000_v21  ;;  %v4080_v11 = vunpack.i.h.bf16 %v3000_v21  ;;  %v4079_v14 = vunpack.i.l.bf16 %v3000_v21  ;;  %v3012_v15 = vpop.permute.xlu1 %2183 }
  0x96   : > { %v4089_v23 = vunpack.i.h.bf16 %v3012_v15  ;;  %v4087_v1 = vunpack.i.l.bf16 %v3012_v15  ;;  %v691_v6 = vmul.f32 %v2901_v17, %v679_v28 }
  0x97   : > { %v594_v42 = vmul.f32 %v4079_v14, %v2896_v16  ;;  %v595_v2 = vmul.f32 %v4080_v11, %v2915_v20 }
  0x98   : > { %v3044_v45 = vpop.permute.xlu0 %2194  ;;  %v680_v62 = vmul.f32 %v4087_v1, %v2872_v59  ;;  %v681_v55 = vmul.f32 %v4089_v23, %v2888_v13 }
  0x99   : > { %4227 = vst [vmem:[#allocation3_spill] sm:$0xff] %v3044_v45  ;;  %v606_v11 = vmul.f32 %v2909_v0, %v594_v42  ;;  %v607_v53 = vmul.f32 %v2909_v0, %v595_v2  ;;  %v4093_v37 = vunpack.i.h.bf16 %v3044_v45  ;;  %v4091_v46 = vunpack.i.l.bf16 %v3044_v45  ;;  %v3065_v36 = vpop.permute.xlu1 %2204 }
  0x9a   : > { %4228 = vst [vmem:[#allocation4_spill] sm:$0xff] %v3065_v36  ;;  %v4095_v7 = vunpack.i.h.bf16 %v3065_v36  ;;  %v4094_v42 = vunpack.i.l.bf16 %v3065_v36  ;;  %v690_v2 = vmul.f32 %v2901_v17, %v678_v38 }
  0x9b   : > { %v596_v41 = vmul.f32 %v4091_v46, %v2920_v24  ;;  %v597_v1 = vmul.f32 %v4093_v37, %v2947_v39  ;;  %v614_v35 = vadd.f32 %v606_v11, %v2927_v10  ;;  %v615_v23 = vadd.f32 %v607_v53, %v2929_v5 }
  0x9c   : > { %v797_v27 = vmul.f32 %v4094_v42, %v2962_v44  ;;  %v798_v38 = vmul.f32 %v4095_v7, %v2958_v43  ;;  %v3091_v28 = vpop.permute.xlu0 %2199  ;;  %v692_v5 = vmul.f32 %v2901_v17, %v680_v62  ;;  %v693_v53 = vmul.f32 %v2901_v17, %v681_v55 }
  0x9d   : > { %4229 = vst [vmem:[#allocation5_spill] sm:$0xff] %v3091_v28  ;;  %v608_v46 = vmul.f32 %v2909_v0, %v596_v41  ;;  %v609_v3 = vmul.f32 %v2909_v0, %v597_v1  ;;  %v4100_v37 = vunpack.i.h.bf16 %v3091_v28  ;;  %v4099_v10 = vunpack.i.l.bf16 %v3091_v28  ;;  %v3097_v11 = vpop.permute.xlu1 %2214 }
  0x9e   : > { %4230 = vst [vmem:[#allocation6_spill] sm:$0xff] %v3097_v11  ;;  %v809_v42 = vmul.f32 %v2952_v40, %v797_v27  ;;  %v810_v7 = vmul.f32 %v2952_v40, %v798_v38  ;;  %v698_v50 = vadd.f32 %v690_v2, %v614_v35  ;;  %v699_v62 = vadd.f32 %v691_v6, %v615_v23 }
  0x9f   : > { %v616_v63 = vadd.f32 %v608_v46, %v2939_v31  ;;  %v617_v41 = vadd.f32 %v609_v3, %v2941_v32  ;;  %v795_v1 = vmul.f32 %v4099_v10, %v2976_v49  ;;  %v796_v9 = vmul.f32 %v4100_v37, %v2970_v48 }
  0xa0   : > { %v4101_v55 = vunpack.i.h.bf16 %v3097_v11  ;;  %v4103_v27 = vunpack.i.l.bf16 %v3097_v11  ;;  %v3113_v14 = vpop.permute.xlu0 %2209 }
  0xa1   : > { %4231 = vst [vmem:[#allocation7_spill] sm:$0xff] %v3113_v14  ;;  %v700_v38 = vadd.f32 %v692_v5, %v616_v63  ;;  %v701_v31 = vadd.f32 %v693_v53, %v617_v41  ;;  %v807_v3 = vmul.f32 %v2952_v40, %v795_v1  ;;  %v808_v32 = vmul.f32 %v2952_v40, %v796_v9  ;;  %v3117_v46 = vpop.permute.xlu1 %2224 }
  0xa2   : > { %4232 = vst [vmem:[#allocation8_spill] sm:$0xff] %v3117_v46  ;;  %v881_v10 = vmul.f32 %v4103_v27, %v2947_v39  ;;  %v882_v6 = vmul.f32 %v4101_v55, %v2987_v34  ;;  %v4104_v35 = vunpack.i.h.bf16 %v3113_v14  ;;  %v4102_v23 = vunpack.i.l.bf16 %v3113_v14 }
  0xa3   : > { %v817_v63 = vadd.f32 %v809_v42, %v700_v38  ;;  %v818_v2 = vadd.f32 %v810_v7, %v701_v31  ;;  %v4233_v5 = vrot.slane %v2937_v30, 1  ;;  %v4234_v9 = vrot.slane %v2934_v12, 1 }
  0xa4   : > { %v712_v41 = vrot.slane %v2866_v57, 1  ;;  %v815_v1 = vadd.f32 %v807_v3, %v698_v50  ;;  %v816_v37 = vadd.f32 %v808_v32, %v699_v62  ;;  %v879_v55 = vmul.f32 %v4102_v23, %v2915_v20  ;;  %v3142_v42 = vpop.permute.xlu0 %2219 }
  0xa5   : > { %v3133_v53 = vsel %vm714_vm14, %v4234_v9, %v4233_v5  ;;  %v880_v7 = vmul.f32 %v4104_v35, %v2920_v24  ;;  %4235 = vst [vmem:[#allocation9_spill] sm:$0xff] %v3142_v42  ;;  %v4110_v38 = vunpack.i.h.bf16 %v3117_v46  ;;  %v4107_v31 = vunpack.i.l.bf16 %v3117_v46  ;;  %v3148_v50 = vpop.permute.xlu1 %2234 }
  0xa6   : > { %v4111_v9 = vunpack.i.l.bf16 %v3142_v42  ;;  %v893_v62 = vmul.f32 %v2983_v52, %v881_v10  ;;  %v894_v3 = vmul.f32 %v2983_v52, %v882_v6  ;;  %v891_v32 = vmul.f32 %v2983_v52, %v879_v55 }
  0xa7   : > { %v892_v23 = vmul.f32 %v2983_v52, %v880_v7  ;;  %v963_v27 = vmul.f32 %v4107_v31, %v2970_v48  ;;  %v964_v35 = vmul.f32 %v4110_v38, %v2962_v44  ;;  %v4236_v10 = vunpack.i.h.bf16 %v3142_v42 }
  0xa8   : > { %v598_v5 = vmul.f32 %v4111_v9, %v2987_v34  ;;  %v3168_v21 = vpop.permute.xlu0 %2229  ;;  %v4238_v31 = vrot.slane %v2863_v56, 1  ;;  %v4239_v38 = vrot.slane %v2937_v30, 1  ;;  %v899_v42 = vadd.f32 %v891_v32, %v815_v1 }
  0xa9   : > { %v599_v6 = vmul.f32 %v4236_v10, %v3006_v60  ;;  %4237 = vst [vmem:[#allocation10_spill] sm:$0xff] %v3168_v21  ;;  %v900_v10 = vadd.f32 %v892_v23, %v816_v37  ;;  %v975_v55 = vmul.f32 %v2996_v54, %v963_v27  ;;  %v976_v7 = vmul.f32 %v2996_v54, %v964_v35  ;;  %v3184_v36 = vpop.permute.xlu1 %2244 }
  0xaa   : > { %v3174_v46 = vsel %vm714_vm14, %v712_v41, %v4238_v31  ;;  %v3180_v9 = vsel %vm714_vm14, %v4239_v38, %v712_v41  ;;  %v4240_v28 = vunpack.i.l.bf16 %v3148_v50  ;;  %v4241_v31 = vunpack.i.h.bf16 %v3148_v50 }
  0xab   : > { %v4125_v45 = vunpack.i.h.bf16 %v3168_v21  ;;  %v4124_v41 = vunpack.i.l.bf16 %v3168_v21  ;;  %v901_v1 = vadd.f32 %v893_v62, %v817_v63  ;;  %v902_v37 = vadd.f32 %v894_v3, %v818_v2 }
  0xac   : > { %v965_v11 = vmul.f32 %v4240_v28, %v2958_v43  ;;  %v966_v14 = vmul.f32 %v4241_v31, %v3018_v18  ;;  %v610_v27 = vmul.f32 %v2909_v0, %v598_v5  ;;  %v611_v35 = vmul.f32 %v2909_v0, %v599_v6  ;;  %v3204_v31 = vpop.permute.xlu0 %2239 }
  0xad   : > { %v600_v28 = vmul.f32 %v4124_v41, %v3048_v61  ;;  %v601_v32 = vmul.f32 %v4125_v45, %v3030_v29  ;;  %4242 = vst [vmem:[#allocation11_spill] sm:$0xff] %v3204_v31  ;;  %v4128_v63 = vunpack.i.h.bf16 %v3184_v36  ;;  %v4130_v2 = vunpack.i.l.bf16 %v3184_v36  ;;  %v3210_v62 = vpop.permute.xlu1 %2254 }
  0xae   : > { %v977_v23 = vmul.f32 %v2996_v54, %v965_v11  ;;  %v978_v38 = vmul.f32 %v2996_v54, %v966_v14  ;;  %v4129_v11 = vunpack.i.l.bf16 %v3204_v31  ;;  %v983_v14 = vadd.f32 %v975_v55, %v899_v42 }
  0xaf   : > { %v984_v3 = vadd.f32 %v976_v7, %v900_v10  ;;  %v612_v6 = vmul.f32 %v2909_v0, %v600_v28  ;;  %v613_v41 = vmul.f32 %v2909_v0, %v601_v32  ;;  %v1063_v45 = vmul.f32 %v4130_v2, %v2920_v24 }
  0xb0   : > { %v1064_v21 = vmul.f32 %v4128_v63, %v2947_v39  ;;  %v682_v5 = vmul.f32 %v4129_v11, %v2884_v8  ;;  %v4243_v42 = vunpack.i.h.bf16 %v3204_v31  ;;  %v618_v7 = vadd.f32 %v610_v27, %v2998_v25  ;;  %v3230_v28 = vpop.permute.xlu0 %2249 }
  0xb1   : > { %v619_v0 = vadd.f32 %v611_v35, %v3002_v22  ;;  %v4131_v10 = vunpack.i.h.bf16 %v3210_v62  ;;  %v4134_v24 = vunpack.i.l.bf16 %v3210_v62  ;;  %4244 = vst [vmem:[#allocation12_spill] sm:$0xff] %v3230_v28  ;;  %v985_v32 = vadd.f32 %v977_v23, %v901_v1  ;;  %v3234_v2 = vpop.permute.xlu1 %2264 }
  0xb2   : > { %v683_v55 = vmul.f32 %v4243_v42, %v2934_v12  ;;  %v986_v39 = vadd.f32 %v978_v38, %v902_v37  ;;  %v1075_v63 = vmul.f32 %v3053_v51, %v1063_v45  ;;  %v1076_v11 = vmul.f32 %v3053_v51, %v1064_v21 }
  0xb3   : > { %v1065_v25 = vmul.f32 %v4134_v24, %v2987_v34  ;;  %v1066_v22 = vmul.f32 %v4131_v10, %v3006_v60  ;;  %v4132_v27 = vunpack.i.h.bf16 %v3230_v28  ;;  %v4133_v35 = vunpack.i.l.bf16 %v3230_v28 }
  0xb4   : > { %v620_v1 = vadd.f32 %v612_v6, %v3020_v19  ;;  %v621_v45 = vadd.f32 %v613_v41, %v3024_v4  ;;  %v694_v21 = vmul.f32 %v2901_v17, %v682_v5  ;;  %v695_v37 = vmul.f32 %v2901_v17, %v683_v55  ;;  %v3256_v10 = vpop.permute.xlu0 %2259 }
  0xb5   : > { %v1077_v23 = vmul.f32 %v3053_v51, %v1065_v25  ;;  %v1078_v34 = vmul.f32 %v3053_v51, %v1066_v22  ;;  %v684_v38 = vmul.f32 %v4133_v35, %v2937_v30  ;;  %v685_v42 = vmul.f32 %v4132_v27, %v2866_v57  ;;  %v3262_v6 = vpop.permute.xlu1 %2274 }
  0xb6   : > { %v4136_v19 = vunpack.i.h.bf16 %v3234_v2  ;;  %v4135_v4 = vunpack.i.l.bf16 %v3234_v2  ;;  %v4139_v5 = vunpack.i.l.bf16 %v3256_v10  ;;  %4245 = vst [vmem:[#allocation13_spill] sm:$0xff] %v3262_v6  ;;  %v3264_v55 = vadd.f32 %v1075_v63, %v983_v14 }
  0xb7   : > { %v3266_v25 = vadd.f32 %v1076_v11, %v984_v3  ;;  %v696_v22 = vmul.f32 %v2901_v17, %v684_v38  ;;  %v697_v27 = vmul.f32 %v2901_v17, %v685_v42  ;;  %v4246_v63 = vunpack.i.h.bf16 %v3256_v10 }
  0xb8   : > { %v1147_v35 = vmul.f32 %v4135_v4, %v2872_v59  ;;  %v1148_v24 = vmul.f32 %v4136_v19, %v2888_v13  ;;  %v799_v41 = vmul.f32 %v4139_v5, %v3018_v18  ;;  %v702_v14 = vadd.f32 %v694_v21, %v618_v7  ;;  %v3284_v42 = vpop.permute.xlu0 %2269 }
  0xb9   : > { %v800_v11 = vmul.f32 %v4246_v63, %v3133_v53  ;;  %v703_v3 = vadd.f32 %v695_v37, %v619_v0  ;;  %v4142_v17 = vunpack.i.h.bf16 %v3262_v6  ;;  %v4143_v38 = vunpack.i.l.bf16 %v3262_v6  ;;  %4247 = vst [vmem:[#allocation14_spill] sm:$0xff] %v3284_v42  ;;  %v3290_v28 = vpop.permute.xlu1 %2284 }
  0xba   : > { %v3286_v59 = vadd.f32 %v1077_v23, %v985_v32  ;;  %v3288_v4 = vadd.f32 %v1078_v34, %v986_v39  ;;  %v704_v13 = vadd.f32 %v696_v22, %v620_v1  ;;  %v705_v19 = vadd.f32 %v697_v27, %v621_v45  ;;  %v3317_v23 = vld [vmem:[%s4058_s3 + $0x8] ss:$0 sm:$0xff] }
  0xbb   : > { %v1159_v5 = vmul.f32 %v3058_v33, %v1147_v35  ;;  %v1160_v63 = vmul.f32 %v3058_v33, %v1148_v24  ;;  %v4140_v7 = vunpack.i.h.bf16 %v3284_v42  ;;  %v4141_v0 = vunpack.i.l.bf16 %v3284_v42 }
  0xbc   : > { %v811_v21 = vmul.f32 %v2952_v40, %v799_v41  ;;  %v812_v37 = vmul.f32 %v2952_v40, %v800_v11  ;;  %v4144_v32 = vunpack.i.h.bf16 %v3290_v28  ;;  %v4145_v39 = vunpack.i.l.bf16 %v3290_v28  ;;  %v3312_v45 = vpop.permute.xlu0 %2279 }
  0xbd   : > { %v1149_v27 = vmul.f32 %v4143_v38, %v2884_v8  ;;  %v1150_v24 = vmul.f32 %v4142_v17, %v2934_v12  ;;  %v801_v35 = vmul.f32 %v4141_v0, %v3180_v9  ;;  %v802_v1 = vmul.f32 %v4140_v7, %v3174_v46  ;;  %4248 = vst [vmem:[#allocation15_spill] sm:$0xff] %v3312_v45  ;;  %v3327_v22 = vpop.permute.xlu1 %2294 }
  0xbe   : > { %v1239_v8 = vmul.f32 %v4145_v39, %v2962_v44  ;;  %v1240_v12 = vmul.f32 %v4144_v32, %v2958_v43  ;;  %v4146_v34 = vunpack.i.h.bf16 %v3312_v45  ;;  %v4147_v41 = vunpack.i.l.bf16 %v3312_v45  ;;  %4249 = vst [vmem:[#allocation16_spill] sm:$0xff] %v3327_v22 }
  0xbf   : > { %v813_v11 = vmul.f32 %v2952_v40, %v801_v35  ;;  %v814_v7 = vmul.f32 %v2952_v40, %v802_v1  ;;  %v4149_v17 = vunpack.i.l.bf16 %v3327_v22  ;;  %v819_v44 = vadd.f32 %v811_v21, %v702_v14 }
  0xc0   : > { %v820_v38 = vadd.f32 %v812_v37, %v703_v3  ;;  %v883_v43 = vmul.f32 %v4147_v41, %v3006_v60  ;;  %v884_v32 = vmul.f32 %v4146_v34, %v3048_v61  ;;  %v1161_v39 = vmul.f32 %v3058_v33, %v1149_v27  ;;  %v3345_v0 = vpop.permute.xlu0 %2289 }
  0xc1   : > { %v3341_v35 = vmul.f32 %v3058_v33, %v1150_v24  ;;  %v1251_v40 = vmul.f32 %v3317_v23, %v1239_v8  ;;  %v1252_v1 = vmul.f32 %v3317_v23, %v1240_v12  ;;  %4250 = vst [vmem:[#allocation17_spill] sm:$0xff] %v3345_v0  ;;  %v821_v14 = vadd.f32 %v813_v11, %v704_v13  ;;  %v3349_v37 = vpop.permute.xlu1 %2304 }
  0xc2   : > { %v822_v3 = vadd.f32 %v814_v7, %v705_v19  ;;  %v4150_v21 = vunpack.i.h.bf16 %v3345_v0  ;;  %v4148_v60 = vunpack.i.l.bf16 %v3345_v0  ;;  %4251 = vst [vmem:[#allocation18_spill] sm:$0xff] %v3349_v37  ;;  %v1241_v27 = vmul.f32 %v4149_v17, %v3018_v18 }
  0xc3   : > { %v4252_v24 = vunpack.i.h.bf16 %v3327_v22  ;;  %v4156_v12 = vunpack.i.h.bf16 %v3349_v37  ;;  %v4155_v34 = vunpack.i.l.bf16 %v3349_v37  ;;  %v895_v19 = vmul.f32 %v2983_v52, %v883_v43 }
  0xc4   : > { %v896_v13 = vmul.f32 %v2983_v52, %v884_v32  ;;  %v885_v7 = vmul.f32 %v4148_v60, %v3030_v29  ;;  %v886_v18 = vmul.f32 %v4150_v21, %v2896_v16  ;;  %v3373_v41 = vpop.permute.xlu0 %2299  ;;  %v1168_v32 = vadd.f32 %v1160_v63, %v3266_v25 }
  0xc5   : > { %v1242_v8 = vmul.f32 %v4252_v24, %v3133_v53  ;;  %v969_v11 = vmul.f32 %v4155_v34, %v3174_v46  ;;  %v970_v24 = vmul.f32 %v4156_v12, %v2976_v49  ;;  %v1167_v43 = vadd.f32 %v1159_v5, %v3264_v55  ;;  %v3381_v42 = vpop.permute.xlu1 %2314 }
  0xc6   : > { %v897_v60 = vmul.f32 %v2983_v52, %v885_v7  ;;  %v898_v17 = vmul.f32 %v2983_v52, %v886_v18  ;;  %v4173_v21 = vunpack.i.h.bf16 %v3373_v41  ;;  %v4174_v0 = vunpack.i.l.bf16 %v3373_v41  ;;  %4253 = vst [vmem:[#allocation19_spill] sm:$0xff] %v3381_v42 }
  0xc7   : > { %v981_v34 = vmul.f32 %v2996_v54, %v969_v11  ;;  %v982_v12 = vmul.f32 %v2996_v54, %v970_v24  ;;  %v3385_v37 = vadd.f32 %v1252_v1, %v1168_v32  ;;  %v3387_v45 = vadd.f32 %v1251_v40, %v1167_v43 }
  0xc8   : > { %v905_v25 = vadd.f32 %v897_v60, %v821_v14  ;;  %v906_v5 = vadd.f32 %v898_v17, %v822_v3  ;;  %v967_v52 = vmul.f32 %v4174_v0, %v3133_v53  ;;  %v968_v55 = vmul.f32 %v4173_v21, %v3180_v9  ;;  %v3401_v14 = vpop.permute.xlu0 %2309 }
  0xc9   : > { %v1271_v63 = vsel %vm1267_vm6, %v3385_v37, 0.0  ;;  %v1268_v7 = vsel %vm1267_vm6, %v3387_v45, 0.0  ;;  %v4165_v1 = vunpack.i.h.bf16 %v3381_v42  ;;  %v4166_v40 = vunpack.i.l.bf16 %v3381_v42  ;;  %4254 = vst [vmem:[#allocation20_spill] sm:$0xff] %v3401_v14  ;;  %v3406_v18 = vpop.permute.xlu1 %2324 }
  0xca   : > { %v903_v17 = vadd.f32 %v895_v19, %v819_v44  ;;  %v1253_v3 = vmul.f32 %v3317_v23, %v1241_v27  ;;  %v1254_v53 = vmul.f32 %v3317_v23, %v1242_v8  ;;  %v979_v60 = vmul.f32 %v2996_v54, %v967_v52  ;;  %1272 = vadd.xlane.f32.xlu1 %v1271_v63 }
  0xcb   : > { %4255 = vst [vmem:[#allocation21_spill] sm:$0xff] %v3406_v18  ;;  %v980_v11 = vmul.f32 %v2996_v54, %v968_v55  ;;  %1269 = vadd.xlane.f32.xlu0 %v1268_v7  ;;  %v1069_v24 = vmul.f32 %v4166_v40, %v2896_v16  ;;  %v4171_v32 = vunpack.i.h.bf16 %v3401_v14  ;;  %v4172_v44 = vunpack.i.l.bf16 %v3401_v14 }
  0xcc   : > { %v904_v19 = vadd.f32 %v896_v13, %v820_v38  ;;  %v1070_v27 = vmul.f32 %v4165_v1, %v2915_v20  ;;  %v1169_v8 = vadd.f32 %v1161_v39, %v3286_v59  ;;  %v4163_v43 = vunpack.i.h.bf16 %v3406_v18  ;;  %v3425_v63 = vpop.permute.xlu0 %2319 }
  0xcd   : > { %v989_v52 = vadd.f32 %v981_v34, %v905_v25  ;;  %v990_v54 = vadd.f32 %v982_v12, %v906_v5  ;;  %v1067_v55 = vmul.f32 %v4172_v44, %v3048_v61  ;;  %v1068_v16 = vmul.f32 %v4171_v32, %v3030_v29  ;;  %4256 = vst [vmem:[#allocation22_spill] sm:$0xff] %v3425_v63  ;;  %v3436_v25 = vpop.permute.xlu1 %2334 }
  0xce   : > { %v3427_v38 = vadd.f32 %v1253_v3, %v1169_v8  ;;  %v4164_v20 = vunpack.i.l.bf16 %v3406_v18  ;;  %v1154_v59 = vmul.f32 %v4163_v43, %v2869_v58  ;;  %v4169_v39 = vunpack.i.h.bf16 %v3425_v63  ;;  %4257 = vst [vmem:[#allocation23_spill] sm:$0xff] %v3436_v25  ;;  %v4287_v18 = vld [vmem:[#allocation5_spill] sm:$0xff] }
  0xcf   : > { %v987_v34 = vadd.f32 %v979_v60, %v903_v17  ;;  %v988_v12 = vadd.f32 %v980_v11, %v904_v19  ;;  %v1081_v61 = vmul.f32 %v3053_v51, %v1069_v24  ;;  %v1079_v13 = vmul.f32 %v3053_v51, %v1067_v55 }
  0xd0   : > { %v1082_v29 = vmul.f32 %v3053_v51, %v1070_v27  ;;  %v1080_v5 = vmul.f32 %v3053_v51, %v1068_v16  ;;  %v1274_v7 = vsel %vm1267_vm6, %v3427_v38, 0.0  ;;  %v4170_v3 = vunpack.i.l.bf16 %v3425_v63  ;;  %v3452_v51 = vpop.permute.xlu0 %2329 }
  0xd1   : > { %1275 = vadd.xlane.f32.xlu0 %v1274_v7  ;;  %v1153_v58 = vmul.f32 %v4164_v20, %v2863_v56  ;;  %v1166_v17 = vmul.f32 %v3058_v33, %v1154_v59  ;;  %v1152_v60 = vmul.f32 %v4169_v39, %v2866_v57  ;;  %v1170_v11 = vadd.f32 %v3341_v35, %v3288_v4 }
  0xd2   : > { %4258 = vst [vmem:[#allocation24_spill] sm:$0xff] %v3452_v51  ;;  %v1087_v24 = vadd.f32 %v1079_v13, %v987_v34  ;;  %v1151_v19 = vmul.f32 %v4170_v3, %v2937_v30  ;;  %v4161_v27 = vunpack.i.h.bf16 %v3436_v25  ;;  %v4162_v56 = vunpack.i.l.bf16 %v3436_v25 }
  0xd3   : > { %v1164_v8 = vmul.f32 %v3058_v33, %v1152_v60  ;;  %v3460_v55 = vadd.f32 %v1254_v53, %v1170_v11  ;;  %v4167_v57 = vunpack.i.h.bf16 %v3452_v51  ;;  %v4168_v16 = vunpack.i.l.bf16 %v3452_v51 }
  0xd4   : > { %v1088_v4 = vadd.f32 %v1080_v5, %v988_v12  ;;  %v1163_v35 = vmul.f32 %v3058_v33, %v1151_v19  ;;  %v1245_v59 = vmul.f32 %v4162_v56, %v2976_v49  ;;  %v1246_v30 = vmul.f32 %v4161_v27, %v2970_v48 }
  0xd5   : > { %v1165_v34 = vmul.f32 %v3058_v33, %v1153_v58  ;;  %v1277_v53 = vsel %vm1267_vm6, %v3460_v55, 0.0  ;;  %v1243_v13 = vmul.f32 %v4168_v16, %v3180_v9  ;;  %v1244_v12 = vmul.f32 %v4167_v57, %v3174_v46 }
  0xd6   : > { %v1089_v5 = vadd.f32 %v1081_v61, %v989_v52  ;;  %v1090_v7 = vadd.f32 %v1082_v29, %v990_v54  ;;  %1278 = vadd.xlane.f32.xlu0 %v1277_v53  ;;  %v1257_v49 = vmul.f32 %v3317_v23, %v1245_v59  ;;  %v1172_v60 = vadd.f32 %v1164_v8, %v1088_v4 }
  0xd7   : > { %v1258_v48 = vmul.f32 %v3317_v23, %v1246_v30  ;;  %v1255_v33 = vmul.f32 %v3317_v23, %v1243_v13  ;;  %v1256_v58 = vmul.f32 %v3317_v23, %v1244_v12  ;;  %v1171_v11 = vadd.f32 %v1163_v35, %v1087_v24 }
  0xd8   : > { %v1173_v27 = vadd.f32 %v1165_v34, %v1089_v5  ;;  %v1174_v56 = vadd.f32 %v1166_v17, %v1090_v7  ;;  %v4288_v42 = vunpack.i.h.bf16 %v4287_v18 }
  0xd9   : > { %v3484_v19 = vadd.f32 %v1255_v33, %v1171_v11  ;;  %v3486_v9 = vadd.f32 %v1256_v58, %v1172_v60 }
  0xda   : > { %v3492_v54 = vadd.f32 %v1257_v49, %v1173_v27  ;;  %v3494_v61 = vadd.f32 %v1258_v48, %v1174_v56 }
  0xdb   : > { %v1280_v46 = vsel %vm1267_vm6, %v3484_v19, 0.0  ;;  %v1283_v52 = vsel %vm1267_vm6, %v3486_v9, 0.0 }
  0xdc   : > { %1281 = vadd.xlane.f32.xlu1 %v1280_v46  ;;  %1284 = vadd.xlane.f32.xlu0 %v1283_v52  ;;  %v1286_v23 = vsel %vm1267_vm6, %v3492_v54, 0.0  ;;  %v1289_v29 = vsel %vm1267_vm6, %v3494_v61, 0.0 }
  0xe0   : > { %1287 = vadd.xlane.f32.xlu1 %v1286_v23  ;;  %1290 = vadd.xlane.f32.xlu0 %v1289_v29 }
 0x157   : > { %v1273_v17 = vpop.xlane.xlu1 %1272 }
 0x158   : > { %v1294_v24 = vmul.f32 0.125, %v1273_v17  ;;  %v1270_v8 = vpop.xlane.xlu0 %1269 }
 0x159   : > { %v1293_v4 = vmul.f32 0.125, %v1270_v8 }
 0x15a   : > { %v3501_v35 = vsub.f32 %v3385_v37, %v1294_v24 }
 0x15b   : > { %v3504_v27 = vsub.f32 %v3387_v45, %v1293_v4 }
 0x15c   : > { %v1310_v56 = vmul.f32 %v3501_v35, %v3501_v35 }
 0x15d   : > { %v1309_v59 = vmul.f32 %v3504_v27, %v3504_v27 }
 0x15e   : > { %v1276_v30 = vpop.xlane.xlu0 %1275  ;;  %v1320_v34 = vsel %vm1267_vm6, %v1310_v56, 0.0 }
 0x15f   : > { %v1295_v53 = vmul.f32 0.125, %v1276_v30  ;;  %1321 = vadd.xlane.f32.xlu0 %v1320_v34  ;;  %v1317_v13 = vsel %vm1267_vm6, %v1309_v59, 0.0 }
 0x160   : > { %1318 = vadd.xlane.f32.xlu1 %v1317_v13 }
 0x161   : > { %v3513_v12 = vsub.f32 %v3427_v38, %v1295_v53 }
 0x163   : > { %v1279_v5 = vpop.xlane.xlu0 %1278  ;;  %v1311_v7 = vmul.f32 %v3513_v12, %v3513_v12 }
 0x164   : > { %v1296_v49 = vmul.f32 0.125, %v1279_v5 }
 0x165   : > { %v1323_v60 = vsel %vm1267_vm6, %v1311_v7, 0.0 }
 0x166   : > { %v3519_v48 = vsub.f32 %v3460_v55, %v1296_v49  ;;  %1324 = vadd.xlane.f32.xlu1 %v1323_v60 }
 0x168   : > { %v1312_v33 = vmul.f32 %v3519_v48, %v3519_v48 }
 0x169   : > { %v1282_v58 = vpop.xlane.xlu1 %1281  ;;  %v1285_v11 = vpop.xlane.xlu0 %1284 }
 0x16a   : > { %v1326_v46 = vsel %vm1267_vm6, %v1312_v33, 0.0  ;;  %v1297_v52 = vmul.f32 0.125, %v1282_v58  ;;  %v1298_v23 = vmul.f32 0.125, %v1285_v11  ;;  %v1415_v58 = vld [vmem:[%s4062_s7] sm:$0xf] }
 0x16b   : > { %1327 = vadd.xlane.f32.xlu0 %v1326_v46  ;;  %2165 = vmatprep.subr.msk.bf16.mxu0 %vm1435_vm10, %v1415_v58  ;;  %v1437_v11 = vsel %vm1435_vm10, %v1415_v58, 0 }
 0x16c   : > { %v3525_v29 = vsub.f32 %v3484_v19, %v1297_v52  ;;  %v3528_v17 = vsub.f32 %v3486_v9, %v1298_v23  ;;  %2144 = vmatpush3.bf16.msra.mxu0 %v1437_v11 }
 0x16d   : > { %v1288_v24 = vpop.xlane.xlu1 %1287  ;;  %v1291_v8 = vpop.xlane.xlu0 %1290 }
 0x16e   : > { %v1299_v4 = vmul.f32 0.125, %v1288_v24  ;;  %v1300_v56 = vmul.f32 0.125, %v1291_v8  ;;  %v1313_v59 = vmul.f32 %v3525_v29, %v3525_v29  ;;  %v1314_v30 = vmul.f32 %v3528_v17, %v3528_v17 }
 0x170   : > { %v3535_v34 = vsub.f32 %v3492_v54, %v1299_v4  ;;  %v3538_v53 = vsub.f32 %v3494_v61, %v1300_v56  ;;  %v1329_v13 = vsel %vm1267_vm6, %v1313_v59, 0.0  ;;  %v1332_v5 = vsel %vm1267_vm6, %v1314_v30, 0.0 }
 0x171   : > { %1330 = vadd.xlane.f32.xlu1 %v1329_v13  ;;  %1333 = vadd.xlane.f32.xlu0 %v1332_v5 }
 0x172   : > { %v1315_v7 = vmul.f32 %v3535_v34, %v3535_v34  ;;  %v1316_v49 = vmul.f32 %v3538_v53, %v3538_v53 }
 0x174   : > { %v1335_v60 = vsel %vm1267_vm6, %v1315_v7, 0.0  ;;  %v1338_v33 = vsel %vm1267_vm6, %v1316_v49, 0.0 }
 0x175   : > { %1336 = vadd.xlane.f32.xlu1 %v1335_v60  ;;  %1339 = vadd.xlane.f32.xlu0 %v1338_v33  ;;  %v2112_v60 = vld [vmem:[%s4060_s5] ss:$0 sm:$0xff] }
 0x1ec   : > { %v1322_v46 = vpop.xlane.xlu0 %1321 }
 0x1ed   : > { %v1319_v52 = vpop.xlane.xlu1 %1318  ;;  %v1342_v23 = vmul.f32 0.125, %v1322_v46  ;;  %v2113_v46 = vld [vmem:[%s4061_s6] ss:$0 sm:$0xff] }
 0x1ee   : > { %v1341_v24 = vmul.f32 0.125, %v1319_v52 }
 0x1ef   : > { %v1350_v8 = vadd.f32 1e-06, %v1342_v23 }
 0x1f0   : > { %v1349_v4 = vadd.f32 1e-06, %v1341_v24 }
 0x1f1   : > { %2340 = vrsqrt.f32 %v1350_v8 }
 0x1f2   : > { %2342 = vrsqrt.f32 %v1349_v4 }
 0x1f3   : > { %v1325_v56 = vpop.xlane.xlu1 %1324 }
 0x1f4   : > { %v1343_v59 = vmul.f32 0.125, %v1325_v56 }
 0x1f6   : > { %v1351_v30 = vadd.f32 1e-06, %v1343_v59 }
 0x1f8   : > { %2344 = vrsqrt.f32 %v1351_v30  ;;  %v1328_v13 = vpop.xlane.xlu0 %1327 }
 0x1f9   : > { %v1344_v5 = vmul.f32 0.125, %v1328_v13 }
 0x1fb   : > { %v2341_v7 = vpop.eup %2340  ;;  %v1352_v49 = vadd.f32 1e-06, %v1344_v5 }
 0x1fc   : > { %v2343_v33 = vpop.eup %2342  ;;  %v1366_v58 = vmul.f32 %v2341_v7, %v3501_v35 }
 0x1fd   : > { %2346 = vrsqrt.f32 %v1352_v49  ;;  %v1365_v11 = vmul.f32 %v2343_v33, %v3504_v27 }
 0x1fe   : > { %v1331_v52 = vpop.xlane.xlu1 %1330  ;;  %v1334_v23 = vpop.xlane.xlu0 %1333  ;;  %v1381_v24 = vmul.f32 %v2112_v60, %v1366_v58 }
 0x1ff   : > { %v1345_v8 = vmul.f32 0.125, %v1331_v52  ;;  %v1346_v4 = vmul.f32 0.125, %v1334_v23  ;;  %v1380_v56 = vmul.f32 %v2112_v60, %v1365_v11 }
 0x200   : > { %v1396_v59 = vadd.f32 %v2113_v46, %v1381_v24 }
 0x201   : > { %v1353_v30 = vadd.f32 1e-06, %v1345_v8  ;;  %v1354_v13 = vadd.f32 1e-06, %v1346_v4  ;;  %v1395_v5 = vadd.f32 %v2113_v46, %v1380_v56 }
 0x202   : > { %v2345_v43 = vpop.eup %2344  ;;  %v1337_v20 = vpop.xlane.xlu1 %1336  ;;  %v3560_v7 = vadd.f32 %v1396_v59, %v3385_v37 }
 0x203   : > { %v1340_v35 = vpop.xlane.xlu0 %1339  ;;  %v1367_v27 = vmul.f32 %v2345_v43, %v3513_v12  ;;  %2348 = vrsqrt.f32 %v1353_v30  ;;  %v1347_v49 = vmul.f32 0.125, %v1337_v20  ;;  %v3564_v58 = vadd.f32 %v1395_v5, %v3387_v45 }
 0x204   : > { %4259 = vst [vmem:[#allocation25_spill] sm:$0xff] %v3560_v7  ;;  %v1348_v33 = vmul.f32 0.125, %v1340_v35  ;;  %2350 = vrsqrt.f32 %v1354_v13 }
 0x205   : > { %4260 = vst [vmem:[#allocation26_spill] sm:$0xff] %v3564_v58  ;;  %v1355_v11 = vadd.f32 1e-06, %v1347_v49  ;;  %v1411_v23 = vpack.c.bf16 %v3560_v7, %v3564_v58  ;;  %v1382_v24 = vmul.f32 %v2112_v60, %v1367_v27  ;;  %v4285_v7 = vld [vmem:[#allocation6_spill] sm:$0xff] }
 0x206   : > { %v1356_v52 = vadd.f32 1e-06, %v1348_v33 }
 0x207   : > { %v2347_v8 = vpop.eup %2346  ;;  %2352 = vrsqrt.f32 %v1355_v11  ;;  %2145 = vmatprep.mubr.msk.bf16.mxu0 %vm1267_vm6, %v1411_v23  ;;  %v1397_v20 = vadd.f32 %v2113_v46, %v1382_v24 }
 0x208   : > { %v1368_v37 = vmul.f32 %v2347_v8, %v3519_v48  ;;  %2354 = vrsqrt.f32 %v1356_v52 }
 0x209   : > { %v3572_v59 = vadd.f32 %v1397_v20, %v3427_v38 }
 0x20a   : > { %v1383_v43 = vmul.f32 %v2112_v60, %v1368_v37 }
 0x20b   : > { %4261 = vst [vmem:[#allocation27_spill] sm:$0xff] %v3572_v59 }
 0x20c   : > { %v1398_v12 = vadd.f32 %v2113_v46, %v1383_v43 }
 0x20d   : > { %v2349_v4 = vpop.eup %2348 }
 0x20e   : > { %v2351_v56 = vpop.eup %2350  ;;  %v1369_v45 = vmul.f32 %v2349_v4, %v3525_v29  ;;  %v3575_v30 = vadd.f32 %v1398_v12, %v3460_v55 }
 0x20f   : > { %v1370_v13 = vmul.f32 %v2351_v56, %v3528_v17 }
 0x210   : > { %4262 = vst [vmem:[#allocation28_spill] sm:$0xff] %v3575_v30  ;;  %v1412_v48 = vpack.c.bf16 %v3575_v30, %v3572_v59  ;;  %v1384_v5 = vmul.f32 %v2112_v60, %v1369_v45 }
 0x211   : > { %v2353_v35 = vpop.eup %2352  ;;  %v1385_v27 = vmul.f32 %v2112_v60, %v1370_v13 }
 0x212   : > { %v2355_v49 = vpop.eup %2354  ;;  %v1371_v33 = vmul.f32 %v2353_v35, %v3535_v34  ;;  %2146 = vmatmul.mubr.msk.bf16.vlgmr.msra.gmra.mrb[0].mxu0 %vm1267_vm6, %v1412_v48  ;;  %v1399_v29 = vadd.f32 %v2113_v46, %v1384_v5 }
 0x213   : > { %v1372_v38 = vmul.f32 %v2355_v49, %v3538_v53  ;;  %v1400_v11 = vadd.f32 %v2113_v46, %v1385_v27 }
 0x214   : > { %v3584_v55 = vadd.f32 %v1399_v29, %v3484_v19  ;;  %v1386_v52 = vmul.f32 %v2112_v60, %v1371_v33 }
 0x215   : > { %v3587_v17 = vadd.f32 %v1400_v11, %v3486_v9  ;;  %v1387_v23 = vmul.f32 %v2112_v60, %v1372_v38  ;;  %v2338_v9 = vld [vmem:[%s4066_s11] sm:$0xff]   ;;  %v2339_v60 = vld [vmem:[%s4066_s11 + $0x8] sm:$0xff]  }
 0x216   : > { %4263 = vst [vmem:[#allocation29_spill] sm:$0xff] %v3584_v55  ;;  %v1401_v24 = vadd.f32 %v2113_v46, %v1386_v52  ;;  %2153 = vmatprep.subr.bf16.mxu1 %v2338_v9 }
 0x217   : > { %4264 = vst [vmem:[#allocation30_spill] sm:$0xff] %v3587_v17  ;;  %v1413_v8 = vpack.c.bf16 %v3587_v17, %v3584_v55  ;;  %v1402_v37 = vadd.f32 %v2113_v46, %v1387_v23  ;;  %2154 = vmatpush3.bf16.msra.mxu1 %v2338_v9 }
 0x218   : > { %v3592_v34 = vadd.f32 %v1401_v24, %v3492_v54  ;;  %2155 = vmatprep.subr.bf16.mxu1 %v2339_v60  ;;  %v2114_v54 = vld [vmem:[%s4063_s8] ss:$0 sm:$0xff] }
 0x219   : > { %2149 = vmatprep.mubr.msk.bf16.mxu0 %vm1267_vm6, %v1413_v8  ;;  %v3596_v53 = vadd.f32 %v1402_v37, %v3494_v61 }
 0x21a   : > { %4265 = vst [vmem:[#allocation31_spill] sm:$0xff] %v3592_v34 }
 0x21b   : > { %4266 = vst [vmem:[#allocation32_spill] sm:$0xff] %v3596_v53  ;;  %v1414_v19 = vpack.c.bf16 %v3596_v53, %v3592_v34  ;;  %2156 = vmatpush3.bf16.msra.mxu1 %v2339_v60 }
 0x21d   : > { %2150 = vmatmul.mubr.msk.bf16.gmra.mrb[4].mxu0 %vm1267_vm6, %v1414_v19 }
 0x2e5   : > { %v2147_v61 = vpop.f32.mrb[0].mxu0 }
 0x2e6   : > { %v1482_v46 = vadd.f32 %v2147_v61, %v2114_v54  ;;  %v1473_v43 = vpop.f32.mrb[1].mxu0 }
 0x2e7   : > { %v1474_v20 = vadd.f32 %v2114_v54, %v1473_v43  ;;  %v2148_v12 = vpop.f32.mrb[2].mxu0 }
 0x2e8   : > { %v1514_v4 = vmul.f32 0.044715, %v1482_v46  ;;  %v1485_v56 = vadd.f32 %v2148_v12, %v2114_v54  ;;  %v1476_v45 = vpop.f32.mrb[3].mxu0 }
 0x2e9   : > { %v1512_v13 = vmul.f32 0.044715, %v1474_v20  ;;  %v1477_v48 = vadd.f32 %v2114_v54, %v1476_v45  ;;  %v1504_v16 = vmul.f32 0.5, %v1474_v20 }
 0x2ea   : > { %v1522_v5 = vmul.f32 %v1514_v4, %v1482_v46  ;;  %v1515_v35 = vmul.f32 0.044715, %v1485_v56 }
 0x2eb   : > { %v1520_v27 = vmul.f32 %v1512_v13, %v1474_v20  ;;  %v1513_v49 = vmul.f32 0.044715, %v1477_v48  ;;  %v1505_v3 = vmul.f32 0.5, %v1477_v48 }
 0x2ec   : > { %v1530_v33 = vmul.f32 %v1522_v5, %v1482_v46  ;;  %v1523_v29 = vmul.f32 %v1515_v35, %v1485_v56 }
 0x2ed   : > { %v1528_v38 = vmul.f32 %v1520_v27, %v1474_v20  ;;  %v1521_v11 = vmul.f32 %v1513_v49, %v1477_v48 }
 0x2ee   : > { %v1538_v52 = vadd.f32 %v1530_v33, %v1482_v46  ;;  %v1531_v23 = vmul.f32 %v1523_v29, %v1485_v56 }
 0x2ef   : > { %v1536_v24 = vadd.f32 %v1528_v38, %v1474_v20  ;;  %v1529_v8 = vmul.f32 %v1521_v11, %v1477_v48  ;;  %v1576_v11 = vld [vmem:[%s4064_s9] sm:$0xff] }
 0x2f0   : > { %v1546_v37 = vmul.f32 0.7978846, %v1538_v52  ;;  %v1539_v19 = vadd.f32 %v1531_v23, %v1485_v56  ;;  %v2151_v9 = vpop.f32.mrb[4].mxu0 }
 0x2f1   : > { %v1544_v60 = vmul.f32 0.7978846, %v1536_v24  ;;  %v1537_v61 = vadd.f32 %v1529_v8, %v1477_v48  ;;  %v1498_v43 = vadd.f32 %v2151_v9, %v2114_v54  ;;  %v1489_v12 = vpop.f32.mrb[5].mxu0  ;;  %v4267_v24 = vsub.s32 1, %v2847_v26 }
 0x2f2   : > { %2356 = vtanh.f32 %v1546_v37  ;;  %v1547_v4 = vmul.f32 0.7978846, %v1539_v19  ;;  %v1490_v45 = vadd.f32 %v2114_v54, %v1489_v12  ;;  %v2152_v13 = vpop.f32.mrb[6].mxu0  ;;  %v4268_v37 = vsub.s32 0, %v2847_v26 }
 0x2f3   : > { %2358 = vtanh.f32 %v1544_v60  ;;  %v1545_v5 = vmul.f32 0.7978846, %v1537_v61  ;;  %v1518_v35 = vmul.f32 0.044715, %v1498_v43  ;;  %v1492_v27 = vpop.f32.mrb[7].mxu0  ;;  %v1501_v33 = vadd.f32 %v2152_v13, %v2114_v54 }
 0x2f4   : > { %2360 = vtanh.f32 %v1547_v4  ;;  %v1516_v49 = vmul.f32 0.044715, %v1490_v45  ;;  %v1493_v38 = vadd.f32 %v2114_v54, %v1492_v27  ;;  %v3615_v8 = vrot.slane %v1576_v11, %v4267_v24 }
 0x2f5   : > { %2362 = vtanh.f32 %v1545_v5  ;;  %v1526_v29 = vmul.f32 %v1518_v35, %v1498_v43  ;;  %v1519_v23 = vmul.f32 0.044715, %v1501_v33  ;;  %v3619_v19 = vrot.slane %v1576_v11, %v4268_v37 }
 0x2f6   : > { %v1524_v52 = vmul.f32 %v1516_v49, %v1490_v45  ;;  %v1517_v60 = vmul.f32 0.044715, %v1493_v38  ;;  %v4269_v61 = vsub.s32 2, %v2847_v26  ;;  %v4270_v54 = vsub.s32 3, %v2847_v26 }
 0x2f7   : > { %v1534_v9 = vmul.f32 %v1526_v29, %v1498_v43  ;;  %v1527_v5 = vmul.f32 %v1519_v23, %v1501_v33  ;;  %v4271_v35 = vsub.s32 5, %v2847_v26  ;;  %v4272_v37 = vsub.s32 4, %v2847_v26 }
 0x2f8   : > { %v3623_v12 = vrot.slane %v1576_v11, %v4269_v61  ;;  %v3627_v4 = vrot.slane %v1576_v11, %v4270_v54  ;;  %v1532_v13 = vmul.f32 %v1524_v52, %v1490_v45  ;;  %v1525_v24 = vmul.f32 %v1517_v60, %v1493_v38 }
 0x2f9   : > { %v3631_v27 = vrot.slane %v1576_v11, %v4271_v35  ;;  %v1542_v49 = vadd.f32 %v1534_v9, %v1498_v43  ;;  %v3635_v29 = vrot.slane %v1576_v11, %v4272_v37  ;;  %v1535_v40 = vmul.f32 %v1527_v5, %v1501_v33 }
 0x2fa   : > { %v1540_v1 = vadd.f32 %v1532_v13, %v1490_v45  ;;  %v4274_v61 = vsub.s32 6, %v2847_v26  ;;  %v4275_v54 = vsub.s32 7, %v2847_v26  ;;  %v1506_v23 = vmul.f32 0.5, %v1482_v46 }
 0x2fb   : > { %4273 = vst [vmem:[#allocation33_spill] sm:$0xff] %v3635_v29  ;;  %v1550_v35 = vmul.f32 0.7978846, %v1542_v49  ;;  %v1533_v39 = vmul.f32 %v1525_v24, %v1493_v38  ;;  %v1507_v60 = vmul.f32 0.5, %v1485_v56  ;;  %v1543_v37 = vadd.f32 %v1535_v40, %v1501_v33 }
 0x2fc   : > { %v3639_v57 = vrot.slane %v1576_v11, %v4274_v61  ;;  %v3643_v52 = vrot.slane %v1576_v11, %v4275_v54  ;;  %v2357_v9 = vpop.eup %2356  ;;  %v1548_v32 = vmul.f32 0.7978846, %v1540_v1  ;;  %v1510_v5 = vmul.f32 0.5, %v1498_v43 }
 0x2fd   : > { %v2359_v44 = vpop.eup %2358  ;;  %v1562_v13 = vadd.f32 1.0, %v2357_v9  ;;  %2364 = vtanh.f32 %v1550_v35  ;;  %v1541_v21 = vadd.f32 %v1533_v39, %v1493_v38  ;;  %v1508_v17 = vmul.f32 0.5, %v1490_v45  ;;  %v3652_v39 = vld [vmem:[%s4065_s10] ss:$0 sm:$0xff] }
 0x2fe   : > { %v2361_v61 = vpop.eup %2360  ;;  %v1560_v0 = vadd.f32 1.0, %v2359_v44  ;;  %2366 = vtanh.f32 %v1548_v32  ;;  %v1551_v11 = vmul.f32 0.7978846, %v1543_v37  ;;  %v1511_v49 = vmul.f32 0.5, %v1501_v33  ;;  %4276 = vst [vmem:[#allocation34_spill] sm:$0xff] %v3652_v39 }
 0x2ff   : > { %v2363_v54 = vpop.eup %2362  ;;  %v3645_v46 = vmul.f32 %v1562_v13, %v1506_v23  ;;  %v1563_v20 = vadd.f32 1.0, %v2361_v61  ;;  %v1549_v24 = vmul.f32 0.7978846, %v1541_v21  ;;  %v1509_v40 = vmul.f32 0.5, %v1493_v38 }
 0x300   : > { %v3647_v56 = vmul.f32 %v1560_v0, %v1504_v16  ;;  %v1561_v1 = vadd.f32 1.0, %v2363_v54  ;;  %2368 = vtanh.f32 %v1551_v11  ;;  %v4277_v16 = vunpack.i.h.bf16 %v2966_v47 }
 0x301   : > { %v3654_v44 = vmul.f32 %v1563_v20, %v1507_v60  ;;  %2370 = vtanh.f32 %v1549_v24  ;;  %v1585_v32 = vmul.f32 %v3635_v29, %v3645_v46  ;;  %v4176_v48 = vrot.slane %v3645_v46, 7 }
 0x302   : > { %v3659_v43 = vmul.f32 %v1561_v1, %v1505_v3  ;;  %v1583_v0 = vmul.f32 %v3635_v29, %v3647_v56  ;;  %v4180_v21 = vrot.slane %v3647_v56, 7  ;;  %v1650_v45 = vmul.f32 %v4277_v16, %v3647_v56 }
 0x303   : > { %v1586_v33 = vmul.f32 %v3635_v29, %v3654_v44  ;;  %v1599_v38 = vadd.f32 %v3652_v39, %v1585_v32  ;;  %v4278_v23 = vunpack.i.h.bf16 %v3012_v15  ;;  %v1677_v3 = vrot.slane %v3647_v56, 1 }
 0x304   : > { %v1584_v9 = vmul.f32 %v3635_v29, %v3659_v43  ;;  %v3677_v60 = vadd.f32 %v3652_v39, %v1583_v0  ;;  %v1606_v37 = vrot.slane %v3659_v43, 7  ;;  %v4279_v13 = vunpack.i.l.bf16 %v3012_v15 }
 0x305   : > { %v1652_v35 = vmul.f32 %v4278_v23, %v3645_v46  ;;  %v1600_v11 = vadd.f32 %v3652_v39, %v1586_v33  ;;  %v3685_v54 = vmul.f32 %v3615_v8, %v1650_v45  ;;  %v1678_v24 = vrot.slane %v3659_v43, 1  ;;  %v4280_v45 = vld [vmem:[#allocation3_spill] sm:$0xff] }
 0x306   : > { %v1651_v61 = vmul.f32 %v4279_v13, %v3659_v43  ;;  %v3690_v1 = vadd.f32 %v3652_v39, %v1584_v9  ;;  %v3696_v32 = vsel %vm505_vm15, %v1606_v37, %v4176_v48  ;;  %v1619_v15 = vsel %vm505_vm15, %v4180_v21, %v1606_v37  ;;  %v4283_v37 = vld [vmem:[#allocation7_spill] sm:$0xff] }
 0x307   : > { %v1664_v20 = vmul.f32 %v3615_v8, %v1652_v35  ;;  %v2365_v16 = vpop.eup %2364  ;;  %v4281_v33 = vunpack.i.l.bf16 %v4280_v45  ;;  %v4282_v35 = vunpack.i.h.bf16 %v4280_v45  ;;  %v1679_v13 = vrot.slane %v3645_v46, 1 }
 0x308   : > { %v1663_v0 = vmul.f32 %v3615_v8, %v1651_v61  ;;  %v4201_v48 = vrot.slane %v3654_v44, 1  ;;  %v2367_v53 = vpop.eup %2366  ;;  %v1566_v55 = vadd.f32 1.0, %v2365_v16  ;;  %v3712_v34 = vsel %vm714_vm14, %v1677_v3, %v1678_v24 }
 0x309   : > { %v1623_v23 = vmul.f32 %v4281_v33, %v1619_v15  ;;  %v1624_v9 = vmul.f32 %v4282_v35, %v3696_v32  ;;  %v4284_v61 = vunpack.i.h.bf16 %v4283_v37  ;;  %v4286_v33 = vunpack.i.l.bf16 %v4285_v7 }
 0x30a   : > { %v1564_v58 = vadd.f32 1.0, %v2367_v53  ;;  %v1689_v16 = vsel %vm714_vm14, %v1679_v13, %v4201_v48  ;;  %v2369_v59 = vpop.eup %2368  ;;  %v3725_v25 = vmul.f32 %v1566_v55, %v1510_v5  ;;  %v4289_v53 = vld [vmem:[#allocation4_spill] sm:$0xff]  ;;  %v4341_v26 = vunpack.i.h.bf16 %v3373_v41 }
 0x30b   : > { %v1722_v21 = vmul.f32 %v4284_v61, %v1619_v15  ;;  %v1723_v30 = vmul.f32 %v4286_v33, %v3696_v32  ;;  %v1635_v45 = vmul.f32 %v3619_v19, %v1623_v23  ;;  %v1636_v35 = vmul.f32 %v3619_v19, %v1624_v9  ;;  %v2371_v63 = vpop.eup %2370 }
 0x30c   : > { %v1690_v61 = vsel %vm714_vm14, %v1678_v24, %v1679_v13  ;;  %v1694_v33 = vmul.f32 %v4288_v42, %v3712_v34  ;;  %v4290_v51 = vunpack.i.h.bf16 %v4289_v53  ;;  %v3734_v9 = vmul.f32 %v1564_v58, %v1508_v17 }
 0x30d   : > { %v1567_v14 = vadd.f32 1.0, %v2369_v59  ;;  %v1643_v39 = vadd.f32 %v1635_v45, %v1599_v38  ;;  %v1644_v31 = vadd.f32 %v1636_v35, %v1600_v11  ;;  %v1611_v48 = vrot.slane %v3725_v25, 7 }
 0x30e   : > { %v1696_v23 = vmul.f32 %v4290_v51, %v1689_v16  ;;  %v1565_v55 = vadd.f32 1.0, %v2371_v63  ;;  %v4291_v5 = vunpack.i.l.bf16 %v4289_v53  ;;  %v1706_v24 = vmul.f32 %v3623_v12, %v1694_v33  ;;  %v4298_v53 = vld [vmem:[#allocation2_spill] sm:$0xff] }
 0x30f   : > { %v3740_v13 = vmul.f32 %v1567_v14, %v1511_v49  ;;  %v1671_v42 = vadd.f32 %v1663_v0, %v1643_v39  ;;  %v1672_v22 = vadd.f32 %v1664_v20, %v1644_v31  ;;  %v1734_v59 = vmul.f32 %v3627_v4, %v1722_v21 }
 0x310   : > { %v1695_v29 = vmul.f32 %v4291_v5, %v1690_v61  ;;  %v1708_v51 = vmul.f32 %v3623_v12, %v1696_v23  ;;  %v3743_v6 = vmul.f32 %v1565_v55, %v1509_v40  ;;  %v1735_v17 = vmul.f32 %v3627_v4, %v1723_v30  ;;  %v4293_v40 = vld [vmem:[#allocation8_spill] sm:$0xff] }
 0x311   : > { %v1612_v63 = vrot.slane %v3740_v13, 7  ;;  %v4292_v38 = vunpack.i.l.bf16 %v2966_v47  ;;  %v1684_v14 = vrot.slane %v3740_v13, 1  ;;  %v4294_v39 = vunpack.i.l.bf16 %v4293_v40 }
 0x312   : > { %v1707_v58 = vmul.f32 %v3623_v12, %v1695_v29  ;;  %v3753_v49 = vadd.f32 %v1708_v51, %v1672_v22  ;;  %v4295_v29 = vunpack.i.h.bf16 %v4293_v40  ;;  %v4296_v30 = vunpack.i.l.bf16 %v3148_v50 }
 0x313   : > { %v1649_v11 = vmul.f32 %v4292_v38, %v3740_v13  ;;  %v1749_v20 = vmul.f32 %v4294_v39, %v3712_v34  ;;  %v3766_v47 = vsel %vm505_vm15, %v1611_v48, %v1612_v63  ;;  %v4297_v22 = vrot.slane %v3647_v56, 7 }
 0x314   : > { %v1715_v31 = vadd.f32 %v1707_v58, %v1671_v42  ;;  %v1750_v21 = vmul.f32 %v4295_v29, %v1690_v61  ;;  %v1751_v0 = vmul.f32 %v4296_v30, %v1689_v16  ;;  %v3779_v33 = vsel %vm714_vm14, %v1684_v14, %v1677_v3 }
 0x315   : > { %v3772_v45 = vsel %vm505_vm15, %v1612_v63, %v4297_v22  ;;  %v1661_v35 = vmul.f32 %v3615_v8, %v1649_v11  ;;  %v4299_v23 = vunpack.i.l.bf16 %v4298_v53  ;;  %v4300_v5 = vunpack.i.h.bf16 %v4298_v53 }
 0x316   : > { %v4301_v51 = vunpack.i.l.bf16 %v4287_v18  ;;  %v4302_v63 = vunpack.i.l.bf16 %v4283_v37  ;;  %v1761_v11 = vmul.f32 %v3631_v27, %v1749_v20  ;;  %v1762_v3 = vmul.f32 %v3631_v27, %v1750_v21  ;;  %v3805_v37 = vld [vmem:[%s4064_s9 + $0x8] ss:$0 sm:$0xff] }
 0x317   : > { %v1621_v55 = vmul.f32 %v4299_v23, %v3766_v47  ;;  %v1622_v42 = vmul.f32 %v4300_v5, %v3772_v45  ;;  %v1763_v40 = vmul.f32 %v3631_v27, %v1751_v0  ;;  %v4303_v39 = vunpack.i.l.bf16 %v3184_v36 }
 0x318   : > { %v1693_v58 = vmul.f32 %v4301_v51, %v3779_v33  ;;  %v1721_v38 = vmul.f32 %v4302_v63, %v3772_v45  ;;  %v4304_v20 = vunpack.i.h.bf16 %v3184_v36  ;;  %v4308_v36 = vunpack.i.h.bf16 %v3290_v28 }
 0x319   : > { %v1777_v29 = vmul.f32 %v4303_v39, %v1619_v15  ;;  %v1633_v30 = vmul.f32 %v3619_v19, %v1621_v55  ;;  %v1634_v22 = vmul.f32 %v3619_v19, %v1622_v42  ;;  %v4305_v15 = vunpack.i.l.bf16 %v3234_v2 }
 0x31a   : > { %v1705_v18 = vmul.f32 %v3623_v12, %v1693_v58  ;;  %v1733_v53 = vmul.f32 %v3627_v4, %v1721_v38  ;;  %v1778_v21 = vmul.f32 %v4304_v20, %v3696_v32  ;;  %v4306_v55 = vunpack.i.h.bf16 %v3234_v2 }
 0x31b   : > { %v1789_v0 = vmul.f32 %v3639_v57, %v1777_v29  ;;  %v1805_v23 = vmul.f32 %v4305_v15, %v3659_v43  ;;  %v1641_v42 = vadd.f32 %v1633_v30, %v3677_v60  ;;  %v1642_v51 = vadd.f32 %v1634_v22, %v3690_v1 }
 0x31c   : > { %v1806_v5 = vmul.f32 %v4306_v55, %v3645_v46  ;;  %v4307_v58 = vunpack.i.l.bf16 %v3290_v28  ;;  %v1834_v32 = vmul.f32 %v4308_v36, %v1689_v16  ;;  %v1790_v38 = vmul.f32 %v3639_v57, %v1778_v21 }
 0x31d   : > { %v1817_v39 = vmul.f32 %v3643_v52, %v1805_v23  ;;  %v1608_v29 = vrot.slane %v3654_v44, 7  ;;  %v1669_v2 = vadd.f32 %v1661_v35, %v1641_v42  ;;  %v1670_v20 = vadd.f32 %v3685_v54, %v1642_v51  ;;  %v4310_v35 = vld [vmem:[#allocation9_spill] sm:$0xff] }
 0x31e   : > { %v1833_v63 = vmul.f32 %v4307_v58, %v1690_v61  ;;  %v1818_v43 = vmul.f32 %v3643_v52, %v1806_v5  ;;  %v1846_v1 = vmul.f32 %v3805_v37, %v1834_v32  ;;  %v1609_v61 = vrot.slane %v3734_v9, 7 }
 0x31f   : > { %v4309_v28 = vrot.slane %v3645_v46, 7  ;;  %v1681_v30 = vrot.slane %v3734_v9, 1  ;;  %v1682_v22 = vrot.slane %v3743_v6, 1  ;;  %v1713_v21 = vadd.f32 %v1705_v18, %v1669_v2 }
 0x320   : > { %v1845_v60 = vmul.f32 %v3805_v37, %v1833_v63  ;;  %v1714_v15 = vadd.f32 %v1706_v24, %v1670_v20  ;;  %v4311_v23 = vunpack.i.l.bf16 %v4310_v35  ;;  %v4312_v55 = vunpack.i.h.bf16 %v4285_v7 }
 0x321   : > { %v1617_v16 = vsel %vm505_vm15, %v4309_v28, %v1608_v29  ;;  %v3845_v46 = vsel %vm505_vm15, %v1608_v29, %v1609_v61  ;;  %v1687_v42 = vsel %vm714_vm14, %v1681_v30, %v1682_v22  ;;  %v4313_v18 = vrot.slane %v3654_v44, 1 }
 0x322   : > { %v1625_v54 = vmul.f32 %v4311_v23, %v1617_v16  ;;  %v1724_v5 = vmul.f32 %v4312_v55, %v1617_v16  ;;  %v1743_v51 = vadd.f32 %v1735_v17, %v1715_v31  ;;  %v1741_v58 = vadd.f32 %v1733_v53, %v1713_v21 }
 0x323   : > { %v1688_v24 = vsel %vm714_vm14, %v4313_v18, %v1681_v30  ;;  %v1742_v7 = vadd.f32 %v1734_v59, %v1714_v15  ;;  %v4314_v63 = vunpack.i.h.bf16 %v4310_v35  ;;  %v4315_v29 = vunpack.i.l.bf16 %v3256_v10 }
 0x324   : > { %v1637_v32 = vmul.f32 %v3619_v19, %v1625_v54  ;;  %v4316_v20 = vunpack.i.h.bf16 %v3256_v10  ;;  %v1736_v23 = vmul.f32 %v3627_v4, %v1724_v5  ;;  %v4317_v30 = vunpack.i.h.bf16 %v3148_v50 }
 0x325   : > { %v1626_v36 = vmul.f32 %v4314_v63, %v3845_v46  ;;  %v1697_v2 = vmul.f32 %v4315_v29, %v1688_v24  ;;  %v1769_v31 = vadd.f32 %v1761_v11, %v1741_v58  ;;  %v1770_v59 = vadd.f32 %v1762_v3, %v1742_v7 }
 0x326   : > { %v1698_v28 = vmul.f32 %v4316_v20, %v1687_v42  ;;  %v1752_v17 = vmul.f32 %v4317_v30, %v1688_v24  ;;  %v4318_v21 = vunpack.i.l.bf16 %v3373_v41  ;;  %v1744_v10 = vadd.f32 %v1736_v23, %v3753_v49 }
 0x327   : > { %v1638_v53 = vmul.f32 %v3619_v19, %v1626_v36  ;;  %v1709_v35 = vmul.f32 %v3623_v12, %v1697_v2  ;;  %v1797_v5 = vadd.f32 %v1789_v0, %v1769_v31  ;;  %v1798_v18 = vadd.f32 %v1790_v38, %v1770_v59  ;;  %v4321_v36 = vld [vmem:[#allocation13_spill] sm:$0xff]  ;;  %v4324_v38 = vld [vmem:[#allocation16_spill] sm:$0xff] }
 0x328   : > { %v3869_v15 = vmul.f32 %v4318_v21, %v1687_v42  ;;  %v1710_v54 = vmul.f32 %v3623_v12, %v1698_v28  ;;  %v1764_v55 = vmul.f32 %v3631_v27, %v1752_v17  ;;  %v1771_v50 = vadd.f32 %v1763_v40, %v1743_v51 }
 0x329   : > { %v4319_v11 = vunpack.i.l.bf16 %v3210_v62  ;;  %v4320_v7 = vunpack.i.h.bf16 %v3210_v62  ;;  %v4322_v29 = vunpack.i.l.bf16 %v4321_v36  ;;  %v4323_v49 = vunpack.i.h.bf16 %v4321_v36 }
 0x32a   : > { %v1772_v58 = vadd.f32 %v1764_v55, %v1744_v10  ;;  %v1825_v28 = vadd.f32 %v1817_v39, %v1797_v5  ;;  %v1826_v0 = vadd.f32 %v1818_v43, %v1798_v18  ;;  %v4325_v51 = vunpack.i.l.bf16 %v4324_v38  ;;  %v4327_v5 = vld [vmem:[#allocation33_spill] sm:$0xff] }
 0x32b   : > { %v1779_v3 = vmul.f32 %v4319_v11, %v1617_v16  ;;  %v1780_v63 = vmul.f32 %v4320_v7, %v3845_v46  ;;  %v1807_v2 = vmul.f32 %v4322_v29, %v3654_v44  ;;  %v1808_v20 = vmul.f32 %v4323_v49, %v3734_v9 }
 0x32c   : > { %v1835_v16 = vmul.f32 %v4325_v51, %v1688_v24  ;;  %v4326_v17 = vunpack.i.h.bf16 %v4324_v38  ;;  %v1853_v59 = vadd.f32 %v1845_v60, %v1825_v28  ;;  %v1854_v21 = vadd.f32 %v1846_v1, %v1826_v0 }
 0x32d   : > { %v1791_v40 = vmul.f32 %v3639_v57, %v1779_v3  ;;  %v1792_v23 = vmul.f32 %v3639_v57, %v1780_v63  ;;  %v1819_v62 = vmul.f32 %v3643_v52, %v1807_v2  ;;  %v1820_v30 = vmul.f32 %v3643_v52, %v1808_v20  ;;  %v4330_v63 = vld [vmem:[#allocation34_spill] sm:$0xff] }
 0x32e   : > { %v1836_v31 = vmul.f32 %v4326_v17, %v1687_v42  ;;  %v1847_v39 = vmul.f32 %v3805_v37, %v1835_v16  ;;  %v1587_v24 = vmul.f32 %v4327_v5, %v3734_v9  ;;  %v1588_v18 = vmul.f32 %v4327_v5, %v3743_v6  ;;  %v4328_v42 = vld [vmem:[#allocation11_spill] sm:$0xff] }
 0x32f   : > { %v1799_v10 = vadd.f32 %v1791_v40, %v1771_v50  ;;  %v1800_v43 = vadd.f32 %v1792_v23, %v1772_v58  ;;  %v1861_v11 = vpack.c.bf16 %v1854_v21, %v1853_v59  ;;  %v1610_v7 = vrot.slane %v3743_v6, 7  ;;  %v4332_v40 = vld [vmem:[#allocation10_spill] sm:$0xff] }
 0x330   : > { %v1848_v55 = vmul.f32 %v3805_v37, %v1836_v31  ;;  %v4329_v60 = vunpack.i.l.bf16 %v4328_v42  ;;  %v1601_v36 = vadd.f32 %v4330_v63, %v1587_v24  ;;  %v1602_v58 = vadd.f32 %v4330_v63, %v1588_v18  ;;  %v4338_v24 = vld [vmem:[#allocation14_spill] sm:$0xff] }
 0x331   : > { %v1827_v3 = vadd.f32 %v1819_v62, %v1799_v10  ;;  %v1828_v50 = vadd.f32 %v1820_v30, %v1800_v43  ;;  %v4331_v29 = vunpack.i.h.bf16 %v4328_v42  ;;  %2157 = vmatprep.mubr.msk.bf16.mxu1 %vm1888_vm9, %v1861_v11  ;;  %v1614_v20 = vsel %vm505_vm15, %v1610_v7, %v1611_v48 }
 0x332   : > { %v1653_v1 = vmul.f32 %v4329_v60, %v3654_v44  ;;  %v1615_v44 = vsel %vm505_vm15, %v1609_v61, %v1610_v7  ;;  %v4333_v38 = vunpack.i.l.bf16 %v4332_v40  ;;  %v4334_v16 = vunpack.i.h.bf16 %v4332_v40 }
 0x333   : > { %v1654_v2 = vmul.f32 %v4331_v29, %v3734_v9  ;;  %v1855_v49 = vadd.f32 %v1847_v39, %v1827_v3  ;;  %v1856_v0 = vadd.f32 %v1848_v55, %v1828_v50  ;;  %v1645_v62 = vadd.f32 %v1637_v32, %v1601_v36  ;;  %v4335_v9 = vld [vmem:[#allocation15_spill] sm:$0xff] }
 0x334   : > { %v1665_v28 = vmul.f32 %v3615_v8, %v1653_v1  ;;  %v1627_v51 = vmul.f32 %v4333_v38, %v1615_v44  ;;  %v1628_v23 = vmul.f32 %v4334_v16, %v1614_v20  ;;  %v1646_v30 = vadd.f32 %v1638_v53, %v1602_v58  ;;  %v4342_v1 = vld [vmem:[#allocation18_spill] sm:$0xff] }
 0x335   : > { %v1666_v17 = vmul.f32 %v3615_v8, %v1654_v2  ;;  %v1683_v48 = vrot.slane %v3725_v25, 1  ;;  %v4336_v31 = vunpack.i.l.bf16 %v4335_v9  ;;  %v1862_v61 = vpack.c.bf16 %v1856_v0, %v1855_v49  ;;  %v4347_v16 = vld [vmem:[#allocation22_spill] sm:$0xff] }
 0x336   : > { %v1639_v21 = vmul.f32 %v3619_v19, %v1627_v51  ;;  %v1640_v10 = vmul.f32 %v3619_v19, %v1628_v23  ;;  %v1673_v39 = vadd.f32 %v1665_v28, %v1645_v62  ;;  %v4337_v55 = vunpack.i.h.bf16 %v4335_v9 }
 0x337   : > { %v1725_v59 = vmul.f32 %v4336_v31, %v3845_v46  ;;  %v1674_v43 = vadd.f32 %v1666_v17, %v1646_v30  ;;  %v1685_v32 = vsel %vm714_vm14, %v1683_v48, %v1684_v14  ;;  %v1686_v53 = vsel %vm714_vm14, %v1682_v22, %v1683_v48  ;;  %2158 = vmatmul.mubr.msk.bf16.vlgmr.msra.gmra.mrb[0].mxu1 %vm1888_vm9, %v1862_v61  ;;  %v4350_v17 = vld [vmem:[#allocation24_spill] sm:$0xff] }
 0x338   : > { %v1726_v46 = vmul.f32 %v4337_v55, %v1615_v44  ;;  %v4339_v18 = vunpack.i.l.bf16 %v4338_v24  ;;  %v4340_v11 = vunpack.i.h.bf16 %v4338_v24  ;;  %v1717_v7 = vadd.f32 %v1709_v35, %v1673_v39 }
 0x339   : > { %v1737_v42 = vmul.f32 %v3627_v4, %v1725_v59  ;;  %v1718_v14 = vadd.f32 %v1710_v54, %v1674_v43  ;;  %v1754_v22 = vmul.f32 %v4341_v26, %v1686_v53  ;;  %v4343_v50 = vunpack.i.l.bf16 %v4342_v1  ;;  %v4344_v54 = vld [vmem:[#allocation20_spill] sm:$0xff] }
 0x33a   : > { %v1699_v19 = vmul.f32 %v4339_v18, %v1686_v53  ;;  %v1700_v3 = vmul.f32 %v4340_v11, %v1685_v32  ;;  %v1738_v60 = vmul.f32 %v3627_v4, %v1726_v46  ;;  %v1765_v49 = vmul.f32 %v3631_v27, %v3869_v15 }
 0x33b   : > { %v1755_v36 = vmul.f32 %v4343_v50, %v1685_v32  ;;  %v1745_v2 = vadd.f32 %v1737_v42, %v1717_v7  ;;  %v1766_v28 = vmul.f32 %v3631_v27, %v1754_v22  ;;  %v4345_v0 = vunpack.i.l.bf16 %v4344_v54 }
 0x33c   : > { %v1711_v58 = vmul.f32 %v3623_v12, %v1699_v19  ;;  %v1712_v29 = vmul.f32 %v3623_v12, %v1700_v3  ;;  %v1746_v35 = vadd.f32 %v1738_v60, %v1718_v14  ;;  %v4346_v41 = vunpack.i.h.bf16 %v4344_v54  ;;  %v4356_v60 = vld [vmem:[#allocation17_spill] sm:$0xff] }
 0x33d   : > { %v1781_v40 = vmul.f32 %v4345_v0, %v1615_v44  ;;  %v1773_v51 = vadd.f32 %v1765_v49, %v1745_v2  ;;  %v4348_v23 = vunpack.i.l.bf16 %v4347_v16  ;;  %v4349_v12 = vunpack.i.h.bf16 %v4347_v16 }
 0x33e   : > { %v1782_v38 = vmul.f32 %v4346_v41, %v1614_v20  ;;  %v4351_v15 = vunpack.i.l.bf16 %v4350_v17  ;;  %v1774_v9 = vadd.f32 %v1766_v28, %v1746_v35  ;;  %v4352_v59 = vunpack.i.h.bf16 %v4350_v17 }
 0x33f   : > { %v1809_v62 = vmul.f32 %v4348_v23, %v3743_v6  ;;  %v1810_v30 = vmul.f32 %v4349_v12, %v3725_v25  ;;  %v1793_v31 = vmul.f32 %v3639_v57, %v1781_v40  ;;  %v1589_v46 = vmul.f32 %v4327_v5, %v3725_v25 }
 0x340   : > { %v1837_v48 = vmul.f32 %v4351_v15, %v1686_v53  ;;  %v1794_v44 = vmul.f32 %v3639_v57, %v1782_v38  ;;  %v1838_v61 = vmul.f32 %v4352_v59, %v1685_v32  ;;  %v1590_v19 = vmul.f32 %v4327_v5, %v3740_v13  ;;  %v4353_v32 = vld [vmem:[#allocation12_spill] sm:$0xff]  ;;  %v4366_v59 = vld [vmem:[#allocation23_spill] sm:$0xff] }
 0x341   : > { %v1821_v39 = vmul.f32 %v3643_v52, %v1809_v62  ;;  %v1822_v43 = vmul.f32 %v3643_v52, %v1810_v30  ;;  %v1801_v24 = vadd.f32 %v1793_v31, %v1773_v51  ;;  %v1603_v11 = vadd.f32 %v4330_v63, %v1589_v46 }
 0x342   : > { %v1849_v55 = vmul.f32 %v3805_v37, %v1837_v48  ;;  %v1802_v18 = vadd.f32 %v1794_v44, %v1774_v9  ;;  %v1850_v53 = vmul.f32 %v3805_v37, %v1838_v61  ;;  %v4354_v3 = vunpack.i.l.bf16 %v4353_v32  ;;  %v4363_v48 = vld [vmem:[#allocation21_spill] sm:$0xff] }
 0x343   : > { %v4355_v42 = vunpack.i.h.bf16 %v4353_v32  ;;  %v4357_v26 = vunpack.i.l.bf16 %v4356_v60  ;;  %v1829_v50 = vadd.f32 %v1821_v39, %v1801_v24  ;;  %v1604_v49 = vadd.f32 %v4330_v63, %v1590_v19 }
 0x344   : > { %v1655_v7 = vmul.f32 %v4354_v3, %v3743_v6  ;;  %v1830_v2 = vadd.f32 %v1822_v43, %v1802_v18  ;;  %v4358_v5 = vunpack.i.h.bf16 %v4356_v60  ;;  %v1647_v28 = vadd.f32 %v1639_v21, %v1603_v11 }
 0x345   : > { %v1656_v14 = vmul.f32 %v4355_v42, %v3725_v25  ;;  %v1727_v22 = vmul.f32 %v4357_v26, %v1614_v20  ;;  %v1857_v40 = vadd.f32 %v1849_v55, %v1829_v50  ;;  %v1648_v41 = vadd.f32 %v1640_v10, %v1604_v49  ;;  %v4370_v50 = vld [vmem:[#allocation26_spill] sm:$0xff] }
 0x346   : > { %v1728_v35 = vmul.f32 %v4358_v5, %v3766_v47  ;;  %v1667_v54 = vmul.f32 %v3615_v8, %v1655_v7  ;;  %v1858_v25 = vadd.f32 %v1850_v53, %v1830_v2  ;;  %v4359_v63 = vunpack.i.h.bf16 %v4342_v1  ;;  %v4371_v5 = vld [vmem:[#allocation28_spill] sm:$0xff] }
 0x347   : > { %v1668_v6 = vmul.f32 %v3615_v8, %v1656_v14  ;;  %v1739_v0 = vmul.f32 %v3627_v4, %v1727_v22  ;;  %v1767_v16 = vmul.f32 %v3631_v27, %v1755_v36  ;;  %v4360_v8 = vld [vmem:[#allocation19_spill] sm:$0xff]  ;;  %v4364_v36 = vunpack.i.l.bf16 %v4363_v48 }
 0x348   : > { %v1740_v20 = vmul.f32 %v3627_v4, %v1728_v35  ;;  %v1675_v38 = vadd.f32 %v1667_v54, %v1647_v28  ;;  %v1756_v51 = vmul.f32 %v4359_v63, %v3779_v33  ;;  %v1863_v23 = vpack.c.bf16 %v1858_v25, %v1857_v40  ;;  %v4372_v28 = vld [vmem:[#allocation25_spill] sm:$0xff] }
 0x349   : > { %v1676_v21 = vadd.f32 %v1668_v6, %v1648_v41  ;;  %v4361_v30 = vunpack.i.l.bf16 %v4360_v8  ;;  %v4362_v4 = vunpack.i.h.bf16 %v4360_v8  ;;  %v1811_v9 = vmul.f32 %v4364_v36, %v3740_v13  ;;  %v4376_v8 = vld [vmem:[#allocation30_spill] sm:$0xff] }
 0x34a   : > { %v1719_v62 = vadd.f32 %v1711_v58, %v1675_v38  ;;  %v1768_v12 = vmul.f32 %v3631_v27, %v1756_v51  ;;  %2161 = vmatprep.mubr.msk.bf16.mxu1 %vm1888_vm9, %v1863_v23  ;;  %v4365_v27 = vunpack.i.h.bf16 %v4363_v48  ;;  %v4368_v43 = vunpack.i.h.bf16 %v4366_v59 }
 0x34b   : > { %v1783_v17 = vmul.f32 %v4361_v30, %v3766_v47  ;;  %v1720_v10 = vadd.f32 %v1712_v29, %v1676_v21  ;;  %v1784_v15 = vmul.f32 %v4362_v4, %v3772_v45  ;;  %v4367_v29 = vunpack.i.l.bf16 %v4366_v59 }
 0x34c   : > { %v1747_v1 = vadd.f32 %v1739_v0, %v1719_v62  ;;  %v1812_v58 = vmul.f32 %v4365_v27, %v3647_v56  ;;  %v1840_v55 = vmul.f32 %v4368_v43, %v3712_v34  ;;  %v1823_v46 = vmul.f32 %v3643_v52, %v1811_v9  ;;  %v2121_v34 = vld [vmem:[%s4067_s12] ss:$0 sm:$0xff]  ;;  %v4375_v62 = vld [vmem:[#allocation32_spill] sm:$0xff] }
 0x34d   : > { %v1748_v31 = vadd.f32 %v1740_v20, %v1720_v10  ;;  %v1795_v47 = vmul.f32 %v3639_v57, %v1783_v17  ;;  %v1839_v61 = vmul.f32 %v4367_v29, %v3779_v33  ;;  %v1796_v45 = vmul.f32 %v3639_v57, %v1784_v15  ;;  %v4373_v20 = vld [vmem:[#allocation31_spill] sm:$0xff] }
 0x34e   : > { %v1775_v44 = vadd.f32 %v1767_v16, %v1747_v1  ;;  %v1824_v56 = vmul.f32 %v3643_v52, %v1812_v58  ;;  %v1852_v33 = vmul.f32 %v3805_v37, %v1840_v55  ;;  %v4374_v16 = vld [vmem:[#allocation29_spill] sm:$0xff] }
 0x34f   : > { %v1776_v39 = vadd.f32 %v1768_v12, %v1748_v31  ;;  %v1851_v53 = vmul.f32 %v3805_v37, %v1839_v61  ;;  %v4369_v37 = vld [vmem:[#allocation27_spill] sm:$0xff] }
 0x350   : > { %v1803_v13 = vadd.f32 %v1795_v47, %v1775_v44 }
 0x351   : > { %v1804_v24 = vadd.f32 %v1796_v45, %v1776_v39 }
 0x352   : > { %v1831_v18 = vadd.f32 %v1823_v46, %v1803_v13 }
 0x353   : > { %v1832_v19 = vadd.f32 %v1824_v56, %v1804_v24 }
 0x354   : > { %v1859_v11 = vadd.f32 %v1851_v53, %v1831_v18 }
 0x355   : > { %v1860_v32 = vadd.f32 %v1852_v33, %v1832_v19 }
 0x357   : > { %v1864_v57 = vpack.c.bf16 %v1860_v32, %v1859_v11 }
 0x359   : > { %2162 = vmatmul.mubr.msk.bf16.gmra.mrb[4].mxu1 %vm1888_vm9, %v1864_v57 }
 0x40a   : > { %v2159_v3 = vpop.f32.mrb[0].mxu1 }
 0x40b   : > { %v1944_v7 = vadd.f32 %v2159_v3, %v2121_v34  ;;  %v1935_v42 = vpop.f32.mrb[1].mxu1 }
 0x40c   : > { %v1936_v52 = vadd.f32 %v2121_v34, %v1935_v42  ;;  %v2160_v14 = vpop.f32.mrb[2].mxu1 }
 0x40d   : > { %v1968_v60 = vadd.f32 %v1944_v7, %v4369_v37  ;;  %v1947_v26 = vadd.f32 %v2160_v14, %v2121_v34  ;;  %v1938_v22 = vpop.f32.mrb[3].mxu1 }
 0x40e   : > { %v1966_v2 = vadd.f32 %v1936_v52, %v4370_v50  ;;  %v1939_v49 = vadd.f32 %v2121_v34, %v1938_v22 }
 0x40f   : > { %1976 = vst.msk [vmem:[%s440_s16 + $0x10] sm:$0xff] %vm1267_vm6, %v1968_v60  ;;  %v1969_v35 = vadd.f32 %v1947_v26, %v4371_v5 }
 0x410   : > { %1974 = vst.msk [vmem:[%s440_s16] sm:$0xff] %vm1267_vm6, %v1966_v2  ;;  %v1967_v54 = vadd.f32 %v1939_v49, %v4372_v28 }
 0x411   : > { %1977 = vst.msk [vmem:[%s440_s16 + $0x18] sm:$0xff] %vm1267_vm6, %v1969_v35 }
 0x412   : > { %1975 = vst.msk [vmem:[%s440_s16 + $0x8] sm:$0xff] %vm1267_vm6, %v1967_v54 }
 0x42c   : > { %v2163_v6 = vpop.f32.mrb[4].mxu1 }
 0x42d   : > { %v1960_v0 = vadd.f32 %v2163_v6, %v2121_v34  ;;  %v1951_v40 = vpop.f32.mrb[5].mxu1 }
 0x42e   : > { %v1952_v25 = vadd.f32 %v2121_v34, %v1951_v40  ;;  %v2164_v41 = vpop.f32.mrb[6].mxu1 }
 0x42f   : > { %v1972_v38 = vadd.f32 %v1960_v0, %v4373_v20  ;;  %v1963_v63 = vadd.f32 %v2164_v41, %v2121_v34  ;;  %v1954_v51 = vpop.f32.mrb[7].mxu1 }
 0x430   : > { %v1970_v23 = vadd.f32 %v1952_v25, %v4374_v16  ;;  %v1955_v21 = vadd.f32 %v2121_v34, %v1954_v51 }
 0x431   : > { %1980 = vst.msk [vmem:[%s440_s16 + $0x30] sm:$0xff] %vm1267_vm6, %v1972_v38  ;;  %v1973_v12 = vadd.f32 %v1963_v63, %v4375_v62 }
 0x432   : > { %1978 = vst.msk [vmem:[%s440_s16 + $0x20] sm:$0xff] %vm1267_vm6, %v1970_v23  ;;  %v1971_v30 = vadd.f32 %v1955_v21, %v4376_v8 }
 0x433   : > { %1981 = vst.msk [vmem:[%s440_s16 + $0x38] sm:$0xff] %vm1267_vm6, %v1973_v12 }
 0x434   : > { %1979 = vst.msk [vmem:[%s440_s16 + $0x28] sm:$0xff] %vm1267_vm6, %v1971_v30 }
 0x435 PF: > { %s23_s25 = sadd.s32 1, %s2378_s25  }
 0x436   : > { %p20_p4 = scmp.ge.s32.totalorder %s23_s25, 4  }
 0x438   :  { %22 = sbr.rel (!%p20_p4) target bundleno = 1 (0x1), region = 102 }

</bundles_post_ra>
